<compile_context>
chip_gen: v7x
topology: tpu7x:2x2x1
jax: 0.10.0
libtpu: 0.0.40
codegen_flags: <defaults>
</compile_context>

<pallas_src>
import numpy as np
import jax
import jax.numpy as jnp
from jax.experimental import pallas as pl
from jax.experimental.pallas import tpu as pltpu


# ----------------------------------------------------------------------------
# Tap machinery (transposed / channel-major layout: lanes = flattened H*W)
# ----------------------------------------------------------------------------
def _tap_masks(k, H, W, bt):
    """0/1 masks (k*k, bt*H*W): mask[t, b*HW + h*W + w] = 1 iff conv tap
    t = dy*k + dx reads a real (non-padding) pixel for output position (h, w)."""
    p = (k - 1) // 2
    h = np.arange(H)[:, None]
    w = np.arange(W)[None, :]
    rows = []
    for dy in range(k):
        for dx in range(k):
            ok = ((h + dy - p >= 0) & (h + dy - p < H) &
                  (w + dx - p >= 0) & (w + dx - p < W))
            rows.append(ok.reshape(-1))
    m = np.stack(rows).astype(np.float32)
    return jnp.asarray(np.tile(m, (1, bt)), dtype=jnp.bfloat16)


def _shifted_taps(act, k, W):
    """Yield (tap_index, shifted) with shifted[c, i] = act[c, i + s_t] (zeros
    outside the guard); combined with the tap mask this realises the
    zero-padded k x k window in the flattened-(H*W) lane layout."""
    C, N = act.shape
    p = (k - 1) // 2
    g = p * (W + 1)                               # max |shift|
    z = jnp.zeros((C, g), act.dtype)
    padded = jnp.concatenate([z, act, z], axis=-1)
    for dy in range(k):
        for dx in range(k):
            s = (dy - p) * W + (dx - p)
            yield dy * k + dx, padded[:, g + s: g + s + N]


def _im2col(act_bf, mask_ref, col_ref, k, W):
    """Lane-dense im2col: tap t of the (C, N) bf16 activation is written to
    col_ref[t*C:(t+1)*C, :] as C full N-lane rows (unmasked along lanes)."""
    C = act_bf.shape[0]
    for t, win in _shifted_taps(act_bf, k, W):
        col_ref[t * C:(t + 1) * C, :] = win * mask_ref[t:t + 1, :]


def _avg_pool3x3(x_f32, mask3_ref, W):
    """avg_pool2d(kernel=3, stride=1, pad=1, count_include_pad=True)."""
    acc = None
    for t, win in _shifted_taps(x_f32, 3, W):
        term = win * mask3_ref[t:t + 1, :]          # bf16 mask * f32 -> f32
        acc = term if acc is None else acc + term
    return acc * (1.0 / 9.0)


# ----------------------------------------------------------------------------
# Kernel
# ----------------------------------------------------------------------------
def _make_kernel(W):
    def kernel(x_ref, m3_ref, m5_ref,
               wx_ref, bx_ref, wp_ref, bp_ref,
               w32_ref, b32_ref, w33_ref, b33_ref, w52_ref, b52_ref,
               out_ref, col3_ref, col3b_ref, col5_ref):
        f32, bf16 = jnp.float32, jnp.bfloat16
        x = x_ref[0]                                  # (Cp, N) f32, channel-major
        x_bf = x.astype(bf16)

        # Fused 1x1 convs on x: rows [0:16) branch1x1, [16:32) 3x3 stem,
        # [32:48) 5x5 stem. fp32 accumulation, fp32 bias.
        heads = jnp.dot(wx_ref[...], x_bf, preferred_element_type=f32) + bx_ref[...]
        out_ref[0, 0:16] = heads[0:16]                # branch1x1 -> channels 0..15
        t3_bf = heads[16:32].astype(bf16)
        t5_bf = heads[32:48].astype(bf16)

        # branch_pool: avg_pool2d(3,1,1) + 1x1 conv -> channels 64..87.
        pooled_bf = _avg_pool3x3(x, m3_ref, W).astype(bf16)
        out_ref[0, 64:88] = (jnp.dot(wp_ref[...], pooled_bf,
                                     preferred_element_type=f32) + bp_ref[...])

        # 3x3 branch: 3x3 (16->24) then 3x3 (24->24) -> channels 16..39.
        _im2col(t3_bf, m3_ref, col3_ref, 3, W)
        t3b = (jnp.dot(w32_ref[...], col3_ref[...],
                       preferred_element_type=f32) + b32_ref[...])
        _im2col(t3b.astype(bf16), m3_ref, col3b_ref, 3, W)
        out_ref[0, 16:40] = (jnp.dot(w33_ref[...], col3b_ref[...],
                                     preferred_element_type=f32) + b33_ref[...])

        # 5x5 branch: 5x5 (16->24) -> channels 40..63.
        _im2col(t5_bf, m5_ref, col5_ref, 5, W)
        out_ref[0, 40:64] = (jnp.dot(w52_ref[...], col5_ref[...],
                                     preferred_element_type=f32) + b52_ref[...])
    return kernel


# ----------------------------------------------------------------------------
# Parameters
# ----------------------------------------------------------------------------
def init_params(key, in_channels):
    """Deterministic synthetic parameters (same shapes as the nn.Module)."""
    ks = jax.random.split(key, 14)
    def rnd(k, shape, scale):
        return jax.random.normal(k, shape, jnp.float32) * scale
    return {
        "w1":  rnd(ks[0],  (in_channels, 16), 0.10), "b1":  rnd(ks[1],  (1, 16), 0.05),
        "w51": rnd(ks[2],  (in_channels, 16), 0.10), "b51": rnd(ks[3],  (1, 16), 0.05),
        "w52": rnd(ks[4],  (25, 16, 24),      0.05), "b52": rnd(ks[5],  (1, 24), 0.05),
        "w31": rnd(ks[6],  (in_channels, 16), 0.10), "b31": rnd(ks[7],  (1, 16), 0.05),
        "w32": rnd(ks[8],  (9, 16, 24),       0.08), "b32": rnd(ks[9],  (1, 24), 0.05),
        "w33": rnd(ks[10], (9, 24, 24),       0.08), "b33": rnd(ks[11], (1, 24), 0.05),
        "wp":  rnd(ks[12], (in_channels, 24), 0.10), "bp":  rnd(ks[13], (1, 24), 0.05),
    }


def _fuse_params(p, cin, cp):
    """Pre-transposed (Cout, K) bf16 weights + (Cout, 1) f32 biases."""
    f32, bf16 = jnp.float32, jnp.bfloat16

    def pad_t(w):                                  # (cin, cout) -> (cout, cp)
        wt = w.T
        if cp != cin:
            wt = jnp.concatenate([wt, jnp.zeros((wt.shape[0], cp - cin), f32)],
                                 axis=1)
        return wt

    wx = jnp.concatenate([pad_t(p["w1"]), pad_t(p["w31"]), pad_t(p["w51"])],
                         axis=0).astype(bf16)                       # (48, cp)
    bx = jnp.concatenate([p["b1"], p["b31"], p["b51"]], axis=1).T    # (48, 1)
    wp = pad_t(p["wp"]).astype(bf16)                                 # (24, cp)
    w32 = p["w32"].reshape(144, 24).T.astype(bf16)                   # (24, 144)
    w33 = p["w33"].reshape(216, 24).T.astype(bf16)                   # (24, 216)
    w52 = p["w52"].reshape(400, 24).T.astype(bf16)                   # (24, 400)
    return (wx, bx, wp, p["bp"].T, w32, p["b32"].T,
            w33, p["b33"].T, w52, p["b52"].T)


# ----------------------------------------------------------------------------
# Wrapper
# ----------------------------------------------------------------------------
def inception_a_forward(x_nchw, params, block_batch=None):
    B, Cin, H, W = x_nchw.shape
    HW = H * W
    Cp = ((Cin + 7) // 8) * 8                      # pad channels to a sublane tile

    if block_batch is None:
        block_batch = 1
        for bt in (8, 4, 2):                       # amortise grid overhead but keep
            if B % bt == 0 and B // bt >= 2:       # grid >= 2 (both v7x TCs busy)
                block_batch = bt
                break
    Bt = block_batch
    nb = B // Bt
    N = Bt * HW

    # NCHW input: only free reshapes (+ zero channel pad); channel-major lanes.
    x = x_nchw.astype(jnp.float32).reshape(B, Cin, HW)
    if Cp != Cin:
        x = jnp.concatenate([x, jnp.zeros((B, Cp - Cin, HW), jnp.float32)], axis=1)
    x = x.reshape(nb, Bt, Cp, HW).transpose(0, 2, 1, 3).reshape(nb, Cp, N)

    m3 = _tap_masks(3, H, W, Bt)                   # (9,  N) bf16
    m5 = _tap_masks(5, H, W, Bt)                   # (25, N) bf16
    consts = (m3, m5) + _fuse_params(params, Cin, Cp)

    def const_spec(a):
        nd = a.ndim
        return pl.BlockSpec(a.shape, lambda i, nd=nd: (0,) * nd)

    out = pl.pallas_call(
        _make_kernel(W),
        out_shape=jax.ShapeDtypeStruct((nb, 88, N), jnp.float32),
        grid_spec=pltpu.PrefetchScalarGridSpec(
            num_scalar_prefetch=0,
            grid=(nb,),
            in_specs=[pl.BlockSpec((1, Cp, N), lambda i: (i, 0, 0))]
                     + [const_spec(a) for a in consts],
            out_specs=pl.BlockSpec((1, 88, N), lambda i: (i, 0, 0)),
            scratch_shapes=[
                pltpu.VMEM((144, N), jnp.bfloat16),    # im2col3(t3)
                pltpu.VMEM((216, N), jnp.bfloat16),    # im2col3(t3b)
                pltpu.VMEM((400, N), jnp.bfloat16),    # im2col5(t5)
            ]),
        compiler_params=pltpu.CompilerParams(
            dimension_semantics=("parallel",),
            vmem_limit_bytes=32 * 1024 * 1024),
    )(x, *consts)

    # (nb, 88, Bt*HW) -> (B, 88, H, W): channel rows are already NCHW order.
    out = out.reshape(nb, 88, Bt, HW).transpose(0, 2, 1, 3)
    return out.reshape(B, 88, H, W)


# ----------------------------------------------------------------------------
# Pure-JAX reference (matches PyTorch semantics) for verification
# ----------------------------------------------------------------------------
def reference_forward(x, p, cin):
    def conv(inp, w, b, k, pad):
        ci, co = w.shape[-2], w.shape[-1]
        wh = w.reshape(k, k, ci, co)   # HWIO
        y = jax.lax.conv_general_dilated(
            inp, wh, (1, 1), [(pad, pad), (pad, pad)],
            dimension_numbers=("NCHW", "HWIO", "NCHW"))
        return y + b.reshape(1, co, 1, 1)

    b1x1 = conv(x, p["w1"].reshape(1, cin, 16), p["b1"], 1, 0)
    b3x3 = conv(conv(conv(x, p["w31"].reshape(1, cin, 16), p["b31"], 1, 0),
                     p["w32"], p["b32"], 3, 1),
                p["w33"], p["b33"], 3, 1)
    b5x5 = conv(conv(x, p["w51"].reshape(1, cin, 16), p["b51"], 1, 0),
                p["w52"], p["b52"], 5, 2)
    pooled = jax.lax.reduce_window(
        x, 0.0, jax.lax.add, (1, 1, 3, 3), (1, 1, 1, 1),
        [(0, 0), (0, 0), (1, 1), (1, 1)]) / 9.0      # count_include_pad=True
    bpool = conv(pooled, p["wp"].reshape(1, cin, 24), p["bp"], 1, 0)
    return jnp.concatenate([b1x1, b3x3, b5x5, bpool], axis=1)


if __name__ == "__main__":
    key = jax.random.PRNGKey(0)
    kx, kp = jax.random.split(key)
    B, Cin, H, W = 2, 4, 16, 16
    x = jax.random.normal(kx, (B, Cin, H, W), jnp.float32)
    params = init_params(kp, Cin)

    fwd = jax.jit(inception_a_forward)
    out = jax.block_until_ready(fwd(x, params))
    assert out.shape == (B, 88, H, W)

    ref = reference_forward(x, params, Cin)
    # bf16 matmul inputs / fp32 accumulation -> tolerance 2e-2 (same as v1).
    np.testing.assert_allclose(np.asarray(out), np.asarray(ref), rtol=2e-2, atol=2e-2)
    print("KERNEL_OK")
</pallas_src>

<mosaic_0001>
module attributes {stable_mosaic.version = 11 : i64} {
  func.func @kernel(%arg0: i32, %arg1: memref<1x8x256xf32, #tpu.memory_space<vmem>>, %arg2: memref<9x256xbf16, #tpu.memory_space<vmem>>, %arg3: memref<25x256xbf16, #tpu.memory_space<vmem>>, %arg4: memref<48x8xbf16, #tpu.memory_space<vmem>>, %arg5: memref<48x1xf32, #tpu.memory_space<vmem>>, %arg6: memref<24x8xbf16, #tpu.memory_space<vmem>>, %arg7: memref<24x1xf32, #tpu.memory_space<vmem>>, %arg8: memref<24x144xbf16, #tpu.memory_space<vmem>>, %arg9: memref<24x1xf32, #tpu.memory_space<vmem>>, %arg10: memref<24x216xbf16, #tpu.memory_space<vmem>>, %arg11: memref<24x1xf32, #tpu.memory_space<vmem>>, %arg12: memref<24x400xbf16, #tpu.memory_space<vmem>>, %arg13: memref<24x1xf32, #tpu.memory_space<vmem>>, %arg14: memref<1x88x256xf32, #tpu.memory_space<vmem>>, %arg15: memref<144x256xbf16, #tpu.memory_space<vmem>>, %arg16: memref<216x256xbf16, #tpu.memory_space<vmem>>, %arg17: memref<400x256xbf16, #tpu.memory_space<vmem>>) attributes {dimension_semantics = [#tpu.dimension_semantics<parallel>], iteration_bounds = array<i64: 2>, scalar_prefetch = 0 : i64, scratch_operands = 3 : i64, tpu.core_type = #tpu.core_type<tc>, window_params = [{transform_indices = @transform_0, window_bounds = array<i64: 1, 8, 256>}, {pipeline_mode = #tpu.pipeline_mode<synchronous>, transform_indices = @transform_1, window_bounds = array<i64: 9, 256>}, {pipeline_mode = #tpu.pipeline_mode<synchronous>, transform_indices = @transform_2, window_bounds = array<i64: 25, 256>}, {pipeline_mode = #tpu.pipeline_mode<synchronous>, transform_indices = @transform_3, window_bounds = array<i64: 48, 8>}, {pipeline_mode = #tpu.pipeline_mode<synchronous>, transform_indices = @transform_4, window_bounds = array<i64: 48, 1>}, {pipeline_mode = #tpu.pipeline_mode<synchronous>, transform_indices = @transform_5, window_bounds = array<i64: 24, 8>}, {pipeline_mode = #tpu.pipeline_mode<synchronous>, transform_indices = @transform_6, window_bounds = array<i64: 24, 1>}, {pipeline_mode = #tpu.pipeline_mode<synchronous>, transform_indices = @transform_7, window_bounds = array<i64: 24, 144>}, {pipeline_mode = #tpu.pipeline_mode<synchronous>, transform_indices = @transform_8, window_bounds = array<i64: 24, 1>}, {pipeline_mode = #tpu.pipeline_mode<synchronous>, transform_indices = @transform_9, window_bounds = array<i64: 24, 216>}, {pipeline_mode = #tpu.pipeline_mode<synchronous>, transform_indices = @transform_10, window_bounds = array<i64: 24, 1>}, {pipeline_mode = #tpu.pipeline_mode<synchronous>, transform_indices = @transform_11, window_bounds = array<i64: 24, 400>}, {pipeline_mode = #tpu.pipeline_mode<synchronous>, transform_indices = @transform_12, window_bounds = array<i64: 24, 1>}, {transform_indices = @transform_13, window_bounds = array<i64: 1, 88, 256>}]} {
    %c0 = arith.constant 0 : index
    %c0_0 = arith.constant 0 : index
    %c0_1 = arith.constant 0 : index
    %0 = vector.load %arg1[%c0, %c0_0, %c0_1] : memref<1x8x256xf32, #tpu.memory_space<vmem>>, vector<1x8x256xf32>
    %1 = vector.shape_cast %0 : vector<1x8x256xf32> to vector<8x256xf32>
    %2 = arith.truncf %1 : vector<8x256xf32> to vector<8x256xbf16>
    %c0_2 = arith.constant 0 : index
    %c0_3 = arith.constant 0 : index
    %3 = vector.load %arg4[%c0_2, %c0_3] : memref<48x8xbf16, #tpu.memory_space<vmem>>, vector<48x8xbf16>
    %cst = arith.constant dense<0.000000e+00> : vector<48x256xf32>
    %4 = tpu.matmul %3, %2, %cst {dimension_numbers = #tpu.dot_dimension_numbers<[1], [0], [0], [1], [0, 0, 1, 1], [], []>} : vector<48x8xbf16>, vector<8x256xbf16>, vector<48x256xf32> -> vector<48x256xf32>
    %c0_4 = arith.constant 0 : index
    %c0_5 = arith.constant 0 : index
    %5 = vector.load %arg5[%c0_4, %c0_5] : memref<48x1xf32, #tpu.memory_space<vmem>>, vector<48x1xf32>
    %6 = vector.broadcast %5 : vector<48x1xf32> to vector<48x256xf32>
    %7 = arith.addf %4, %6 : vector<48x256xf32>
    %8 = vector.extract_strided_slice %7 {offsets = [0, 0], sizes = [16, 256], strides = [1, 1]} : vector<48x256xf32> to vector<16x256xf32>
    %c0_6 = arith.constant 0 : index
    %c0_7 = arith.constant 0 : index
    %c0_8 = arith.constant 0 : index
    %9 = vector.load %arg14[%c0_6, %c0_7, %c0_8] : memref<1x88x256xf32, #tpu.memory_space<vmem>>, vector<1x16x256xf32>
    %10 = vector.shape_cast %9 : vector<1x16x256xf32> to vector<16x256xf32>
    %11 = vector.shape_cast %8 : vector<16x256xf32> to vector<1x16x256xf32>
    tpu.vector_store %arg14[%c0_6, %c0_7, %c0_8], %11 {strides = array<i32>} : memref<1x88x256xf32, #tpu.memory_space<vmem>>, vector<1x16x256xf32>,
    %12 = vector.extract_strided_slice %7 {offsets = [16, 0], sizes = [16, 256], strides = [1, 1]} : vector<48x256xf32> to vector<16x256xf32>
    %13 = arith.truncf %12 : vector<16x256xf32> to vector<16x256xbf16>
    %14 = vector.extract_strided_slice %7 {offsets = [32, 0], sizes = [16, 256], strides = [1, 1]} : vector<48x256xf32> to vector<16x256xf32>
    %15 = arith.truncf %14 : vector<16x256xf32> to vector<16x256xbf16>
    %cst_9 = arith.constant 0.000000e+00 : f32
    %16 = vector.broadcast %cst_9 : f32 to vector<8x17xf32>
    %17 = tpu.concatenate %16, %1, %16 in 1 : vector<8x17xf32>, vector<8x256xf32>, vector<8x17xf32> -> vector<8x290xf32>
    %18 = vector.extract_strided_slice %17 {offsets = [0, 0], sizes = [8, 256], strides = [1, 1]} : vector<8x290xf32> to vector<8x256xf32>
    %c0_10 = arith.constant 0 : index
    %c0_11 = arith.constant 0 : index
    %19 = vector.load %arg2[%c0_10, %c0_11] : memref<9x256xbf16, #tpu.memory_space<vmem>>, vector<1x256xbf16>
    %20 = arith.extf %19 : vector<1x256xbf16> to vector<1x256xf32>
    %21 = vector.broadcast %20 : vector<1x256xf32> to vector<8x256xf32>
    %22 = arith.mulf %18, %21 : vector<8x256xf32>
    %23 = vector.extract_strided_slice %17 {offsets = [0, 1], sizes = [8, 256], strides = [1, 1]} : vector<8x290xf32> to vector<8x256xf32>
    %c1 = arith.constant 1 : index
    %c0_12 = arith.constant 0 : index
    %24 = vector.load %arg2[%c1, %c0_12] : memref<9x256xbf16, #tpu.memory_space<vmem>>, vector<1x256xbf16>
    %25 = arith.extf %24 : vector<1x256xbf16> to vector<1x256xf32>
    %26 = vector.broadcast %25 : vector<1x256xf32> to vector<8x256xf32>
    %27 = arith.mulf %23, %26 : vector<8x256xf32>
    %28 = arith.addf %22, %27 : vector<8x256xf32>
    %29 = vector.extract_strided_slice %17 {offsets = [0, 2], sizes = [8, 256], strides = [1, 1]} : vector<8x290xf32> to vector<8x256xf32>
    %c2 = arith.constant 2 : index
    %c0_13 = arith.constant 0 : index
    %30 = vector.load %arg2[%c2, %c0_13] : memref<9x256xbf16, #tpu.memory_space<vmem>>, vector<1x256xbf16>
    %31 = arith.extf %30 : vector<1x256xbf16> to vector<1x256xf32>
    %32 = vector.broadcast %31 : vector<1x256xf32> to vector<8x256xf32>
    %33 = arith.mulf %29, %32 : vector<8x256xf32>
    %34 = arith.addf %28, %33 : vector<8x256xf32>
    %35 = vector.extract_strided_slice %17 {offsets = [0, 16], sizes = [8, 256], strides = [1, 1]} : vector<8x290xf32> to vector<8x256xf32>
    %c3 = arith.constant 3 : index
    %c0_14 = arith.constant 0 : index
    %36 = vector.load %arg2[%c3, %c0_14] : memref<9x256xbf16, #tpu.memory_space<vmem>>, vector<1x256xbf16>
    %37 = arith.extf %36 : vector<1x256xbf16> to vector<1x256xf32>
    %38 = vector.broadcast %37 : vector<1x256xf32> to vector<8x256xf32>
    %39 = arith.mulf %35, %38 : vector<8x256xf32>
    %40 = arith.addf %34, %39 : vector<8x256xf32>
    %41 = vector.extract_strided_slice %17 {offsets = [0, 17], sizes = [8, 256], strides = [1, 1]} : vector<8x290xf32> to vector<8x256xf32>
    %c4 = arith.constant 4 : index
    %c0_15 = arith.constant 0 : index
    %42 = vector.load %arg2[%c4, %c0_15] : memref<9x256xbf16, #tpu.memory_space<vmem>>, vector<1x256xbf16>
    %43 = arith.extf %42 : vector<1x256xbf16> to vector<1x256xf32>
    %44 = vector.broadcast %43 : vector<1x256xf32> to vector<8x256xf32>
    %45 = arith.mulf %41, %44 : vector<8x256xf32>
    %46 = arith.addf %40, %45 : vector<8x256xf32>
    %47 = vector.extract_strided_slice %17 {offsets = [0, 18], sizes = [8, 256], strides = [1, 1]} : vector<8x290xf32> to vector<8x256xf32>
    %c5 = arith.constant 5 : index
    %c0_16 = arith.constant 0 : index
    %48 = vector.load %arg2[%c5, %c0_16] : memref<9x256xbf16, #tpu.memory_space<vmem>>, vector<1x256xbf16>
    %49 = arith.extf %48 : vector<1x256xbf16> to vector<1x256xf32>
    %50 = vector.broadcast %49 : vector<1x256xf32> to vector<8x256xf32>
    %51 = arith.mulf %47, %50 : vector<8x256xf32>
    %52 = arith.addf %46, %51 : vector<8x256xf32>
    %53 = vector.extract_strided_slice %17 {offsets = [0, 32], sizes = [8, 256], strides = [1, 1]} : vector<8x290xf32> to vector<8x256xf32>
    %c6 = arith.constant 6 : index
    %c0_17 = arith.constant 0 : index
    %54 = vector.load %arg2[%c6, %c0_17] : memref<9x256xbf16, #tpu.memory_space<vmem>>, vector<1x256xbf16>
    %55 = arith.extf %54 : vector<1x256xbf16> to vector<1x256xf32>
    %56 = vector.broadcast %55 : vector<1x256xf32> to vector<8x256xf32>
    %57 = arith.mulf %53, %56 : vector<8x256xf32>
    %58 = arith.addf %52, %57 : vector<8x256xf32>
    %59 = vector.extract_strided_slice %17 {offsets = [0, 33], sizes = [8, 256], strides = [1, 1]} : vector<8x290xf32> to vector<8x256xf32>
    %c7 = arith.constant 7 : index
    %c0_18 = arith.constant 0 : index
    %60 = vector.load %arg2[%c7, %c0_18] : memref<9x256xbf16, #tpu.memory_space<vmem>>, vector<1x256xbf16>
    %61 = arith.extf %60 : vector<1x256xbf16> to vector<1x256xf32>
    %62 = vector.broadcast %61 : vector<1x256xf32> to vector<8x256xf32>
    %63 = arith.mulf %59, %62 : vector<8x256xf32>
    %64 = arith.addf %58, %63 : vector<8x256xf32>
    %65 = vector.extract_strided_slice %17 {offsets = [0, 34], sizes = [8, 256], strides = [1, 1]} : vector<8x290xf32> to vector<8x256xf32>
    %c8 = arith.constant 8 : index
    %c0_19 = arith.constant 0 : index
    %66 = vector.load %arg2[%c8, %c0_19] : memref<9x256xbf16, #tpu.memory_space<vmem>>, vector<1x256xbf16>
    %67 = arith.extf %66 : vector<1x256xbf16> to vector<1x256xf32>
    %68 = vector.broadcast %67 : vector<1x256xf32> to vector<8x256xf32>
    %69 = arith.mulf %65, %68 : vector<8x256xf32>
    %70 = arith.addf %64, %69 : vector<8x256xf32>
    %cst_20 = arith.constant 0.111111112 : f32
    %71 = vector.broadcast %cst_20 : f32 to vector<8x256xf32>
    %72 = arith.mulf %70, %71 : vector<8x256xf32>
    %73 = arith.truncf %72 : vector<8x256xf32> to vector<8x256xbf16>
    %c0_21 = arith.constant 0 : index
    %c0_22 = arith.constant 0 : index
    %74 = vector.load %arg6[%c0_21, %c0_22] : memref<24x8xbf16, #tpu.memory_space<vmem>>, vector<24x8xbf16>
    %cst_23 = arith.constant dense<0.000000e+00> : vector<24x256xf32>
    %75 = tpu.matmul %74, %73, %cst_23 {dimension_numbers = #tpu.dot_dimension_numbers<[1], [0], [0], [1], [0, 0, 1, 1], [], []>} : vector<24x8xbf16>, vector<8x256xbf16>, vector<24x256xf32> -> vector<24x256xf32>
    %c0_24 = arith.constant 0 : index
    %c0_25 = arith.constant 0 : index
    %76 = vector.load %arg7[%c0_24, %c0_25] : memref<24x1xf32, #tpu.memory_space<vmem>>, vector<24x1xf32>
    %77 = vector.broadcast %76 : vector<24x1xf32> to vector<24x256xf32>
    %78 = arith.addf %75, %77 : vector<24x256xf32>
    %c0_26 = arith.constant 0 : index
    %c64 = arith.constant 64 : index
    %c0_27 = arith.constant 0 : index
    %79 = vector.load %arg14[%c0_26, %c64, %c0_27] : memref<1x88x256xf32, #tpu.memory_space<vmem>>, vector<1x24x256xf32>
    %80 = vector.shape_cast %79 : vector<1x24x256xf32> to vector<24x256xf32>
    %81 = vector.shape_cast %78 : vector<24x256xf32> to vector<1x24x256xf32>
    tpu.vector_store %arg14[%c0_26, %c64, %c0_27], %81 {strides = array<i32>} : memref<1x88x256xf32, #tpu.memory_space<vmem>>, vector<1x24x256xf32>,
    %cst_28 = arith.constant 0.000000e+00 : bf16
    %82 = vector.broadcast %cst_28 : bf16 to vector<16x17xbf16>
    %83 = tpu.concatenate %82, %13, %82 in 1 : vector<16x17xbf16>, vector<16x256xbf16>, vector<16x17xbf16> -> vector<16x290xbf16>
    %84 = vector.extract_strided_slice %83 {offsets = [0, 0], sizes = [16, 256], strides = [1, 1]} : vector<16x290xbf16> to vector<16x256xbf16>
    %c0_29 = arith.constant 0 : index
    %c0_30 = arith.constant 0 : index
    %85 = vector.load %arg2[%c0_29, %c0_30] : memref<9x256xbf16, #tpu.memory_space<vmem>>, vector<1x256xbf16>
    %86 = vector.broadcast %85 : vector<1x256xbf16> to vector<16x256xbf16>
    %87 = arith.mulf %84, %86 : vector<16x256xbf16>
    %c0_31 = arith.constant 0 : index
    %c0_32 = arith.constant 0 : index
    %88 = vector.load %arg15[%c0_31, %c0_32] : memref<144x256xbf16, #tpu.memory_space<vmem>>, vector<16x256xbf16>
    tpu.vector_store %arg15[%c0_31, %c0_32], %87 {strides = array<i32>} : memref<144x256xbf16, #tpu.memory_space<vmem>>, vector<16x256xbf16>,
    %89 = vector.extract_strided_slice %83 {offsets = [0, 1], sizes = [16, 256], strides = [1, 1]} : vector<16x290xbf16> to vector<16x256xbf16>
    %c1_33 = arith.constant 1 : index
    %c0_34 = arith.constant 0 : index
    %90 = vector.load %arg2[%c1_33, %c0_34] : memref<9x256xbf16, #tpu.memory_space<vmem>>, vector<1x256xbf16>
    %91 = vector.broadcast %90 : vector<1x256xbf16> to vector<16x256xbf16>
    %92 = arith.mulf %89, %91 : vector<16x256xbf16>
    %c16 = arith.constant 16 : index
    %c0_35 = arith.constant 0 : index
    %93 = vector.load %arg15[%c16, %c0_35] : memref<144x256xbf16, #tpu.memory_space<vmem>>, vector<16x256xbf16>
    tpu.vector_store %arg15[%c16, %c0_35], %92 {strides = array<i32>} : memref<144x256xbf16, #tpu.memory_space<vmem>>, vector<16x256xbf16>,
    %94 = vector.extract_strided_slice %83 {offsets = [0, 2], sizes = [16, 256], strides = [1, 1]} : vector<16x290xbf16> to vector<16x256xbf16>
    %c2_36 = arith.constant 2 : index
    %c0_37 = arith.constant 0 : index
    %95 = vector.load %arg2[%c2_36, %c0_37] : memref<9x256xbf16, #tpu.memory_space<vmem>>, vector<1x256xbf16>
    %96 = vector.broadcast %95 : vector<1x256xbf16> to vector<16x256xbf16>
    %97 = arith.mulf %94, %96 : vector<16x256xbf16>
    %c32 = arith.constant 32 : index
    %c0_38 = arith.constant 0 : index
    %98 = vector.load %arg15[%c32, %c0_38] : memref<144x256xbf16, #tpu.memory_space<vmem>>, vector<16x256xbf16>
    tpu.vector_store %arg15[%c32, %c0_38], %97 {strides = array<i32>} : memref<144x256xbf16, #tpu.memory_space<vmem>>, vector<16x256xbf16>,
    %99 = vector.extract_strided_slice %83 {offsets = [0, 16], sizes = [16, 256], strides = [1, 1]} : vector<16x290xbf16> to vector<16x256xbf16>
    %c3_39 = arith.constant 3 : index
    %c0_40 = arith.constant 0 : index
    %100 = vector.load %arg2[%c3_39, %c0_40] : memref<9x256xbf16, #tpu.memory_space<vmem>>, vector<1x256xbf16>
    %101 = vector.broadcast %100 : vector<1x256xbf16> to vector<16x256xbf16>
    %102 = arith.mulf %99, %101 : vector<16x256xbf16>
    %c48 = arith.constant 48 : index
    %c0_41 = arith.constant 0 : index
    %103 = vector.load %arg15[%c48, %c0_41] : memref<144x256xbf16, #tpu.memory_space<vmem>>, vector<16x256xbf16>
    tpu.vector_store %arg15[%c48, %c0_41], %102 {strides = array<i32>} : memref<144x256xbf16, #tpu.memory_space<vmem>>, vector<16x256xbf16>,
    %104 = vector.extract_strided_slice %83 {offsets = [0, 17], sizes = [16, 256], strides = [1, 1]} : vector<16x290xbf16> to vector<16x256xbf16>
    %c4_42 = arith.constant 4 : index
    %c0_43 = arith.constant 0 : index
    %105 = vector.load %arg2[%c4_42, %c0_43] : memref<9x256xbf16, #tpu.memory_space<vmem>>, vector<1x256xbf16>
    %106 = vector.broadcast %105 : vector<1x256xbf16> to vector<16x256xbf16>
    %107 = arith.mulf %104, %106 : vector<16x256xbf16>
    %c64_44 = arith.constant 64 : index
    %c0_45 = arith.constant 0 : index
    %108 = vector.load %arg15[%c64_44, %c0_45] : memref<144x256xbf16, #tpu.memory_space<vmem>>, vector<16x256xbf16>
    tpu.vector_store %arg15[%c64_44, %c0_45], %107 {strides = array<i32>} : memref<144x256xbf16, #tpu.memory_space<vmem>>, vector<16x256xbf16>,
    %109 = vector.extract_strided_slice %83 {offsets = [0, 18], sizes = [16, 256], strides = [1, 1]} : vector<16x290xbf16> to vector<16x256xbf16>
    %c5_46 = arith.constant 5 : index
    %c0_47 = arith.constant 0 : index
    %110 = vector.load %arg2[%c5_46, %c0_47] : memref<9x256xbf16, #tpu.memory_space<vmem>>, vector<1x256xbf16>
    %111 = vector.broadcast %110 : vector<1x256xbf16> to vector<16x256xbf16>
    %112 = arith.mulf %109, %111 : vector<16x256xbf16>
    %c80 = arith.constant 80 : index
    %c0_48 = arith.constant 0 : index
    %113 = vector.load %arg15[%c80, %c0_48] : memref<144x256xbf16, #tpu.memory_space<vmem>>, vector<16x256xbf16>
    tpu.vector_store %arg15[%c80, %c0_48], %112 {strides = array<i32>} : memref<144x256xbf16, #tpu.memory_space<vmem>>, vector<16x256xbf16>,
    %114 = vector.extract_strided_slice %83 {offsets = [0, 32], sizes = [16, 256], strides = [1, 1]} : vector<16x290xbf16> to vector<16x256xbf16>
    %c6_49 = arith.constant 6 : index
    %c0_50 = arith.constant 0 : index
    %115 = vector.load %arg2[%c6_49, %c0_50] : memref<9x256xbf16, #tpu.memory_space<vmem>>, vector<1x256xbf16>
    %116 = vector.broadcast %115 : vector<1x256xbf16> to vector<16x256xbf16>
    %117 = arith.mulf %114, %116 : vector<16x256xbf16>
    %c96 = arith.constant 96 : index
    %c0_51 = arith.constant 0 : index
    %118 = vector.load %arg15[%c96, %c0_51] : memref<144x256xbf16, #tpu.memory_space<vmem>>, vector<16x256xbf16>
    tpu.vector_store %arg15[%c96, %c0_51], %117 {strides = array<i32>} : memref<144x256xbf16, #tpu.memory_space<vmem>>, vector<16x256xbf16>,
    %119 = vector.extract_strided_slice %83 {offsets = [0, 33], sizes = [16, 256], strides = [1, 1]} : vector<16x290xbf16> to vector<16x256xbf16>
    %c7_52 = arith.constant 7 : index
    %c0_53 = arith.constant 0 : index
    %120 = vector.load %arg2[%c7_52, %c0_53] : memref<9x256xbf16, #tpu.memory_space<vmem>>, vector<1x256xbf16>
    %121 = vector.broadcast %120 : vector<1x256xbf16> to vector<16x256xbf16>
    %122 = arith.mulf %119, %121 : vector<16x256xbf16>
    %c112 = arith.constant 112 : index
    %c0_54 = arith.constant 0 : index
    %123 = vector.load %arg15[%c112, %c0_54] : memref<144x256xbf16, #tpu.memory_space<vmem>>, vector<16x256xbf16>
    tpu.vector_store %arg15[%c112, %c0_54], %122 {strides = array<i32>} : memref<144x256xbf16, #tpu.memory_space<vmem>>, vector<16x256xbf16>,
    %124 = vector.extract_strided_slice %83 {offsets = [0, 34], sizes = [16, 256], strides = [1, 1]} : vector<16x290xbf16> to vector<16x256xbf16>
    %c8_55 = arith.constant 8 : index
    %c0_56 = arith.constant 0 : index
    %125 = vector.load %arg2[%c8_55, %c0_56] : memref<9x256xbf16, #tpu.memory_space<vmem>>, vector<1x256xbf16>
    %126 = vector.broadcast %125 : vector<1x256xbf16> to vector<16x256xbf16>
    %127 = arith.mulf %124, %126 : vector<16x256xbf16>
    %c128 = arith.constant 128 : index
    %c0_57 = arith.constant 0 : index
    %128 = vector.load %arg15[%c128, %c0_57] : memref<144x256xbf16, #tpu.memory_space<vmem>>, vector<16x256xbf16>
    tpu.vector_store %arg15[%c128, %c0_57], %127 {strides = array<i32>} : memref<144x256xbf16, #tpu.memory_space<vmem>>, vector<16x256xbf16>,
    %c0_58 = arith.constant 0 : index
    %c0_59 = arith.constant 0 : index
    %129 = vector.load %arg8[%c0_58, %c0_59] : memref<24x144xbf16, #tpu.memory_space<vmem>>, vector<24x144xbf16>
    %c0_60 = arith.constant 0 : index
    %c0_61 = arith.constant 0 : index
    %130 = vector.load %arg15[%c0_60, %c0_61] : memref<144x256xbf16, #tpu.memory_space<vmem>>, vector<144x256xbf16>
    %cst_62 = arith.constant dense<0.000000e+00> : vector<24x256xf32>
    %131 = tpu.matmul %129, %130, %cst_62 {dimension_numbers = #tpu.dot_dimension_numbers<[1], [0], [0], [1], [0, 0, 1, 1], [], []>} : vector<24x144xbf16>, vector<144x256xbf16>, vector<24x256xf32> -> vector<24x256xf32>
    %c0_63 = arith.constant 0 : index
    %c0_64 = arith.constant 0 : index
    %132 = vector.load %arg9[%c0_63, %c0_64] : memref<24x1xf32, #tpu.memory_space<vmem>>, vector<24x1xf32>
    %133 = vector.broadcast %132 : vector<24x1xf32> to vector<24x256xf32>
    %134 = arith.addf %131, %133 : vector<24x256xf32>
    %135 = arith.truncf %134 : vector<24x256xf32> to vector<24x256xbf16>
    %cst_65 = arith.constant 0.000000e+00 : bf16
    %136 = vector.broadcast %cst_65 : bf16 to vector<24x17xbf16>
    %137 = tpu.concatenate %136, %135, %136 in 1 : vector<24x17xbf16>, vector<24x256xbf16>, vector<24x17xbf16> -> vector<24x290xbf16>
    %138 = vector.extract_strided_slice %137 {offsets = [0, 0], sizes = [24, 256], strides = [1, 1]} : vector<24x290xbf16> to vector<24x256xbf16>
    %c0_66 = arith.constant 0 : index
    %c0_67 = arith.constant 0 : index
    %139 = vector.load %arg2[%c0_66, %c0_67] : memref<9x256xbf16, #tpu.memory_space<vmem>>, vector<1x256xbf16>
    %140 = vector.broadcast %139 : vector<1x256xbf16> to vector<24x256xbf16>
    %141 = arith.mulf %138, %140 : vector<24x256xbf16>
    %c0_68 = arith.constant 0 : index
    %c0_69 = arith.constant 0 : index
    %142 = vector.load %arg16[%c0_68, %c0_69] : memref<216x256xbf16, #tpu.memory_space<vmem>>, vector<24x256xbf16>
    tpu.vector_store %arg16[%c0_68, %c0_69], %141 {strides = array<i32>} : memref<216x256xbf16, #tpu.memory_space<vmem>>, vector<24x256xbf16>,
    %143 = vector.extract_strided_slice %137 {offsets = [0, 1], sizes = [24, 256], strides = [1, 1]} : vector<24x290xbf16> to vector<24x256xbf16>
    %c1_70 = arith.constant 1 : index
    %c0_71 = arith.constant 0 : index
    %144 = vector.load %arg2[%c1_70, %c0_71] : memref<9x256xbf16, #tpu.memory_space<vmem>>, vector<1x256xbf16>
    %145 = vector.broadcast %144 : vector<1x256xbf16> to vector<24x256xbf16>
    %146 = arith.mulf %143, %145 : vector<24x256xbf16>
    %c24 = arith.constant 24 : index
    %c0_72 = arith.constant 0 : index
    %147 = vector.load %arg16[%c24, %c0_72] : memref<216x256xbf16, #tpu.memory_space<vmem>>, vector<24x256xbf16>
    tpu.vector_store %arg16[%c24, %c0_72], %146 {strides = array<i32>} : memref<216x256xbf16, #tpu.memory_space<vmem>>, vector<24x256xbf16>,
    %148 = vector.extract_strided_slice %137 {offsets = [0, 2], sizes = [24, 256], strides = [1, 1]} : vector<24x290xbf16> to vector<24x256xbf16>
    %c2_73 = arith.constant 2 : index
    %c0_74 = arith.constant 0 : index
    %149 = vector.load %arg2[%c2_73, %c0_74] : memref<9x256xbf16, #tpu.memory_space<vmem>>, vector<1x256xbf16>
    %150 = vector.broadcast %149 : vector<1x256xbf16> to vector<24x256xbf16>
    %151 = arith.mulf %148, %150 : vector<24x256xbf16>
    %c48_75 = arith.constant 48 : index
    %c0_76 = arith.constant 0 : index
    %152 = vector.load %arg16[%c48_75, %c0_76] : memref<216x256xbf16, #tpu.memory_space<vmem>>, vector<24x256xbf16>
    tpu.vector_store %arg16[%c48_75, %c0_76], %151 {strides = array<i32>} : memref<216x256xbf16, #tpu.memory_space<vmem>>, vector<24x256xbf16>,
    %153 = vector.extract_strided_slice %137 {offsets = [0, 16], sizes = [24, 256], strides = [1, 1]} : vector<24x290xbf16> to vector<24x256xbf16>
    %c3_77 = arith.constant 3 : index
    %c0_78 = arith.constant 0 : index
    %154 = vector.load %arg2[%c3_77, %c0_78] : memref<9x256xbf16, #tpu.memory_space<vmem>>, vector<1x256xbf16>
    %155 = vector.broadcast %154 : vector<1x256xbf16> to vector<24x256xbf16>
    %156 = arith.mulf %153, %155 : vector<24x256xbf16>
    %c72 = arith.constant 72 : index
    %c0_79 = arith.constant 0 : index
    %157 = vector.load %arg16[%c72, %c0_79] : memref<216x256xbf16, #tpu.memory_space<vmem>>, vector<24x256xbf16>
    tpu.vector_store %arg16[%c72, %c0_79], %156 {strides = array<i32>} : memref<216x256xbf16, #tpu.memory_space<vmem>>, vector<24x256xbf16>,
    %158 = vector.extract_strided_slice %137 {offsets = [0, 17], sizes = [24, 256], strides = [1, 1]} : vector<24x290xbf16> to vector<24x256xbf16>
    %c4_80 = arith.constant 4 : index
    %c0_81 = arith.constant 0 : index
    %159 = vector.load %arg2[%c4_80, %c0_81] : memref<9x256xbf16, #tpu.memory_space<vmem>>, vector<1x256xbf16>
    %160 = vector.broadcast %159 : vector<1x256xbf16> to vector<24x256xbf16>
    %161 = arith.mulf %158, %160 : vector<24x256xbf16>
    %c96_82 = arith.constant 96 : index
    %c0_83 = arith.constant 0 : index
    %162 = vector.load %arg16[%c96_82, %c0_83] : memref<216x256xbf16, #tpu.memory_space<vmem>>, vector<24x256xbf16>
    tpu.vector_store %arg16[%c96_82, %c0_83], %161 {strides = array<i32>} : memref<216x256xbf16, #tpu.memory_space<vmem>>, vector<24x256xbf16>,
    %163 = vector.extract_strided_slice %137 {offsets = [0, 18], sizes = [24, 256], strides = [1, 1]} : vector<24x290xbf16> to vector<24x256xbf16>
    %c5_84 = arith.constant 5 : index
    %c0_85 = arith.constant 0 : index
    %164 = vector.load %arg2[%c5_84, %c0_85] : memref<9x256xbf16, #tpu.memory_space<vmem>>, vector<1x256xbf16>
    %165 = vector.broadcast %164 : vector<1x256xbf16> to vector<24x256xbf16>
    %166 = arith.mulf %163, %165 : vector<24x256xbf16>
    %c120 = arith.constant 120 : index
    %c0_86 = arith.constant 0 : index
    %167 = vector.load %arg16[%c120, %c0_86] : memref<216x256xbf16, #tpu.memory_space<vmem>>, vector<24x256xbf16>
    tpu.vector_store %arg16[%c120, %c0_86], %166 {strides = array<i32>} : memref<216x256xbf16, #tpu.memory_space<vmem>>, vector<24x256xbf16>,
    %168 = vector.extract_strided_slice %137 {offsets = [0, 32], sizes = [24, 256], strides = [1, 1]} : vector<24x290xbf16> to vector<24x256xbf16>
    %c6_87 = arith.constant 6 : index
    %c0_88 = arith.constant 0 : index
    %169 = vector.load %arg2[%c6_87, %c0_88] : memref<9x256xbf16, #tpu.memory_space<vmem>>, vector<1x256xbf16>
    %170 = vector.broadcast %169 : vector<1x256xbf16> to vector<24x256xbf16>
    %171 = arith.mulf %168, %170 : vector<24x256xbf16>
    %c144 = arith.constant 144 : index
    %c0_89 = arith.constant 0 : index
    %172 = vector.load %arg16[%c144, %c0_89] : memref<216x256xbf16, #tpu.memory_space<vmem>>, vector<24x256xbf16>
    tpu.vector_store %arg16[%c144, %c0_89], %171 {strides = array<i32>} : memref<216x256xbf16, #tpu.memory_space<vmem>>, vector<24x256xbf16>,
    %173 = vector.extract_strided_slice %137 {offsets = [0, 33], sizes = [24, 256], strides = [1, 1]} : vector<24x290xbf16> to vector<24x256xbf16>
    %c7_90 = arith.constant 7 : index
    %c0_91 = arith.constant 0 : index
    %174 = vector.load %arg2[%c7_90, %c0_91] : memref<9x256xbf16, #tpu.memory_space<vmem>>, vector<1x256xbf16>
    %175 = vector.broadcast %174 : vector<1x256xbf16> to vector<24x256xbf16>
    %176 = arith.mulf %173, %175 : vector<24x256xbf16>
    %c168 = arith.constant 168 : index
    %c0_92 = arith.constant 0 : index
    %177 = vector.load %arg16[%c168, %c0_92] : memref<216x256xbf16, #tpu.memory_space<vmem>>, vector<24x256xbf16>
    tpu.vector_store %arg16[%c168, %c0_92], %176 {strides = array<i32>} : memref<216x256xbf16, #tpu.memory_space<vmem>>, vector<24x256xbf16>,
    %178 = vector.extract_strided_slice %137 {offsets = [0, 34], sizes = [24, 256], strides = [1, 1]} : vector<24x290xbf16> to vector<24x256xbf16>
    %c8_93 = arith.constant 8 : index
    %c0_94 = arith.constant 0 : index
    %179 = vector.load %arg2[%c8_93, %c0_94] : memref<9x256xbf16, #tpu.memory_space<vmem>>, vector<1x256xbf16>
    %180 = vector.broadcast %179 : vector<1x256xbf16> to vector<24x256xbf16>
    %181 = arith.mulf %178, %180 : vector<24x256xbf16>
    %c192 = arith.constant 192 : index
    %c0_95 = arith.constant 0 : index
    %182 = vector.load %arg16[%c192, %c0_95] : memref<216x256xbf16, #tpu.memory_space<vmem>>, vector<24x256xbf16>
    tpu.vector_store %arg16[%c192, %c0_95], %181 {strides = array<i32>} : memref<216x256xbf16, #tpu.memory_space<vmem>>, vector<24x256xbf16>,
    %c0_96 = arith.constant 0 : index
    %c0_97 = arith.constant 0 : index
    %183 = vector.load %arg10[%c0_96, %c0_97] : memref<24x216xbf16, #tpu.memory_space<vmem>>, vector<24x216xbf16>
    %c0_98 = arith.constant 0 : index
    %c0_99 = arith.constant 0 : index
    %184 = vector.load %arg16[%c0_98, %c0_99] : memref<216x256xbf16, #tpu.memory_space<vmem>>, vector<216x256xbf16>
    %cst_100 = arith.constant dense<0.000000e+00> : vector<24x256xf32>
    %185 = tpu.matmul %183, %184, %cst_100 {dimension_numbers = #tpu.dot_dimension_numbers<[1], [0], [0], [1], [0, 0, 1, 1], [], []>} : vector<24x216xbf16>, vector<216x256xbf16>, vector<24x256xf32> -> vector<24x256xf32>
    %c0_101 = arith.constant 0 : index
    %c0_102 = arith.constant 0 : index
    %186 = vector.load %arg11[%c0_101, %c0_102] : memref<24x1xf32, #tpu.memory_space<vmem>>, vector<24x1xf32>
    %187 = vector.broadcast %186 : vector<24x1xf32> to vector<24x256xf32>
    %188 = arith.addf %185, %187 : vector<24x256xf32>
    %c0_103 = arith.constant 0 : index
    %c16_104 = arith.constant 16 : index
    %c0_105 = arith.constant 0 : index
    %189 = vector.load %arg14[%c0_103, %c16_104, %c0_105] : memref<1x88x256xf32, #tpu.memory_space<vmem>>, vector<1x24x256xf32>
    %190 = vector.shape_cast %189 : vector<1x24x256xf32> to vector<24x256xf32>
    %191 = vector.shape_cast %188 : vector<24x256xf32> to vector<1x24x256xf32>
    tpu.vector_store %arg14[%c0_103, %c16_104, %c0_105], %191 {strides = array<i32>} : memref<1x88x256xf32, #tpu.memory_space<vmem>>, vector<1x24x256xf32>,
    %cst_106 = arith.constant 0.000000e+00 : bf16
    %192 = vector.broadcast %cst_106 : bf16 to vector<16x34xbf16>
    %193 = tpu.concatenate %192, %15, %192 in 1 : vector<16x34xbf16>, vector<16x256xbf16>, vector<16x34xbf16> -> vector<16x324xbf16>
    %194 = vector.extract_strided_slice %193 {offsets = [0, 0], sizes = [16, 256], strides = [1, 1]} : vector<16x324xbf16> to vector<16x256xbf16>
    %c0_107 = arith.constant 0 : index
    %c0_108 = arith.constant 0 : index
    %195 = vector.load %arg3[%c0_107, %c0_108] : memref<25x256xbf16, #tpu.memory_space<vmem>>, vector<1x256xbf16>
    %196 = vector.broadcast %195 : vector<1x256xbf16> to vector<16x256xbf16>
    %197 = arith.mulf %194, %196 : vector<16x256xbf16>
    %c0_109 = arith.constant 0 : index
    %c0_110 = arith.constant 0 : index
    %198 = vector.load %arg17[%c0_109, %c0_110] : memref<400x256xbf16, #tpu.memory_space<vmem>>, vector<16x256xbf16>
    tpu.vector_store %arg17[%c0_109, %c0_110], %197 {strides = array<i32>} : memref<400x256xbf16, #tpu.memory_space<vmem>>, vector<16x256xbf16>,
    %199 = vector.extract_strided_slice %193 {offsets = [0, 1], sizes = [16, 256], strides = [1, 1]} : vector<16x324xbf16> to vector<16x256xbf16>
    %c1_111 = arith.constant 1 : index
    %c0_112 = arith.constant 0 : index
    %200 = vector.load %arg3[%c1_111, %c0_112] : memref<25x256xbf16, #tpu.memory_space<vmem>>, vector<1x256xbf16>
    %201 = vector.broadcast %200 : vector<1x256xbf16> to vector<16x256xbf16>
    %202 = arith.mulf %199, %201 : vector<16x256xbf16>
    %c16_113 = arith.constant 16 : index
    %c0_114 = arith.constant 0 : index
    %203 = vector.load %arg17[%c16_113, %c0_114] : memref<400x256xbf16, #tpu.memory_space<vmem>>, vector<16x256xbf16>
    tpu.vector_store %arg17[%c16_113, %c0_114], %202 {strides = array<i32>} : memref<400x256xbf16, #tpu.memory_space<vmem>>, vector<16x256xbf16>,
    %204 = vector.extract_strided_slice %193 {offsets = [0, 2], sizes = [16, 256], strides = [1, 1]} : vector<16x324xbf16> to vector<16x256xbf16>
    %c2_115 = arith.constant 2 : index
    %c0_116 = arith.constant 0 : index
    %205 = vector.load %arg3[%c2_115, %c0_116] : memref<25x256xbf16, #tpu.memory_space<vmem>>, vector<1x256xbf16>
    %206 = vector.broadcast %205 : vector<1x256xbf16> to vector<16x256xbf16>
    %207 = arith.mulf %204, %206 : vector<16x256xbf16>
    %c32_117 = arith.constant 32 : index
    %c0_118 = arith.constant 0 : index
    %208 = vector.load %arg17[%c32_117, %c0_118] : memref<400x256xbf16, #tpu.memory_space<vmem>>, vector<16x256xbf16>
    tpu.vector_store %arg17[%c32_117, %c0_118], %207 {strides = array<i32>} : memref<400x256xbf16, #tpu.memory_space<vmem>>, vector<16x256xbf16>,
    %209 = vector.extract_strided_slice %193 {offsets = [0, 3], sizes = [16, 256], strides = [1, 1]} : vector<16x324xbf16> to vector<16x256xbf16>
    %c3_119 = arith.constant 3 : index
    %c0_120 = arith.constant 0 : index
    %210 = vector.load %arg3[%c3_119, %c0_120] : memref<25x256xbf16, #tpu.memory_space<vmem>>, vector<1x256xbf16>
    %211 = vector.broadcast %210 : vector<1x256xbf16> to vector<16x256xbf16>
    %212 = arith.mulf %209, %211 : vector<16x256xbf16>
    %c48_121 = arith.constant 48 : index
    %c0_122 = arith.constant 0 : index
    %213 = vector.load %arg17[%c48_121, %c0_122] : memref<400x256xbf16, #tpu.memory_space<vmem>>, vector<16x256xbf16>
    tpu.vector_store %arg17[%c48_121, %c0_122], %212 {strides = array<i32>} : memref<400x256xbf16, #tpu.memory_space<vmem>>, vector<16x256xbf16>,
    %214 = vector.extract_strided_slice %193 {offsets = [0, 4], sizes = [16, 256], strides = [1, 1]} : vector<16x324xbf16> to vector<16x256xbf16>
    %c4_123 = arith.constant 4 : index
    %c0_124 = arith.constant 0 : index
    %215 = vector.load %arg3[%c4_123, %c0_124] : memref<25x256xbf16, #tpu.memory_space<vmem>>, vector<1x256xbf16>
    %216 = vector.broadcast %215 : vector<1x256xbf16> to vector<16x256xbf16>
    %217 = arith.mulf %214, %216 : vector<16x256xbf16>
    %c64_125 = arith.constant 64 : index
    %c0_126 = arith.constant 0 : index
    %218 = vector.load %arg17[%c64_125, %c0_126] : memref<400x256xbf16, #tpu.memory_space<vmem>>, vector<16x256xbf16>
    tpu.vector_store %arg17[%c64_125, %c0_126], %217 {strides = array<i32>} : memref<400x256xbf16, #tpu.memory_space<vmem>>, vector<16x256xbf16>,
    %219 = vector.extract_strided_slice %193 {offsets = [0, 16], sizes = [16, 256], strides = [1, 1]} : vector<16x324xbf16> to vector<16x256xbf16>
    %c5_127 = arith.constant 5 : index
    %c0_128 = arith.constant 0 : index
    %220 = vector.load %arg3[%c5_127, %c0_128] : memref<25x256xbf16, #tpu.memory_space<vmem>>, vector<1x256xbf16>
    %221 = vector.broadcast %220 : vector<1x256xbf16> to vector<16x256xbf16>
    %222 = arith.mulf %219, %221 : vector<16x256xbf16>
    %c80_129 = arith.constant 80 : index
    %c0_130 = arith.constant 0 : index
    %223 = vector.load %arg17[%c80_129, %c0_130] : memref<400x256xbf16, #tpu.memory_space<vmem>>, vector<16x256xbf16>
    tpu.vector_store %arg17[%c80_129, %c0_130], %222 {strides = array<i32>} : memref<400x256xbf16, #tpu.memory_space<vmem>>, vector<16x256xbf16>,
    %224 = vector.extract_strided_slice %193 {offsets = [0, 17], sizes = [16, 256], strides = [1, 1]} : vector<16x324xbf16> to vector<16x256xbf16>
    %c6_131 = arith.constant 6 : index
    %c0_132 = arith.constant 0 : index
    %225 = vector.load %arg3[%c6_131, %c0_132] : memref<25x256xbf16, #tpu.memory_space<vmem>>, vector<1x256xbf16>
    %226 = vector.broadcast %225 : vector<1x256xbf16> to vector<16x256xbf16>
    %227 = arith.mulf %224, %226 : vector<16x256xbf16>
    %c96_133 = arith.constant 96 : index
    %c0_134 = arith.constant 0 : index
    %228 = vector.load %arg17[%c96_133, %c0_134] : memref<400x256xbf16, #tpu.memory_space<vmem>>, vector<16x256xbf16>
    tpu.vector_store %arg17[%c96_133, %c0_134], %227 {strides = array<i32>} : memref<400x256xbf16, #tpu.memory_space<vmem>>, vector<16x256xbf16>,
    %229 = vector.extract_strided_slice %193 {offsets = [0, 18], sizes = [16, 256], strides = [1, 1]} : vector<16x324xbf16> to vector<16x256xbf16>
    %c7_135 = arith.constant 7 : index
    %c0_136 = arith.constant 0 : index
    %230 = vector.load %arg3[%c7_135, %c0_136] : memref<25x256xbf16, #tpu.memory_space<vmem>>, vector<1x256xbf16>
    %231 = vector.broadcast %230 : vector<1x256xbf16> to vector<16x256xbf16>
    %232 = arith.mulf %229, %231 : vector<16x256xbf16>
    %c112_137 = arith.constant 112 : index
    %c0_138 = arith.constant 0 : index
    %233 = vector.load %arg17[%c112_137, %c0_138] : memref<400x256xbf16, #tpu.memory_space<vmem>>, vector<16x256xbf16>
    tpu.vector_store %arg17[%c112_137, %c0_138], %232 {strides = array<i32>} : memref<400x256xbf16, #tpu.memory_space<vmem>>, vector<16x256xbf16>,
    %234 = vector.extract_strided_slice %193 {offsets = [0, 19], sizes = [16, 256], strides = [1, 1]} : vector<16x324xbf16> to vector<16x256xbf16>
    %c8_139 = arith.constant 8 : index
    %c0_140 = arith.constant 0 : index
    %235 = vector.load %arg3[%c8_139, %c0_140] : memref<25x256xbf16, #tpu.memory_space<vmem>>, vector<1x256xbf16>
    %236 = vector.broadcast %235 : vector<1x256xbf16> to vector<16x256xbf16>
    %237 = arith.mulf %234, %236 : vector<16x256xbf16>
    %c128_141 = arith.constant 128 : index
    %c0_142 = arith.constant 0 : index
    %238 = vector.load %arg17[%c128_141, %c0_142] : memref<400x256xbf16, #tpu.memory_space<vmem>>, vector<16x256xbf16>
    tpu.vector_store %arg17[%c128_141, %c0_142], %237 {strides = array<i32>} : memref<400x256xbf16, #tpu.memory_space<vmem>>, vector<16x256xbf16>,
    %239 = vector.extract_strided_slice %193 {offsets = [0, 20], sizes = [16, 256], strides = [1, 1]} : vector<16x324xbf16> to vector<16x256xbf16>
    %c9 = arith.constant 9 : index
    %c0_143 = arith.constant 0 : index
    %240 = vector.load %arg3[%c9, %c0_143] : memref<25x256xbf16, #tpu.memory_space<vmem>>, vector<1x256xbf16>
    %241 = vector.broadcast %240 : vector<1x256xbf16> to vector<16x256xbf16>
    %242 = arith.mulf %239, %241 : vector<16x256xbf16>
    %c144_144 = arith.constant 144 : index
    %c0_145 = arith.constant 0 : index
    %243 = vector.load %arg17[%c144_144, %c0_145] : memref<400x256xbf16, #tpu.memory_space<vmem>>, vector<16x256xbf16>
    tpu.vector_store %arg17[%c144_144, %c0_145], %242 {strides = array<i32>} : memref<400x256xbf16, #tpu.memory_space<vmem>>, vector<16x256xbf16>,
    %244 = vector.extract_strided_slice %193 {offsets = [0, 32], sizes = [16, 256], strides = [1, 1]} : vector<16x324xbf16> to vector<16x256xbf16>
    %c10 = arith.constant 10 : index
    %c0_146 = arith.constant 0 : index
    %245 = vector.load %arg3[%c10, %c0_146] : memref<25x256xbf16, #tpu.memory_space<vmem>>, vector<1x256xbf16>
    %246 = vector.broadcast %245 : vector<1x256xbf16> to vector<16x256xbf16>
    %247 = arith.mulf %244, %246 : vector<16x256xbf16>
    %c160 = arith.constant 160 : index
    %c0_147 = arith.constant 0 : index
    %248 = vector.load %arg17[%c160, %c0_147] : memref<400x256xbf16, #tpu.memory_space<vmem>>, vector<16x256xbf16>
    tpu.vector_store %arg17[%c160, %c0_147], %247 {strides = array<i32>} : memref<400x256xbf16, #tpu.memory_space<vmem>>, vector<16x256xbf16>,
    %249 = vector.extract_strided_slice %193 {offsets = [0, 33], sizes = [16, 256], strides = [1, 1]} : vector<16x324xbf16> to vector<16x256xbf16>
    %c11 = arith.constant 11 : index
    %c0_148 = arith.constant 0 : index
    %250 = vector.load %arg3[%c11, %c0_148] : memref<25x256xbf16, #tpu.memory_space<vmem>>, vector<1x256xbf16>
    %251 = vector.broadcast %250 : vector<1x256xbf16> to vector<16x256xbf16>
    %252 = arith.mulf %249, %251 : vector<16x256xbf16>
    %c176 = arith.constant 176 : index
    %c0_149 = arith.constant 0 : index
    %253 = vector.load %arg17[%c176, %c0_149] : memref<400x256xbf16, #tpu.memory_space<vmem>>, vector<16x256xbf16>
    tpu.vector_store %arg17[%c176, %c0_149], %252 {strides = array<i32>} : memref<400x256xbf16, #tpu.memory_space<vmem>>, vector<16x256xbf16>,
    %254 = vector.extract_strided_slice %193 {offsets = [0, 34], sizes = [16, 256], strides = [1, 1]} : vector<16x324xbf16> to vector<16x256xbf16>
    %c12 = arith.constant 12 : index
    %c0_150 = arith.constant 0 : index
    %255 = vector.load %arg3[%c12, %c0_150] : memref<25x256xbf16, #tpu.memory_space<vmem>>, vector<1x256xbf16>
    %256 = vector.broadcast %255 : vector<1x256xbf16> to vector<16x256xbf16>
    %257 = arith.mulf %254, %256 : vector<16x256xbf16>
    %c192_151 = arith.constant 192 : index
    %c0_152 = arith.constant 0 : index
    %258 = vector.load %arg17[%c192_151, %c0_152] : memref<400x256xbf16, #tpu.memory_space<vmem>>, vector<16x256xbf16>
    tpu.vector_store %arg17[%c192_151, %c0_152], %257 {strides = array<i32>} : memref<400x256xbf16, #tpu.memory_space<vmem>>, vector<16x256xbf16>,
    %259 = vector.extract_strided_slice %193 {offsets = [0, 35], sizes = [16, 256], strides = [1, 1]} : vector<16x324xbf16> to vector<16x256xbf16>
    %c13 = arith.constant 13 : index
    %c0_153 = arith.constant 0 : index
    %260 = vector.load %arg3[%c13, %c0_153] : memref<25x256xbf16, #tpu.memory_space<vmem>>, vector<1x256xbf16>
    %261 = vector.broadcast %260 : vector<1x256xbf16> to vector<16x256xbf16>
    %262 = arith.mulf %259, %261 : vector<16x256xbf16>
    %c208 = arith.constant 208 : index
    %c0_154 = arith.constant 0 : index
    %263 = vector.load %arg17[%c208, %c0_154] : memref<400x256xbf16, #tpu.memory_space<vmem>>, vector<16x256xbf16>
    tpu.vector_store %arg17[%c208, %c0_154], %262 {strides = array<i32>} : memref<400x256xbf16, #tpu.memory_space<vmem>>, vector<16x256xbf16>,
    %264 = vector.extract_strided_slice %193 {offsets = [0, 36], sizes = [16, 256], strides = [1, 1]} : vector<16x324xbf16> to vector<16x256xbf16>
    %c14 = arith.constant 14 : index
    %c0_155 = arith.constant 0 : index
    %265 = vector.load %arg3[%c14, %c0_155] : memref<25x256xbf16, #tpu.memory_space<vmem>>, vector<1x256xbf16>
    %266 = vector.broadcast %265 : vector<1x256xbf16> to vector<16x256xbf16>
    %267 = arith.mulf %264, %266 : vector<16x256xbf16>
    %c224 = arith.constant 224 : index
    %c0_156 = arith.constant 0 : index
    %268 = vector.load %arg17[%c224, %c0_156] : memref<400x256xbf16, #tpu.memory_space<vmem>>, vector<16x256xbf16>
    tpu.vector_store %arg17[%c224, %c0_156], %267 {strides = array<i32>} : memref<400x256xbf16, #tpu.memory_space<vmem>>, vector<16x256xbf16>,
    %269 = vector.extract_strided_slice %193 {offsets = [0, 48], sizes = [16, 256], strides = [1, 1]} : vector<16x324xbf16> to vector<16x256xbf16>
    %c15 = arith.constant 15 : index
    %c0_157 = arith.constant 0 : index
    %270 = vector.load %arg3[%c15, %c0_157] : memref<25x256xbf16, #tpu.memory_space<vmem>>, vector<1x256xbf16>
    %271 = vector.broadcast %270 : vector<1x256xbf16> to vector<16x256xbf16>
    %272 = arith.mulf %269, %271 : vector<16x256xbf16>
    %c240 = arith.constant 240 : index
    %c0_158 = arith.constant 0 : index
    %273 = vector.load %arg17[%c240, %c0_158] : memref<400x256xbf16, #tpu.memory_space<vmem>>, vector<16x256xbf16>
    tpu.vector_store %arg17[%c240, %c0_158], %272 {strides = array<i32>} : memref<400x256xbf16, #tpu.memory_space<vmem>>, vector<16x256xbf16>,
    %274 = vector.extract_strided_slice %193 {offsets = [0, 49], sizes = [16, 256], strides = [1, 1]} : vector<16x324xbf16> to vector<16x256xbf16>
    %c16_159 = arith.constant 16 : index
    %c0_160 = arith.constant 0 : index
    %275 = vector.load %arg3[%c16_159, %c0_160] : memref<25x256xbf16, #tpu.memory_space<vmem>>, vector<1x256xbf16>
    %276 = vector.broadcast %275 : vector<1x256xbf16> to vector<16x256xbf16>
    %277 = arith.mulf %274, %276 : vector<16x256xbf16>
    %c256 = arith.constant 256 : index
    %c0_161 = arith.constant 0 : index
    %278 = vector.load %arg17[%c256, %c0_161] : memref<400x256xbf16, #tpu.memory_space<vmem>>, vector<16x256xbf16>
    tpu.vector_store %arg17[%c256, %c0_161], %277 {strides = array<i32>} : memref<400x256xbf16, #tpu.memory_space<vmem>>, vector<16x256xbf16>,
    %279 = vector.extract_strided_slice %193 {offsets = [0, 50], sizes = [16, 256], strides = [1, 1]} : vector<16x324xbf16> to vector<16x256xbf16>
    %c17 = arith.constant 17 : index
    %c0_162 = arith.constant 0 : index
    %280 = vector.load %arg3[%c17, %c0_162] : memref<25x256xbf16, #tpu.memory_space<vmem>>, vector<1x256xbf16>
    %281 = vector.broadcast %280 : vector<1x256xbf16> to vector<16x256xbf16>
    %282 = arith.mulf %279, %281 : vector<16x256xbf16>
    %c272 = arith.constant 272 : index
    %c0_163 = arith.constant 0 : index
    %283 = vector.load %arg17[%c272, %c0_163] : memref<400x256xbf16, #tpu.memory_space<vmem>>, vector<16x256xbf16>
    tpu.vector_store %arg17[%c272, %c0_163], %282 {strides = array<i32>} : memref<400x256xbf16, #tpu.memory_space<vmem>>, vector<16x256xbf16>,
    %284 = vector.extract_strided_slice %193 {offsets = [0, 51], sizes = [16, 256], strides = [1, 1]} : vector<16x324xbf16> to vector<16x256xbf16>
    %c18 = arith.constant 18 : index
    %c0_164 = arith.constant 0 : index
    %285 = vector.load %arg3[%c18, %c0_164] : memref<25x256xbf16, #tpu.memory_space<vmem>>, vector<1x256xbf16>
    %286 = vector.broadcast %285 : vector<1x256xbf16> to vector<16x256xbf16>
    %287 = arith.mulf %284, %286 : vector<16x256xbf16>
    %c288 = arith.constant 288 : index
    %c0_165 = arith.constant 0 : index
    %288 = vector.load %arg17[%c288, %c0_165] : memref<400x256xbf16, #tpu.memory_space<vmem>>, vector<16x256xbf16>
    tpu.vector_store %arg17[%c288, %c0_165], %287 {strides = array<i32>} : memref<400x256xbf16, #tpu.memory_space<vmem>>, vector<16x256xbf16>,
    %289 = vector.extract_strided_slice %193 {offsets = [0, 52], sizes = [16, 256], strides = [1, 1]} : vector<16x324xbf16> to vector<16x256xbf16>
    %c19 = arith.constant 19 : index
    %c0_166 = arith.constant 0 : index
    %290 = vector.load %arg3[%c19, %c0_166] : memref<25x256xbf16, #tpu.memory_space<vmem>>, vector<1x256xbf16>
    %291 = vector.broadcast %290 : vector<1x256xbf16> to vector<16x256xbf16>
    %292 = arith.mulf %289, %291 : vector<16x256xbf16>
    %c304 = arith.constant 304 : index
    %c0_167 = arith.constant 0 : index
    %293 = vector.load %arg17[%c304, %c0_167] : memref<400x256xbf16, #tpu.memory_space<vmem>>, vector<16x256xbf16>
    tpu.vector_store %arg17[%c304, %c0_167], %292 {strides = array<i32>} : memref<400x256xbf16, #tpu.memory_space<vmem>>, vector<16x256xbf16>,
    %294 = vector.extract_strided_slice %193 {offsets = [0, 64], sizes = [16, 256], strides = [1, 1]} : vector<16x324xbf16> to vector<16x256xbf16>
    %c20 = arith.constant 20 : index
    %c0_168 = arith.constant 0 : index
    %295 = vector.load %arg3[%c20, %c0_168] : memref<25x256xbf16, #tpu.memory_space<vmem>>, vector<1x256xbf16>
    %296 = vector.broadcast %295 : vector<1x256xbf16> to vector<16x256xbf16>
    %297 = arith.mulf %294, %296 : vector<16x256xbf16>
    %c320 = arith.constant 320 : index
    %c0_169 = arith.constant 0 : index
    %298 = vector.load %arg17[%c320, %c0_169] : memref<400x256xbf16, #tpu.memory_space<vmem>>, vector<16x256xbf16>
    tpu.vector_store %arg17[%c320, %c0_169], %297 {strides = array<i32>} : memref<400x256xbf16, #tpu.memory_space<vmem>>, vector<16x256xbf16>,
    %299 = vector.extract_strided_slice %193 {offsets = [0, 65], sizes = [16, 256], strides = [1, 1]} : vector<16x324xbf16> to vector<16x256xbf16>
    %c21 = arith.constant 21 : index
    %c0_170 = arith.constant 0 : index
    %300 = vector.load %arg3[%c21, %c0_170] : memref<25x256xbf16, #tpu.memory_space<vmem>>, vector<1x256xbf16>
    %301 = vector.broadcast %300 : vector<1x256xbf16> to vector<16x256xbf16>
    %302 = arith.mulf %299, %301 : vector<16x256xbf16>
    %c336 = arith.constant 336 : index
    %c0_171 = arith.constant 0 : index
    %303 = vector.load %arg17[%c336, %c0_171] : memref<400x256xbf16, #tpu.memory_space<vmem>>, vector<16x256xbf16>
    tpu.vector_store %arg17[%c336, %c0_171], %302 {strides = array<i32>} : memref<400x256xbf16, #tpu.memory_space<vmem>>, vector<16x256xbf16>,
    %304 = vector.extract_strided_slice %193 {offsets = [0, 66], sizes = [16, 256], strides = [1, 1]} : vector<16x324xbf16> to vector<16x256xbf16>
    %c22 = arith.constant 22 : index
    %c0_172 = arith.constant 0 : index
    %305 = vector.load %arg3[%c22, %c0_172] : memref<25x256xbf16, #tpu.memory_space<vmem>>, vector<1x256xbf16>
    %306 = vector.broadcast %305 : vector<1x256xbf16> to vector<16x256xbf16>
    %307 = arith.mulf %304, %306 : vector<16x256xbf16>
    %c352 = arith.constant 352 : index
    %c0_173 = arith.constant 0 : index
    %308 = vector.load %arg17[%c352, %c0_173] : memref<400x256xbf16, #tpu.memory_space<vmem>>, vector<16x256xbf16>
    tpu.vector_store %arg17[%c352, %c0_173], %307 {strides = array<i32>} : memref<400x256xbf16, #tpu.memory_space<vmem>>, vector<16x256xbf16>,
    %309 = vector.extract_strided_slice %193 {offsets = [0, 67], sizes = [16, 256], strides = [1, 1]} : vector<16x324xbf16> to vector<16x256xbf16>
    %c23 = arith.constant 23 : index
    %c0_174 = arith.constant 0 : index
    %310 = vector.load %arg3[%c23, %c0_174] : memref<25x256xbf16, #tpu.memory_space<vmem>>, vector<1x256xbf16>
    %311 = vector.broadcast %310 : vector<1x256xbf16> to vector<16x256xbf16>
    %312 = arith.mulf %309, %311 : vector<16x256xbf16>
    %c368 = arith.constant 368 : index
    %c0_175 = arith.constant 0 : index
    %313 = vector.load %arg17[%c368, %c0_175] : memref<400x256xbf16, #tpu.memory_space<vmem>>, vector<16x256xbf16>
    tpu.vector_store %arg17[%c368, %c0_175], %312 {strides = array<i32>} : memref<400x256xbf16, #tpu.memory_space<vmem>>, vector<16x256xbf16>,
    %314 = vector.extract_strided_slice %193 {offsets = [0, 68], sizes = [16, 256], strides = [1, 1]} : vector<16x324xbf16> to vector<16x256xbf16>
    %c24_176 = arith.constant 24 : index
    %c0_177 = arith.constant 0 : index
    %315 = vector.load %arg3[%c24_176, %c0_177] : memref<25x256xbf16, #tpu.memory_space<vmem>>, vector<1x256xbf16>
    %316 = vector.broadcast %315 : vector<1x256xbf16> to vector<16x256xbf16>
    %317 = arith.mulf %314, %316 : vector<16x256xbf16>
    %c384 = arith.constant 384 : index
    %c0_178 = arith.constant 0 : index
    %318 = vector.load %arg17[%c384, %c0_178] : memref<400x256xbf16, #tpu.memory_space<vmem>>, vector<16x256xbf16>
    tpu.vector_store %arg17[%c384, %c0_178], %317 {strides = array<i32>} : memref<400x256xbf16, #tpu.memory_space<vmem>>, vector<16x256xbf16>,
    %c0_179 = arith.constant 0 : index
    %c0_180 = arith.constant 0 : index
    %319 = vector.load %arg12[%c0_179, %c0_180] : memref<24x400xbf16, #tpu.memory_space<vmem>>, vector<24x400xbf16>
    %c0_181 = arith.constant 0 : index
    %c0_182 = arith.constant 0 : index
    %320 = vector.load %arg17[%c0_181, %c0_182] : memref<400x256xbf16, #tpu.memory_space<vmem>>, vector<400x256xbf16>
    %cst_183 = arith.constant dense<0.000000e+00> : vector<24x256xf32>
    %321 = tpu.matmul %319, %320, %cst_183 {dimension_numbers = #tpu.dot_dimension_numbers<[1], [0], [0], [1], [0, 0, 1, 1], [], []>} : vector<24x400xbf16>, vector<400x256xbf16>, vector<24x256xf32> -> vector<24x256xf32>
    %c0_184 = arith.constant 0 : index
    %c0_185 = arith.constant 0 : index
    %322 = vector.load %arg13[%c0_184, %c0_185] : memref<24x1xf32, #tpu.memory_space<vmem>>, vector<24x1xf32>
    %323 = vector.broadcast %322 : vector<24x1xf32> to vector<24x256xf32>
    %324 = arith.addf %321, %323 : vector<24x256xf32>
    %c0_186 = arith.constant 0 : index
    %c40 = arith.constant 40 : index
    %c0_187 = arith.constant 0 : index
    %325 = vector.load %arg14[%c0_186, %c40, %c0_187] : memref<1x88x256xf32, #tpu.memory_space<vmem>>, vector<1x24x256xf32>
    %326 = vector.shape_cast %325 : vector<1x24x256xf32> to vector<24x256xf32>
    %327 = vector.shape_cast %324 : vector<24x256xf32> to vector<1x24x256xf32>
    tpu.vector_store %arg14[%c0_186, %c40, %c0_187], %327 {strides = array<i32>} : memref<1x88x256xf32, #tpu.memory_space<vmem>>, vector<1x24x256xf32>,
    return
  }
  func.func @transform_0(%arg0: i32) -> (i32, i32, i32) {
    %c0_i32 = arith.constant 0 : i32
    %c0_i32_0 = arith.constant 0 : i32
    %c0_i32_1 = arith.constant 0 : i32
    return %arg0, %c0_i32, %c0_i32_0 : i32, i32, i32
  }
  func.func @transform_1(%arg0: i32) -> (i32, i32) {
    %c0_i32 = arith.constant 0 : i32
    %c0_i32_0 = arith.constant 0 : i32
    %c0_i32_1 = arith.constant 0 : i32
    return %c0_i32, %c0_i32_0 : i32, i32
  }
  func.func @transform_2(%arg0: i32) -> (i32, i32) {
    %c0_i32 = arith.constant 0 : i32
    %c0_i32_0 = arith.constant 0 : i32
    %c0_i32_1 = arith.constant 0 : i32
    return %c0_i32, %c0_i32_0 : i32, i32
  }
  func.func @transform_3(%arg0: i32) -> (i32, i32) {
    %c0_i32 = arith.constant 0 : i32
    %c0_i32_0 = arith.constant 0 : i32
    %c0_i32_1 = arith.constant 0 : i32
    return %c0_i32, %c0_i32_0 : i32, i32
  }
  func.func @transform_4(%arg0: i32) -> (i32, i32) {
    %c0_i32 = arith.constant 0 : i32
    %c0_i32_0 = arith.constant 0 : i32
    %c0_i32_1 = arith.constant 0 : i32
    return %c0_i32, %c0_i32_0 : i32, i32
  }
  func.func @transform_5(%arg0: i32) -> (i32, i32) {
    %c0_i32 = arith.constant 0 : i32
    %c0_i32_0 = arith.constant 0 : i32
    %c0_i32_1 = arith.constant 0 : i32
    return %c0_i32, %c0_i32_0 : i32, i32
  }
  func.func @transform_6(%arg0: i32) -> (i32, i32) {
    %c0_i32 = arith.constant 0 : i32
    %c0_i32_0 = arith.constant 0 : i32
    %c0_i32_1 = arith.constant 0 : i32
    return %c0_i32, %c0_i32_0 : i32, i32
  }
  func.func @transform_7(%arg0: i32) -> (i32, i32) {
    %c0_i32 = arith.constant 0 : i32
    %c0_i32_0 = arith.constant 0 : i32
    %c0_i32_1 = arith.constant 0 : i32
    return %c0_i32, %c0_i32_0 : i32, i32
  }
  func.func @transform_8(%arg0: i32) -> (i32, i32) {
    %c0_i32 = arith.constant 0 : i32
    %c0_i32_0 = arith.constant 0 : i32
    %c0_i32_1 = arith.constant 0 : i32
    return %c0_i32, %c0_i32_0 : i32, i32
  }
  func.func @transform_9(%arg0: i32) -> (i32, i32) {
    %c0_i32 = arith.constant 0 : i32
    %c0_i32_0 = arith.constant 0 : i32
    %c0_i32_1 = arith.constant 0 : i32
    return %c0_i32, %c0_i32_0 : i32, i32
  }
  func.func @transform_10(%arg0: i32) -> (i32, i32) {
    %c0_i32 = arith.constant 0 : i32
    %c0_i32_0 = arith.constant 0 : i32
    %c0_i32_1 = arith.constant 0 : i32
    return %c0_i32, %c0_i32_0 : i32, i32
  }
  func.func @transform_11(%arg0: i32) -> (i32, i32) {
    %c0_i32 = arith.constant 0 : i32
    %c0_i32_0 = arith.constant 0 : i32
    %c0_i32_1 = arith.constant 0 : i32
    return %c0_i32, %c0_i32_0 : i32, i32
  }
  func.func @transform_12(%arg0: i32) -> (i32, i32) {
    %c0_i32 = arith.constant 0 : i32
    %c0_i32_0 = arith.constant 0 : i32
    %c0_i32_1 = arith.constant 0 : i32
    return %c0_i32, %c0_i32_0 : i32, i32
  }
  func.func @transform_13(%arg0: i32) -> (i32, i32, i32) {
    %c0_i32 = arith.constant 0 : i32
    %c0_i32_0 = arith.constant 0 : i32
    %c0_i32_1 = arith.constant 0 : i32
    return %arg0, %c0_i32, %c0_i32_0 : i32, i32, i32
  }
}

</mosaic_0001>

<bundles_post_ra>
// kernel: inception_a_forward.1
= control target key start
LH: loop header
LB: loop body
LE: loop exit
PB: predicated region body
PF: predicated region fallthrough
CT: control target
= control target key end

     0   :  { %s4722_s25 = smov 0   ;;  %s6233_s0 = inlined_call_operand.vmem [shape: f32[2,8,256], index: 0, kind: input, shape index: {}]   ;;  %s6234_s1 = inlined_call_operand.vmem [shape: bf16[9,256], index: 1, kind: input, shape index: {}]   ;;  %s6235_s2 = inlined_call_operand.vmem [shape: bf16[25,256], index: 2, kind: input, shape index: {}]   ;;  %s6236_s3 = inlined_call_operand.vmem [shape: bf16[48,8], index: 3, kind: input, shape index: {}]   ;;  %s6237_s4 = inlined_call_operand.vmem [shape: f32[48,1], index: 4, kind: input, shape index: {}]   ;;  %s6238_s5 = inlined_call_operand.vmem [shape: bf16[24,8], index: 5, kind: input, shape index: {}]   ;;  %s6239_s6 = inlined_call_operand.vmem [shape: f32[24,1], index: 6, kind: input, shape index: {}]   ;;  %s6240_s7 = inlined_call_operand.vmem [shape: bf16[24,144], index: 7, kind: input, shape index: {}]   ;;  %s6241_s8 = inlined_call_operand.vmem [shape: f32[24,1], index: 8, kind: input, shape index: {}]   ;;  %s6242_s9 = inlined_call_operand.vmem [shape: bf16[24,216], index: 9, kind: input, shape index: {}]   ;;  %s6243_s10 = inlined_call_operand.vmem [shape: f32[24,1], index: 10, kind: input, shape index: {}]   ;;  %s6244_s11 = inlined_call_operand.vmem [shape: bf16[24,400], index: 11, kind: input, shape index: {}]   ;;  %s6245_s12 = inlined_call_operand.vmem [shape: f32[24,1], index: 12, kind: input, shape index: {}]   ;;  %s6246_s13 = inlined_call_operand.vmem [shape: f32[2,88,256], index: 13, kind: output, shape index: {}]  }
   0x1 LB: > { %s4160_s26 = sadd.s32 4294967295, %s4602_s25   ;;  %p4164_p0 = scmp.ge.s32.totalorder %s4602_s25, 1  ;;  %s4602_s25 = sphi %s4722_s25, %s23_s25  }
   0x2   : > { %p387_p1 = scmp.lt.s32.totalorder %s4602_s25, 3 }
   0x4   : > { %p388_p2 = pnand %p4164_p0, %p387_p1 }
   0x5   : > { %v454_v0 = vld [vmem:[%s6237_s4 + $0x10] sm:$0xff] (!%p388_p2)  ;;  %p431_p3 = scmp.lt.s32.totalorder (!%p388_p2), %s4160_s26, 1  ;;  %v607_v1 = vlaneseq (!%p388_p2)  ;;  %v4604_v2 = vmov (!%p388_p2), 0   ;;  %v455_v3 = vld [vmem:[%s6237_s4 + $0x18] sm:$0xff] (!%p388_p2)  ;;  %v4744_v4 = vld [vmem:[%s6234_s1] sm:$0x11] (!%p388_p2) }
   0x6   : > { %391 = sbr.rel (%p388_p2) target bundleno = 1392 (0x570), region = 72  ;;  %4443 = vset.pattern.permute.xlu0 (!%p388_p2), %v4604_v2  ;;  %552 = vmatprep.mubr.bf16.mxu0 (!%p388_p2), %v4604_v2  ;;  %v655_v6 = vld [vmem:[%s6234_s1] sm:$0x22] (!%p388_p2)  ;;  %v605_v7 = vunpack.c.l.bf16 (!%p388_p2), %v4744_v4  ;;  %v606_v8 = vunpack.c.h.bf16 (!%p388_p2), %v4744_v4  ;;  %v734_v11 = vld [vmem:[%s6234_s1] sm:$0x44] (!%p388_p2)  ;;  %vm6267_vm0 = vcmask (!%p388_p2), 1043456  }
   0x7   : > { %470 = vperm.xlu0 (!%p388_p2), %4443, %v454_v0   ;;  %4484 = vset.pattern.permute.xlu1 (!%p388_p2), %v4604_v2  ;;  %v4746_v5 = vshrl.u32 (!%p388_p2), %v607_v1, 7  ;;  %v656_v9 = vunpack.c.l.bf16 (!%p388_p2), %v655_v6  ;;  %v657_v10 = vunpack.c.h.bf16 (!%p388_p2), %v655_v6  ;;  %v735_v17 = vunpack.c.l.bf16 (!%p388_p2), %v734_v11  ;;  %s4605_s24 = smov (!%p388_p2), 17   ;;  %v812_v29 = vld [vmem:[%s6234_s1] sm:$0x88] (!%p388_p2)  ;;  %v891_v38 = vld [vmem:[%s6234_s1 + $0x8] sm:$0x11] (!%p388_p2) }
   0x8   : > { %1009 = vmatprep.mubr.bf16.mxu1 (!%p388_p2), %v4604_v2  ;;  %v736_v18 = vunpack.c.h.bf16 (!%p388_p2), %v734_v11  ;;  %v4485_v31 = vld [vmem:[%s6236_s3] sm:$0xff] (!%p388_p2)   ;;  %vm503_vm1 = vcmask (!%p388_p2), 64512   ;;  %v813_v41 = vunpack.c.l.bf16 (!%p388_p2), %v812_v29  ;;  %v814_v42 = vunpack.c.h.bf16 (!%p388_p2), %v812_v29  ;;  %s4607_s19 = smov (!%p388_p2), 2   ;;  %s4608_s20 = smov (!%p388_p2), 16   ;;  %v4486_v59 = vld [vmem:[%s6236_s3 + $0x8] sm:$0xff] (!%p388_p2)  }
   0x9   : > { %v4762_v12 = vsub.s32 (!%p388_p2), 1, %v4746_v5  ;;  %v4765_v13 = vsub.s32 (!%p388_p2), 2, %v4746_v5  ;;  %v4768_v14 = vsub.s32 (!%p388_p2), 3, %v4746_v5  ;;  %v739_v19 = vsub.s32 (!%p388_p2), 4, %v4746_v5  ;;  %v1074_v39 = vld [vmem:[%s6234_s1] sm:$0x11] (!%p388_p2) }
   0xa   : > { %v776_v20 = vsub.s32 (!%p388_p2), 5, %v4746_v5  ;;  %v817_v43 = vsub.s32 (!%p388_p2), 6, %v4746_v5  ;;  %v855_v44 = vsub.s32 (!%p388_p2), 7, %v4746_v5  ;;  %v4803_v45 = vsub.s32 (!%p388_p2), 0, %v4746_v5  ;;  %v1126_v57 = vld [vmem:[%s6234_s1] sm:$0x22] (!%p388_p2) }
   0xb   : > { %475 = vperm.xlu0 (!%p388_p2), %4443, %v455_v3   ;;  %v620_v23 = vrot.slane (!%p388_p2), %v605_v7, %v4762_v12  ;;  %v624_v24 = vrot.slane (!%p388_p2), %v606_v8, %v4762_v12  ;;  %v661_v25 = vrot.slane (!%p388_p2), %v656_v9, %v4765_v13  ;;  %v665_v26 = vrot.slane (!%p388_p2), %v657_v10, %v4765_v13  ;;  %v1176_v58 = vld [vmem:[%s6234_s1] sm:$0x22] (!%p388_p2)  ;;  %s4609_s30 = smov (!%p388_p2), 18   ;;  %s4610_s14 = smov (!%p388_p2), 32  }
   0xc   : > { %v699_v27 = vrot.slane (!%p388_p2), %v656_v9, %v4768_v14  ;;  %v703_v28 = vrot.slane (!%p388_p2), %v657_v10, %v4768_v14  ;;  %v740_v33 = vrot.slane (!%p388_p2), %v735_v17, %v739_v19  ;;  %v744_v34 = vrot.slane (!%p388_p2), %v736_v18, %v739_v19  ;;  %s6247_s15 = smov (!%p388_p2), 33   ;;  %v1277_v19 = vld [vmem:[%s6234_s1] sm:$0x44] (!%p388_p2)  ;;  %s6265_s22 = smov (!%p388_p2), 127  }
   0xd   : > { %s6316_s26 = smov (!%p431_p3, %s4160_s26), 1  ;;  %v4444_v32 = vpack.i.bf16 %v624_v24, %v620_v23  ;;  %v4449_v35 = vpack.i.bf16 %v665_v26, %v661_v25  ;;  %v777_v37 = vrot.slane %v735_v17, %v776_v20  ;;  %v781_v40 = vrot.slane %v736_v18, %v776_v20  ;;  %v1228_v18 = vld [vmem:[%s6234_s1] sm:$0x44]  ;;  %s6263_s29 = smov 126  }
   0xe   : > { %s4370_s18 = sshll.u32 %s6316_s26, 4  ;;  %v4454_v36 = vpack.i.bf16 %v703_v28, %v699_v27  ;;  %v4459_v46 = vpack.i.bf16 %v744_v34, %v740_v33  ;;  %v892_v47 = vunpack.c.l.bf16 %v891_v38  ;;  %v4182_v48 = vcombine.low %v1074_v39, %v1074_v39  ;;  %v1329_v34 = vld [vmem:[%s6234_s1] sm:$0x88]  ;;  %s6252_s16 = smov 112  }
   0xf   : > { %s435_s23 = scalar_lea.vmem %s6233_s0, %s4370_s18  ;;  %s4606_s18 = smov 1   ;;  %v818_v49 = vrot.slane %v813_v41, %v817_v43  ;;  %v822_v50 = vrot.slane %v814_v42, %v817_v43  ;;  %v893_v51 = vunpack.c.h.bf16 %v891_v38  ;;  %v4183_v52 = vcombine.high %v1074_v39, %v1074_v39 }
  0x10   : > { %v443_v15 = vld [vmem:[%s435_s23 + $0x8] sm:$0xff]  ;;  %v442_v16 = vld [vmem:[%s435_s23] sm:$0xff]  ;;  %4445 = vrot.lane.b32.xlu0 %v4444_v32, %s4606_s18  ;;  %v4464_v53 = vpack.i.bf16 %v781_v40, %v777_v37  ;;  %v856_v54 = vrot.slane %v813_v41, %v855_v44  ;;  %v860_v55 = vrot.slane %v814_v42, %v855_v44  ;;  %v1081_v56 = vshrl.u32 %v4182_v48, 16  ;;  %s4612_s23 = smov 34   ;;  %s6250_s17 = smov 111  }
  0x11   : > { %v445_v21 = vpack.c.bf16 %v443_v15, %v443_v15  ;;  %v444_v22 = vpack.c.bf16 %v442_v16, %v442_v16  ;;  %593 = vrot.lane.b32.xlu1 %v442_v16, %s4605_s24  ;;  %v897_v60 = vrot.slane %v892_v47, %v4803_v45  ;;  %v4469_v61 = vpack.i.bf16 %v822_v50, %v818_v49  ;;  %s6261_s21 = smov 110   ;;  %s6257_s27 = smov 96  }
  0x12   : > { %v901_v62 = vrot.slane %v893_v51, %v4803_v45  ;;  %v1089_v63 = vshrl.u32 %v4183_v52, 16  ;;  %v4184_v0 = vcombine.low %v1126_v57, %v1126_v57  ;;  %v4474_v1 = vpack.i.bf16 %v860_v55, %v856_v54  ;;  %v1431_v51 = vld [vmem:[%s6234_s1 + $0x8] sm:$0x11]  ;;  %s6255_s28 = smov 95  }
  0x13   : > { %4171 = vmatprep.subr.msk.bf16.mxu0 %vm6267_vm0, %v445_v21  ;;  %v515_v30 = vsel %vm6267_vm0, %v444_v22, 0  ;;  %v1082_v3 = vpack.i.b16 %v1081_v56, %v1081_v56  ;;  %v4186_v5 = vcombine.low %v1176_v58, %v1176_v58  ;;  %v4185_v10 = vcombine.high %v1126_v57, %v1126_v57 }
  0x14   : > { %521 = vmatpush1.bf16.msra.mxu0 %v515_v30  ;;  %4455 = vrot.lane.b32.xlu0 %v4454_v36, %s4608_s20  ;;  %v4479_v6 = vpack.i.bf16 %v901_v62, %v897_v60  ;;  %v1090_v9 = vpack.i.b16 %v1089_v63, %v1089_v63  ;;  %v4187_v17 = vcombine.high %v1176_v58, %v1176_v58  ;;  %vm597_vm2 = vcmask 138240  }
  0x15   : > { %595 = vrot.lane.b32.xlu1 %v443_v15, %s4605_s24  ;;  %v1087_v11 = vrot.slane %v1082_v3, %v4803_v45  ;;  %v1133_v15 = vpack.i.b16 %v4184_v0, %v4184_v0  ;;  %v1183_v16 = vshrl.u32 %v4186_v5, 16  ;;  %v1140_v21 = vpack.i.b16 %v4185_v10, %v4185_v10 }
  0x16   : > { %v1095_v20 = vrot.slane %v1090_v9, %v4803_v45  ;;  %v4188_v22 = vcombine.low %v1228_v18, %v1228_v18  ;;  %v1191_v25 = vshrl.u32 %v4187_v17, 16  ;;  %v4190_v26 = vcombine.low %v1277_v19, %v1277_v19 }
  0x17   : > { %4172 = vmatmul.mubr.msk.bf16.vlgmr.msra.gmra.mrb[0].mxu0 %vm503_vm1, %v4485_v31  ;;  %v1138_v23 = vrot.slane %v1133_v15, %v4762_v12  ;;  %v1184_v24 = vpack.i.b16 %v1183_v16, %v1183_v16  ;;  %v1145_v27 = vrot.slane %v1140_v21, %v4762_v12  ;;  %v4189_v29 = vcombine.high %v1228_v18, %v1228_v18 }
  0x18   : > { %562 = vmatprep.mubr.bf16.mxu0 %v4604_v2  ;;  %4465 = vrot.lane.b32.xlu0 %v4464_v53, %s4609_s30  ;;  %v1235_v28 = vpack.i.b16 %v4188_v22, %v4188_v22  ;;  %v1192_v31 = vpack.i.b16 %v1191_v25, %v1191_v25  ;;  %v1284_v32 = vshrl.u32 %v4190_v26, 16  ;;  %v4191_v33 = vcombine.high %v1277_v19, %v1277_v19  ;;  %v4503_v22 = vld [vmem:[%s6236_s3 + $0x10] sm:$0xff]  }
  0x19   : > { %4450 = vrot.lane.b32.xlu1 %v4449_v35, %s4607_s19  ;;  %v1189_v30 = vrot.slane %v1184_v24, %v4762_v12  ;;  %v1379_v35 = vld [vmem:[%s6234_s1] sm:$0x88]  ;;  %v1242_v37 = vpack.i.b16 %v4189_v29, %v4189_v29  ;;  %v4192_v38 = vcombine.low %v1329_v34, %v1329_v34  ;;  %v4196_v57 = vcombine.low %v1431_v51, %v1431_v51 }
  0x1a   : > { %v1240_v36 = vrot.slane %v1235_v28, %v4765_v13  ;;  %v1197_v39 = vrot.slane %v1192_v31, %v4762_v12  ;;  %v1285_v40 = vpack.i.b16 %v1284_v32, %v1284_v32  ;;  %v1292_v41 = vshrl.u32 %v4191_v33, 16 }
  0x1b   : > { %v4194_v42 = vcombine.low %v1379_v35, %v1379_v35  ;;  %v1247_v43 = vrot.slane %v1242_v37, %v4765_v13  ;;  %v1336_v44 = vpack.i.b16 %v4192_v38, %v4192_v38  ;;  %v4195_v50 = vcombine.high %v1379_v35, %v1379_v35 }
  0x1c   : > { %4475 = vrot.lane.b32.xlu0 %v4474_v1, %s6247_s15  ;;  %v1290_v47 = vrot.slane %v1285_v40, %v4765_v13  ;;  %v1293_v48 = vpack.i.b16 %v1292_v41, %v1292_v41  ;;  %v1438_v62 = vpack.i.b16 %v4196_v57, %v4196_v57  ;;  %vm631_vm3 = vcmask 7168  }
  0x1d   : > { %4460 = vrot.lane.b32.xlu1 %v4459_v46, %s4605_s24  ;;  %v4193_v46 = vcombine.high %v1329_v34, %v1329_v34  ;;  %v1386_v49 = vshrl.u32 %v4194_v42, 16  ;;  %v1341_v52 = vrot.slane %v1336_v44, %v4768_v14  ;;  %v1394_v56 = vshrl.u32 %v4195_v50, 16 }
  0x1e   : > { %v1298_v54 = vrot.slane %v1293_v48, %v4765_v13  ;;  %v1443_v0 = vrot.slane %v1438_v62, %v4803_v45  ;;  %vm672_vm4 = vcmask 15360   ;;  %vm710_vm5 = vcmask 130048  }
  0x1f   : > { %4173 = vmatmul.mubr.msk.bf16.gmra.mrb[4].mxu0 %vm503_vm1, %v4486_v59  ;;  %v1343_v53 = vpack.i.b16 %v4193_v46, %v4193_v46  ;;  %v1387_v55 = vpack.i.b16 %v1386_v49, %v1386_v49  ;;  %v4197_v59 = vcombine.high %v1431_v51, %v1431_v51  ;;  %vm788_vm6 = vcmask 146432  }
  0x20   : > { %572 = vmatprep.mubr.bf16.mxu0 %v4604_v2  ;;  %1098 = vrot.lane.b32.xlu0 %v1087_v11, %s4606_s18  ;;  %vm6249_vm7 = vcmask 261120   ;;  %vm6254_vm8 = vcmask 269312   ;;  %vm6268_vm9 = vcmask 277504   ;;  %vm648_vm10 = vcmask 1039360  }
  0x21   : > { %4470 = vrot.lane.b32.xlu1 %v4469_v61, %s4610_s14  ;;  %v1348_v58 = vrot.slane %v1343_v53, %v4768_v14  ;;  %v1392_v60 = vrot.slane %v1387_v55, %v4768_v14  ;;  %v1395_v61 = vpack.i.b16 %v1394_v56, %v1394_v56  ;;  %v1445_v1 = vpack.i.b16 %v4197_v59, %v4197_v59 }
  0x22   : > { %vm689_vm11 = vcmask 1031168   ;;  %vm727_vm12 = vcmask 916480   ;;  %vm767_vm13 = vcmask 908288   ;;  %vm805_vm14 = vcmask 900096  }
  0x23   : > { %v1400_v63 = vrot.slane %v1395_v61, %v4768_v14  ;;  %v1450_v3 = vrot.slane %v1445_v1, %v4803_v45  ;;  %vm846_vm15 = vcmask 785408  }
  0x24   : > { %1148 = vrot.lane.b32.xlu0 %v1138_v23, %s4607_s19 }
  0x25   : > { %4480 = vrot.lane.b32.xlu1 %v4479_v6, %s4612_s23 }
  0x27   : > { %4174 = vmatmul.mubr.msk.bf16.gmra.mrb[8].mxu0 %vm503_vm1, %v4503_v22 }
  0x28   : > { %1200 = vrot.lane.b32.xlu0 %v1189_v30, %s4608_s20 }
  0x29   : > { %1100 = vrot.lane.b32.xlu1 %v1095_v20, %s4606_s18 }
  0x2c   : > { %1250 = vrot.lane.b32.xlu0 %v1240_v36, %s4605_s24 }
  0x2d   : > { %1150 = vrot.lane.b32.xlu1 %v1145_v27, %s4607_s19 }
  0x30   : > { %1301 = vrot.lane.b32.xlu0 %v1290_v47, %s4609_s30 }
  0x31   : > { %1202 = vrot.lane.b32.xlu1 %v1197_v39, %s4608_s20 }
  0x34   : > { %1351 = vrot.lane.b32.xlu0 %v1341_v52, %s4610_s14 }
  0x35   : > { %1252 = vrot.lane.b32.xlu1 %v1247_v43, %s4605_s24 }
  0x38   : > { %1403 = vrot.lane.b32.xlu0 %v1392_v60, %s6247_s15 }
  0x39   : > { %1303 = vrot.lane.b32.xlu1 %v1298_v54, %s4609_s30 }
  0x3c   : > { %1453 = vrot.lane.b32.xlu0 %v1443_v0, %s4612_s23 }
  0x3d   : > { %1353 = vrot.lane.b32.xlu1 %v1348_v58, %s4610_s14 }
  0x41   : > { %1405 = vrot.lane.b32.xlu1 %v1400_v63, %s6247_s15  ;;  %s6259_s15 = smov 94  }
  0x45   : > { %1455 = vrot.lane.b32.xlu1 %v1450_v3, %s4612_s23 }
  0x83   : > { %v594_v6 = vpop.permute.xlu1 %593 }
  0x84   : > { %v4874_v11 = vsel %vm597_vm2, 0.0, %v594_v6 }
  0x86   : > { %v471_v5 = vpop.permute.xlu0 %470 }
  0x87   : > { %v596_v10 = vpop.permute.xlu1 %595 }
  0x88   : > { %v4877_v18 = vsel %vm597_vm2, %v594_v6, %v596_v10  ;;  %v4897_v37 = vsel %vm597_vm2, %v596_v10, 0.0 }
  0x8a   : > { %v476_v9 = vpop.permute.xlu0 %475 }
  0x8b   : > { %v4451_v35 = vpop.permute.xlu1 %4450 }
  0x8c   : > { %v4453_v38 = vunpack.i.h.bf16 %v4451_v35  ;;  %v4452_v39 = vunpack.i.l.bf16 %v4451_v35 }
  0x8e   : > { %v4446_v15 = vpop.permute.xlu0 %4445  ;;  %v677_v43 = vmul.f32 %v4452_v39, %v4874_v11  ;;  %v673_v44 = vsel %vm672_vm4, %v4452_v39, %v4453_v38  ;;  %v679_v48 = vmul.f32 %v4453_v38, %v4897_v37 }
  0x8f   : > { %v4448_v16 = vunpack.i.h.bf16 %v4446_v15  ;;  %v4447_v17 = vunpack.i.l.bf16 %v4446_v15  ;;  %v678_v49 = vmul.f32 %v673_v44, %v4877_v18  ;;  %v4461_v51 = vpop.permute.xlu1 %4460 }
  0x90   : > { %v4463_v53 = vunpack.i.h.bf16 %v4461_v51  ;;  %v4462_v54 = vunpack.i.l.bf16 %v4461_v51 }
  0x91   : > { %v636_v19 = vmul.f32 %v4447_v17, %v4874_v11  ;;  %v632_v20 = vsel %vm631_vm3, %v4447_v17, %v4448_v16  ;;  %v638_v41 = vmul.f32 %v4448_v16, %v4897_v37 }
  0x92   : > { %v637_v21 = vmul.f32 %v632_v20, %v4877_v18  ;;  %v4456_v42 = vpop.permute.xlu0 %4455  ;;  %v755_v58 = vmul.f32 %v4462_v54, %v4874_v11  ;;  %v751_v59 = vsel %vm597_vm2, %v4462_v54, %v4463_v53  ;;  %v757_v63 = vmul.f32 %v4463_v53, %v4897_v37 }
  0x93   : > { %642 = vrot.lane.b32.xlu0 %v636_v19, %s6265_s22  ;;  %v4458_v46 = vunpack.i.h.bf16 %v4456_v42  ;;  %v4457_v47 = vunpack.i.l.bf16 %v4456_v42  ;;  %v756_v62 = vmul.f32 %v751_v59, %v4877_v18  ;;  %v4471_v1 = vpop.permute.xlu1 %4470 }
  0x94   : > { %644 = vrot.lane.b32.xlu1 %v637_v21, %s6265_s22  ;;  %v4472_v6 = vunpack.i.l.bf16 %v4471_v1 }
  0x95   : > { %v711_v50 = vsel %vm710_vm5, %v4457_v47, %v4458_v46  ;;  %v715_v52 = vmul.f32 %v4457_v47, %v4874_v11  ;;  %v717_v56 = vmul.f32 %v4458_v46, %v4897_v37 }
  0x96   : > { %v716_v55 = vmul.f32 %v711_v50, %v4877_v18  ;;  %v4466_v57 = vpop.permute.xlu0 %4465  ;;  %v834_v16 = vmul.f32 %v4472_v6, %v4874_v11 }
  0x97   : > { %v4468_v60 = vunpack.i.h.bf16 %v4466_v57  ;;  %v4467_v61 = vunpack.i.l.bf16 %v4466_v57 }
  0x99   : > { %v789_v0 = vsel %vm788_vm6, %v4467_v61, %v4468_v60  ;;  %v793_v3 = vmul.f32 %v4467_v61, %v4874_v11  ;;  %v795_v10 = vmul.f32 %v4468_v60, %v4897_v37 }
  0x9a   : > { %v4476_v15 = vpop.permute.xlu0 %4475 }
  0x9b   : > { %v4478_v19 = vunpack.i.h.bf16 %v4476_v15  ;;  %v4477_v20 = vunpack.i.l.bf16 %v4476_v15 }
  0x9e   : > { %v1099_v39 = vpop.permute.xlu0 %1098 }
  0xea   : > { %v4888_v23 = vpop.f32.mrb[0].mxu0 }
  0xeb   : > { %v4890_v24 = vpop.f32.mrb[1].mxu0 }
  0xec   : > { %v4892_v25 = vpop.f32.mrb[2].mxu0 }
  0xed   : > { %v4894_v26 = vpop.f32.mrb[3].mxu0 }
  0xf2   : > { %v564_v27 = vpop.f32.mrb[4].mxu0 }
  0xf3   : > { %v566_v28 = vpop.f32.mrb[5].mxu0  ;;  %v565_v30 = vadd.f32 %v564_v27, %v471_v5  ;;  %v868_v27 = vsel %vm6254_vm8, %v4477_v20, %v4478_v19 }
  0xf4   : > { %v568_v29 = vpop.f32.mrb[6].mxu0  ;;  %v567_v33 = vadd.f32 %v566_v28, %v471_v5  ;;  %v4473_v5 = vunpack.i.h.bf16 %v4471_v1  ;;  %v4481_v28 = vpop.permute.xlu1 %4480 }
  0xf5   : > { %v569_v31 = vadd.f32 %v568_v29, %v476_v9  ;;  %v570_v32 = vpop.f32.mrb[7].mxu0  ;;  %v872_v29 = vmul.f32 %v4477_v20, %v4874_v11 }
  0xf6   : > { %v571_v34 = vadd.f32 %v570_v32, %v476_v9  ;;  %v794_v9 = vmul.f32 %v789_v0, %v4877_v18  ;;  %v830_v17 = vsel %vm6249_vm7, %v4472_v6, %v4473_v5  ;;  %v836_v22 = vmul.f32 %v4473_v5, %v4897_v37 }
  0xf7   : > { %v587_v36 = vpack.c.bf16 %v569_v31, %v565_v30  ;;  %v835_v21 = vmul.f32 %v830_v17, %v4877_v18  ;;  %v4483_v30 = vunpack.i.h.bf16 %v4481_v28  ;;  %v4482_v31 = vunpack.i.l.bf16 %v4481_v28 }
  0xf8   : > { %v588_v40 = vpack.c.bf16 %v571_v34, %v567_v33  ;;  %v873_v32 = vmul.f32 %v868_v27, %v4877_v18  ;;  %v874_v33 = vmul.f32 %v4478_v19, %v4897_v37 }
  0xf9   : > { %1036 = vrot.lane.b32.xlu0 %v587_v36, %s4605_s24  ;;  %v913_v34 = vmul.f32 %v4482_v31, %v4874_v11  ;;  %v909_v35 = vsel %vm6268_vm9, %v4482_v31, %v4483_v30  ;;  %v915_v38 = vmul.f32 %v4483_v30, %v4897_v37 }
  0xfa   : > { %1038 = vrot.lane.b32.xlu1 %v588_v40, %s4605_s24  ;;  %v914_v36 = vmul.f32 %v909_v35, %v4877_v18  ;;  %v1101_v40 = vpop.permute.xlu1 %1100 }
  0xfd   : > { %646 = vrot.lane.b32.xlu0 %v638_v41, %s6265_s22  ;;  %v1149_v41 = vpop.permute.xlu0 %1148 }
  0xfe   : > { %683 = vrot.lane.b32.xlu1 %v677_v43, %s6263_s29  ;;  %v1151_v42 = vpop.permute.xlu1 %1150 }
  0xff   : > { %v1153_v27 = vsel %vm672_vm4, %v1149_v41, %v1151_v42 }
 0x101   : > { %685 = vrot.lane.b32.xlu0 %v678_v49, %s6263_s29  ;;  %v1201_v43 = vpop.permute.xlu0 %1200 }
 0x102   : > { %687 = vrot.lane.b32.xlu1 %v679_v48, %s6263_s29  ;;  %v1203_v44 = vpop.permute.xlu1 %1202 }
 0x105   : > { %721 = vrot.lane.b32.xlu0 %v715_v52, %s6252_s16  ;;  %v1251_v46 = vpop.permute.xlu0 %1250 }
 0x106   : > { %723 = vrot.lane.b32.xlu1 %v716_v55, %s6252_s16  ;;  %v4952_v47 = vpop.permute.xlu1 %1252 }
 0x109   : > { %725 = vrot.lane.b32.xlu0 %v717_v56, %s6252_s16  ;;  %v4954_v48 = vpop.permute.xlu0 %1301 }
 0x10a   : > { %761 = vrot.lane.b32.xlu1 %v755_v58, %s6250_s17  ;;  %v4956_v49 = vpop.permute.xlu1 %1303 }
 0x10d   : > { %763 = vrot.lane.b32.xlu0 %v756_v62, %s6250_s17  ;;  %v4958_v50 = vpop.permute.xlu0 %1351 }
 0x10e   : > { %765 = vrot.lane.b32.xlu1 %v757_v63, %s6250_s17  ;;  %v4960_v37 = vpop.permute.xlu1 %1353 }
 0x111   : > { %799 = vrot.lane.b32.xlu0 %v793_v3, %s6261_s21  ;;  %v4962_v51 = vpop.permute.xlu0 %1403 }
 0x112   : > { %801 = vrot.lane.b32.xlu1 %v794_v9, %s6261_s21  ;;  %v4964_v52 = vpop.permute.xlu1 %1405 }
 0x115   : > { %803 = vrot.lane.b32.xlu0 %v795_v10, %s6261_s21  ;;  %v4966_v53 = vpop.permute.xlu0 %1453 }
 0x116   : > { %840 = vrot.lane.b32.xlu1 %v834_v16, %s6257_s27  ;;  %v4968_v54 = vpop.permute.xlu1 %1455 }
 0x119   : > { %842 = vrot.lane.b32.xlu0 %v835_v21, %s6257_s27  ;;  %v643_v55 = vpop.permute.xlu0 %642 }
 0x11a   : > { %844 = vrot.lane.b32.xlu1 %v836_v22, %s6257_s27  ;;  %v645_v56 = vpop.permute.xlu1 %644  ;;  %v1103_v22 = vsel %vm631_vm3, %v1099_v39, %v1101_v40 }
 0x11d   : > { %878 = vrot.lane.b32.xlu0 %v872_v29, %s6255_s28 }
 0x11e   : > { %880 = vrot.lane.b32.xlu1 %v873_v32, %s6255_s28 }
 0x121   : > { %882 = vrot.lane.b32.xlu0 %v874_v33, %s6255_s28 }
 0x122   : > { %919 = vrot.lane.b32.xlu1 %v913_v34, %s6259_s15 }
 0x125   : > { %921 = vrot.lane.b32.xlu0 %v914_v36, %s6259_s15  ;;  %v1205_v36 = vsel %vm710_vm5, %v1201_v43, %v1203_v44 }
 0x126   : > { %923 = vrot.lane.b32.xlu1 %v915_v38, %s6259_s15  ;;  %v1254_v38 = vsel %vm597_vm2, %v1251_v46, %v4952_v47 }
 0x16b   : > { %v1037_v57 = vpop.permute.xlu0 %1036 }
 0x16c   : > { %v4971_v58 = vsel %vm597_vm2, 0, %v1037_v57  ;;  %v1039_v59 = vpop.permute.xlu1 %1038 }
 0x16d   : > { %v1157_v60 = vmul.bf16 %v1149_v41, %v4971_v58  ;;  %v1107_v61 = vmul.bf16 %v1099_v39, %v4971_v58  ;;  %v1258_v0 = vmul.bf16 %v1251_v46, %v4971_v58  ;;  %v1209_v1 = vmul.bf16 %v1201_v43, %v4971_v58 }
 0x16e   : > { %v1360_v6 = vmul.bf16 %v4958_v50, %v4971_v58  ;;  %v1310_v9 = vmul.bf16 %v4954_v48, %v4971_v58  ;;  %v4986_v10 = vsel %vm597_vm2, %v1039_v59, 0  ;;  %v1412_v19 = vmul.bf16 %v4962_v51, %v4971_v58 }
 0x16f   : > { %1163 = vrot.lane.b32.xlu1 %v1157_v60, %s6263_s29  ;;  %1113 = vrot.lane.b32.xlu0 %v1107_v61, %s6265_s22  ;;  %v647_v62 = vpop.permute.xlu0 %646  ;;  %v1109_v17 = vmul.bf16 %v1101_v40, %v4986_v10  ;;  %v4994_v20 = vsel %vm597_vm2, %v1037_v57, %v1039_v59  ;;  %v1211_v33 = vmul.bf16 %v1203_v44, %v4986_v10 }
 0x170   : > { %v684_v63 = vpop.permute.xlu1 %683  ;;  %v1158_v29 = vmul.bf16 %v1153_v27, %v4994_v20  ;;  %v1108_v30 = vmul.bf16 %v1103_v22, %v4994_v20  ;;  %v1159_v34 = vmul.bf16 %v1151_v42, %v4986_v10  ;;  %v610_v39 = vrot.slane %v605_v7, %v4803_v45 }
 0x171   : > { %v1259_v41 = vmul.bf16 %v1254_v38, %v4994_v20  ;;  %v1210_v42 = vmul.bf16 %v1205_v36, %v4994_v20  ;;  %v614_v57 = vrot.slane %v606_v8, %v4803_v45  ;;  %v649_v7 = vsel %vm648_vm10, %v643_v55, %v645_v56  ;;  %v5066_v36 = vpop.f32.mrb[8].mxu0 }
 0x172   : > { %v615_v44 = vmul.f32 %v610_v39, %v4874_v11  ;;  %v650_v59 = vsel %vm648_vm10, %v645_v56, %v647_v62  ;;  %v1312_v60 = vmul.bf16 %v4956_v49, %v4986_v10  ;;  %v1260_v4 = vmul.bf16 %v4952_v47, %v4986_v10 }
 0x173   : > { %1264 = vrot.lane.b32.xlu1 %v1258_v0, %s6250_s17  ;;  %1215 = vrot.lane.b32.xlu0 %v1209_v1, %s6252_s16  ;;  %v686_v3 = vpop.permute.xlu0 %685  ;;  %v616_v8 = vmul.f32 %v614_v57, %v4877_v18  ;;  %v1306_v11 = vsel %vm788_vm6, %v4954_v48, %v4956_v49  ;;  %v1356_v47 = vsel %vm6249_vm7, %v4958_v50, %v4960_v37  ;;  %vm6269_vm7 = vcmask 777216  }
 0x174   : > { %v688_v5 = vpop.permute.xlu1 %687  ;;  %v690_v61 = vsel %vm689_vm11, %v684_v63, %v686_v3  ;;  %v653_v0 = vadd.f32 %v649_v7, %v615_v44  ;;  %v1361_v49 = vmul.bf16 %v1356_v47, %v4994_v20  ;;  %v1414_v27 = vmul.bf16 %v4964_v52, %v4986_v10 }
 0x175   : > { %v691_v55 = vsel %vm689_vm11, %v686_v3, %v688_v5  ;;  %v654_v18 = vadd.f32 %v650_v59, %v616_v8  ;;  %v1311_v3 = vmul.bf16 %v1306_v11, %v4994_v20 }
 0x176   : > { %v694_v1 = vadd.f32 %v690_v61, %v653_v0 }
 0x177   : > { %1366 = vrot.lane.b32.xlu1 %v1360_v6, %s6257_s27  ;;  %1316 = vrot.lane.b32.xlu0 %v1310_v9, %s6261_s21  ;;  %v722_v15 = vpop.permute.xlu0 %721  ;;  %v695_v5 = vadd.f32 %v691_v55, %v654_v18  ;;  %v1462_v55 = vmul.bf16 %v4966_v53, %v4971_v58 }
 0x178   : > { %v724_v16 = vpop.permute.xlu1 %723 }
 0x179   : > { %v728_v62 = vsel %vm727_vm12, %v722_v15, %v724_v16 }
 0x17a   : > { %v732_v9 = vadd.f32 %v728_v62, %v694_v1 }
 0x17b   : > { %1117 = vrot.lane.b32.xlu1 %v1109_v17, %s6265_s22  ;;  %1418 = vrot.lane.b32.xlu0 %v1412_v19, %s6255_s28  ;;  %v726_v21 = vpop.permute.xlu0 %725 }
 0x17c   : > { %v762_v28 = vpop.permute.xlu1 %761  ;;  %v729_v48 = vsel %vm727_vm12, %v724_v16, %v726_v21 }
 0x17d   : > { %v733_v15 = vadd.f32 %v729_v48, %v695_v5  ;;  %v457_v48 = vld [vmem:[%s6237_s4 + $0x28] sm:$0xff] }
 0x17f   : > { %1165 = vrot.lane.b32.xlu1 %v1158_v29, %s6263_s29  ;;  %1115 = vrot.lane.b32.xlu0 %v1108_v30, %s6265_s22  ;;  %v764_v31 = vpop.permute.xlu0 %763  ;;  %v1050_v29 = vld [vmem:[%s6234_s1] sm:$0x11]  ;;  %v1408_v30 = vsel %vm6254_vm8, %v4962_v51, %v4964_v52  ;;  %vm6270_vm8 = vcmask 769024   ;;  %s6271_s22 = smov 33  }
 0x180   : > { %v766_v32 = vpop.permute.xlu1 %765  ;;  %v768_v6 = vsel %vm767_vm13, %v762_v28, %v764_v31  ;;  %v1362_v28 = vmul.bf16 %v4960_v37, %v4986_v10  ;;  %v4181_v39 = vcombine.high %v1050_v29, %v1050_v29 }
 0x181   : > { %v769_v17 = vsel %vm767_vm13, %v764_v31, %v766_v32  ;;  %v772_v21 = vadd.f32 %v768_v6, %v732_v9 }
 0x182   : > { %v773_v31 = vadd.f32 %v769_v17, %v733_v15  ;;  %v1064_v11 = vpack.i.b16 %v4181_v39, %v4181_v39  ;;  %v1503_v17 = vld [vmem:[%s6241_s8 + $0x8] sm:$0xff]  ;;  %v4506_v15 = vld [vmem:[%s6238_s5] sm:$0xff]  }
 0x183   : > { %1219 = vrot.lane.b32.xlu1 %v1211_v33, %s6252_s16  ;;  %1167 = vrot.lane.b32.xlu0 %v1159_v34, %s6263_s29  ;;  %v800_v35 = vpop.permute.xlu0 %799  ;;  %v1458_v33 = vsel %vm6268_vm9, %v4966_v53, %v4968_v54  ;;  %v456_v53 = vld [vmem:[%s6237_s4 + $0x20] sm:$0xff]  ;;  %s4636_s29 = smov 68  }
 0x184   : > { %v802_v40 = vpop.permute.xlu1 %801  ;;  %v1463_v57 = vmul.bf16 %v1458_v33, %v4994_v20 }
 0x185   : > { %v806_v19 = vsel %vm805_vm14, %v800_v35, %v802_v40 }
 0x186   : > { %v810_v34 = vadd.f32 %v806_v19, %v772_v21  ;;  %v4510_v21 = vld [vmem:[%s6240_s7 + $0x4] ss:$8 sps:$4 sm:$0xff]  }
 0x187   : > { %1266 = vrot.lane.b32.xlu1 %v1259_v41, %s6250_s17  ;;  %1217 = vrot.lane.b32.xlu0 %v1210_v42, %s6252_s16  ;;  %v804_v43 = vpop.permute.xlu0 %803  ;;  %s4625_s16 = smov 35  }
 0x188   : > { %v841_v46 = vpop.permute.xlu1 %840  ;;  %v807_v22 = vsel %vm805_vm14, %v802_v40, %v804_v43  ;;  %v5069_v40 = vpop.f32.mrb[9].mxu0  ;;  %v1413_v43 = vmul.bf16 %v1408_v30, %v4994_v20 }
 0x189   : > { %v811_v38 = vadd.f32 %v807_v22, %v773_v31  ;;  %v5074_v44 = vpop.f32.mrb[10].mxu0 }
 0x18a   : > { %v5086_v1 = vpop.f32.mrb[11].mxu0 }
 0x18b   : > { %1320 = vrot.lane.b32.xlu1 %v1312_v60, %s6261_s21  ;;  %1268 = vrot.lane.b32.xlu0 %v1260_v4, %s6250_s17  ;;  %v843_v56 = vpop.permute.xlu0 %842  ;;  %v4180_v60 = vcombine.low %v1050_v29, %v1050_v29  ;;  %s4622_s17 = smov 4  }
 0x18c   : > { %v845_v63 = vpop.permute.xlu1 %844  ;;  %v847_v32 = vsel %vm846_vm15, %v841_v46, %v843_v56 }
 0x18d   : > { %v848_v35 = vsel %vm846_vm15, %v843_v56, %v845_v63  ;;  %v851_v41 = vadd.f32 %v847_v32, %v810_v34  ;;  %v1464_v56 = vmul.bf16 %v4968_v54, %v4986_v10  ;;  %v1057_v63 = vpack.i.b16 %v4180_v60, %v4180_v60 }
 0x18e   : > { %v852_v7 = vadd.f32 %v848_v35, %v811_v38  ;;  %v1069_v54 = vrot.slane %v1064_v11, %v4803_v45 }
 0x18f   : > { %1368 = vrot.lane.b32.xlu1 %v1361_v49, %s6257_s27  ;;  %1318 = vrot.lane.b32.xlu0 %v1311_v3, %s6261_s21  ;;  %v879_v50 = vpop.permute.xlu0 %878  ;;  %v1062_v6 = vrot.slane %v1057_v63, %v4803_v45  ;;  %s4624_s21 = smov 20  }
 0x190   : > { %v881_v16 = vpop.permute.xlu1 %880  ;;  %v1071_v9 = vmul.bf16 %v1069_v54, %v4994_v20  ;;  %v1504_v20 = vld [vmem:[%s6241_s8 + $0x10] sm:$0xff] }
 0x191   : > { %v885_v51 = vsel %vm6269_vm7, %v879_v50, %v881_v16  ;;  %v1502_v50 = vld [vmem:[%s6241_s8] sm:$0xff]  ;;  %v1070_v19 = vmul.bf16 %v1062_v6, %v4971_v58 }
 0x192   : > { %v889_v46 = vadd.f32 %v885_v51, %v851_v41  ;;  %v2678_v6 = vld [vmem:[%s6235_s2] sm:$0x11] }
 0x193   : > { %1422 = vrot.lane.b32.xlu1 %v1414_v27, %s6255_s28  ;;  %1370 = vrot.lane.b32.xlu0 %v1362_v28, %s6257_s27  ;;  %v883_v37 = vpop.permute.xlu0 %882  ;;  %s4621_s27 = smov 3  }
 0x194   : > { %v920_v52 = vpop.permute.xlu1 %919  ;;  %v886_v42 = vsel %vm6269_vm7, %v881_v16, %v883_v37  ;;  %v4507_v16 = vld [vmem:[%s6238_s5 + $0x8] ss:$0 sps:$4 sm:$0xff]  }
 0x195   : > { %v890_v4 = vadd.f32 %v886_v42, %v852_v7 }
 0x197   : > { %1470 = vrot.lane.b32.xlu1 %v1463_v57, %s6259_s15  ;;  %1420 = vrot.lane.b32.xlu0 %v1413_v43, %s6255_s28  ;;  %v922_v59 = vpop.permute.xlu0 %921  ;;  %s4638_s28 = smov 124  }
 0x198   : > { %v926_v8 = vsel %vm6270_vm8, %v920_v52, %v922_v59  ;;  %v924_v61 = vpop.permute.xlu1 %923 }
 0x199   : > { %v927_v0 = vsel %vm6270_vm8, %v922_v59, %v924_v61  ;;  %v930_v47 = vadd.f32 %v926_v8, %v889_v46 }
 0x19a   : > { %v931_v18 = vadd.f32 %v927_v0, %v890_v4 }
 0x19b   : > { %1468 = vrot.lane.b32.xlu1 %v1462_v55, %s6259_s15  ;;  %1472 = vrot.lane.b32.xlu0 %v1464_v56, %s6259_s15  ;;  %v932_v62 = vmul.f32 0.11111111, %v930_v47  ;;  %s4623_s15 = smov 19  }
 0x19c   : > { %v933_v49 = vmul.f32 0.11111111, %v931_v18 }
 0x19d   : > { %v934_v10 = vpack.c.bf16 %v932_v62, %v932_v62 }
 0x19e   : > { %v935_v3 = vpack.c.bf16 %v933_v49, %v933_v49  ;;  %v1483_v49 = vld [vmem:[%s6240_s7 + $0x10] sm:$0xff] }
 0x19f   : > { %485 = vperm.xlu1 %4484, %v457_v48   ;;  %480 = vperm.xlu0 %4443, %v456_v53   ;;  %v972_v5 = vsel %vm6267_vm0, %v934_v10, 0 }
 0x1a0   : > { %4177 = vmatprep.subr.msk.bf16.mxu1 %vm6267_vm0, %v935_v3  ;;  %v4508_v3 = vld [vmem:[%s6240_s7] ss:$8 sps:$4 sm:$0xff]   ;;  %vm2804_vm0 = vcmask 23552  }
 0x1a1   : > { %978 = vmatpush1.bf16.msra.mxu1 %v972_v5  ;;  %v4201_v5 = vcombine.high %v1483_v49, %v1483_v49 }
 0x1a2   : > { %1541 = vmatprep.subr.bf16.mxu1 %v1071_v9  ;;  %v4311_v9 = vcombine.high %v2678_v6, %v2678_v6 }
 0x1a3   : > { %1512 = vperm.xlu1 %4484, %v1503_v17   ;;  %1507 = vperm.xlu0 %4443, %v1502_v50   ;;  %v4310_v17 = vcombine.low %v2678_v6, %v2678_v6  ;;  %v4200_v50 = vcombine.low %v1483_v49, %v1483_v49  ;;  %v3026_v6 = vld [vmem:[%s6235_s2 + $0x8] sm:$0x11] }
 0x1a4   : > { %4178 = vmatmul.mubr.msk.bf16.vlgmr.msra.gmra.mrb[0].mxu1 %vm503_vm1, %v4506_v15  ;;  %v2693_v15 = vshrl.u32 %v4311_v9, 16 }
 0x1a5   : > { %1542 = vmatpush1.bf16.msra.mxu1 %v1070_v19  ;;  %1019 = vmatprep.mubr.bf16.mxu1 %v4604_v2  ;;  %v2685_v19 = vshrl.u32 %v4310_v17, 16 }
 0x1a7   : > { %1517 = vperm.xlu0 %4443, %v1504_v20   ;;  %v2728_v20 = vld [vmem:[%s6235_s2] sm:$0x22] }
 0x1ac   : > { %4179 = vmatmul.mubr.msk.bf16.gmra.mrb[4].mxu1 %vm503_vm1, %v4507_v16  ;;  %v2776_v16 = vld [vmem:[%s6235_s2] sm:$0x22]  ;;  %vm2854_vm1 = vcmask 31744  }
 0x1ad   : > { %4202 = vmatprep.mubr.msk.bf16.mxu1 %vm710_vm5, %v4510_v21  ;;  %v2694_v21 = vpack.i.b16 %v2693_v15, %v2693_v15 }
 0x1e1   : > { %v1164_v58 = vpop.permute.xlu1 %1163  ;;  %v1114_v22 = vpop.permute.xlu0 %1113 }
 0x1e5   : > { %v1265_v27 = vpop.permute.xlu1 %1264  ;;  %v1216_v28 = vpop.permute.xlu0 %1215 }
 0x1e9   : > { %v1367_v29 = vpop.permute.xlu1 %1366  ;;  %v1317_v30 = vpop.permute.xlu0 %1316 }
 0x1ed   : > { %v1118_v2 = vpop.permute.xlu1 %1117  ;;  %v1419_v31 = vpop.permute.xlu0 %1418 }
 0x1f1   : > { %v1166_v32 = vpop.permute.xlu1 %1165  ;;  %v1116_v33 = vpop.permute.xlu0 %1115 }
 0x1f2   : > { %v1121_v34 = vsel %vm648_vm10, %v1116_v33, %v1118_v2  ;;  %v1120_v35 = vsel %vm648_vm10, %v1114_v22, %v1116_v33  ;;  %v1170_v52 = vsel %vm689_vm11, %v1164_v58, %v1166_v32  ;;  %v4313_v58 = vcombine.high %v2728_v20, %v2728_v20 }
 0x1f3   : > { %1543 = vmatprep.subr.bf16.mxu1 %v1121_v34  ;;  %v4314_v2 = vcombine.low %v2776_v16, %v2776_v16 }
 0x1f4   : > { %1544 = vmatpush1.bf16.msra.mxu1 %v1120_v35 }
 0x1f5   : > { %v1220_v37 = vpop.permute.xlu1 %1219  ;;  %v1168_v38 = vpop.permute.xlu0 %1167 }
 0x1f6   : > { %v1171_v51 = vsel %vm689_vm11, %v1166_v32, %v1168_v38  ;;  %v2699_v38 = vrot.slane %v2694_v21, %v4803_v45  ;;  %v4324_v21 = vcombine.low %v3026_v6, %v3026_v6 }
 0x1f7   : > { %1545 = vmatprep.subr.bf16.mxu1 %v1171_v51  ;;  %v2742_v51 = vpack.i.b16 %v4313_v58, %v4313_v58 }
 0x1f8   : > { %1546 = vmatpush1.bf16.msra.mxu1 %v1170_v52  ;;  %v2828_v52 = vld [vmem:[%s6235_s2] sm:$0x44] }
 0x1f9   : > { %v1267_v39 = vpop.permute.xlu1 %1266  ;;  %v1218_v41 = vpop.permute.xlu0 %1217 }
 0x1fa   : > { %v1223_v42 = vsel %vm727_vm12, %v1218_v41, %v1220_v37  ;;  %v1222_v57 = vsel %vm727_vm12, %v1216_v28, %v1218_v41  ;;  %v1271_v59 = vsel %vm767_vm13, %v1265_v27, %v1267_v39  ;;  %v2686_v28 = vpack.i.b16 %v2685_v19, %v2685_v19  ;;  %v3076_v19 = vld [vmem:[%s6235_s2 + $0x8] sm:$0x11] }
 0x1fb   : > { %1547 = vmatprep.subr.bf16.mxu1 %v1223_v42  ;;  %v4317_v41 = vcombine.high %v2828_v52, %v2828_v52  ;;  %v2747_v42 = vrot.slane %v2742_v51, %v4762_v12  ;;  %v4327_v58 = vcombine.high %v3076_v19, %v3076_v19 }
 0x1fc   : > { %1548 = vmatpush1.bf16.msra.mxu1 %v1222_v57  ;;  %v4316_v57 = vcombine.low %v2828_v52, %v2828_v52 }
 0x1fd   : > { %v1321_v43 = vpop.permute.xlu1 %1320  ;;  %v1269_v7 = vpop.permute.xlu0 %1268 }
 0x1fe   : > { %v1272_v46 = vsel %vm767_vm13, %v1267_v39, %v1269_v7 }
 0x1ff   : > { %1549 = vmatprep.subr.bf16.mxu1 %v1272_v46 }
 0x200   : > { %1550 = vmatpush1.bf16.msra.mxu1 %v1271_v59 }
 0x201   : > { %v1369_v60 = vpop.permute.xlu1 %1368  ;;  %v1319_v4 = vpop.permute.xlu0 %1318 }
 0x202   : > { %v1324_v8 = vsel %vm805_vm14, %v1319_v4, %v1321_v43  ;;  %v1323_v61 = vsel %vm805_vm14, %v1317_v30, %v1319_v4  ;;  %v1373_v56 = vsel %vm846_vm15, %v1367_v29, %v1369_v60  ;;  %v4312_v29 = vcombine.low %v2728_v20, %v2728_v20 }
 0x203   : > { %1551 = vmatprep.subr.bf16.mxu1 %v1324_v8  ;;  %v4315_v30 = vcombine.high %v2776_v16, %v2776_v16  ;;  %v2842_v4 = vpack.i.b16 %v4317_v41, %v4317_v41  ;;  %v2835_v8 = vpack.i.b16 %v4316_v57, %v4316_v57  ;;  %v4325_v20 = vcombine.high %v3026_v6, %v3026_v6 }
 0x204   : > { %1552 = vmatpush1.bf16.msra.mxu1 %v1323_v61 }
 0x205   : > { %v1423_v11 = vpop.permute.xlu1 %1422  ;;  %v1371_v0 = vpop.permute.xlu0 %1370  ;;  %v2791_v39 = vshrl.u32 %v4315_v30, 16  ;;  %v3040_v30 = vpack.i.b16 %v4325_v20, %v4325_v20  ;;  %v1844_v20 = vld [vmem:[%s6234_s1] sm:$0x22] }
 0x206   : > { %v1374_v55 = vsel %vm846_vm15, %v1369_v60, %v1371_v0 }
 0x207   : > { %1553 = vmatprep.subr.bf16.mxu1 %v1374_v55  ;;  %v2792_v59 = vpack.i.b16 %v2791_v39, %v2791_v39  ;;  %v3176_v39 = vld [vmem:[%s6235_s2 + $0x8] sm:$0x22] }
 0x208   : > { %1554 = vmatpush1.bf16.msra.mxu1 %v1373_v56  ;;  %v2928_v56 = vld [vmem:[%s6235_s2] sm:$0x88] }
 0x209   : > { %v1471_v47 = vpop.permute.xlu1 %1470  ;;  %v1421_v18 = vpop.permute.xlu0 %1420  ;;  %v2797_v0 = vrot.slane %v2792_v59, %v4762_v12  ;;  %v4320_v49 = vcombine.low %v2928_v56, %v2928_v56 }
 0x20a   : > { %v1426_v62 = vsel %vm6269_vm7, %v1421_v18, %v1423_v11  ;;  %v1425_v63 = vsel %vm6269_vm7, %v1419_v31, %v1421_v18  ;;  %v2847_v18 = vrot.slane %v2842_v4, %v4765_v13 }
 0x20b   : > { %1555 = vmatprep.subr.bf16.mxu1 %v1426_v62  ;;  %v2840_v62 = vrot.slane %v2835_v8, %v4765_v13  ;;  %v2935_v17 = vpack.i.b16 %v4320_v49, %v4320_v49 }
 0x20c   : > { %1556 = vmatpush1.bf16.msra.mxu1 %v1425_v63 }
 0x20d   : > { %v1469_v48 = vpop.permute.xlu1 %1468  ;;  %v1473_v53 = vpop.permute.xlu0 %1472 }
 0x20e   : > { %v1475_v54 = vsel %vm6270_vm8, %v1469_v48, %v1471_v47  ;;  %v1476_v10 = vsel %vm6270_vm8, %v1471_v47, %v1473_v53  ;;  %v2976_v47 = vld [vmem:[%s6235_s2] sm:$0x88]  ;;  %v4321_v53 = vcombine.high %v2928_v56, %v2928_v56 }
 0x20f   : > { %1557 = vmatprep.subr.bf16.mxu1 %v1476_v10  ;;  %v4322_v10 = vcombine.low %v2976_v47, %v2976_v47 }
 0x210   : > { %1558 = vmatpush1.bf16.msra.mxu1 %v1475_v54  ;;  %v4323_v54 = vcombine.high %v2976_v47, %v2976_v47  ;;  %v3226_v47 = vld [vmem:[%s6235_s2 + $0x8] sm:$0x44] }
 0x211   : > { %v2983_v15 = vshrl.u32 %v4322_v10, 16  ;;  %v4332_v49 = vcombine.low %v3226_v47, %v3226_v47  ;;  %v3274_v10 = vld [vmem:[%s6235_s2 + $0x8] sm:$0x44] }
 0x213   : > { %1574 = vmatmul.mubr.bf16.vlgmr.msra.gmra.mrb[8].mxu1 %v4508_v3 }
 0x214   : > { %4203 = vmatprep.mubr.msk.bf16.mxu1 %vm710_vm5, %v4201_v5  ;;  %v2942_v5 = vpack.i.b16 %v4321_v53, %v4321_v53 }
 0x216   : > { %v2947_v16 = vrot.slane %v2942_v5, %v4768_v14 }
 0x21b   : > { %1584 = vmatmul.mubr.bf16.gmra.mrb[12].mxu1 %v4200_v50  ;;  %v2991_v50 = vshrl.u32 %v4323_v54, 16  ;;  %v1757_v54 = vld [vmem:[%s6234_s1] sm:$0x22] }
 0x21e   : > { %v486_v22 = vpop.permute.xlu1 %485  ;;  %v481_v27 = vpop.permute.xlu0 %480 }
 0x21f   : > { %v579_v31 = vadd.f32 %v5074_v44, %v486_v22  ;;  %v581_v32 = vadd.f32 %v5086_v1, %v486_v22  ;;  %v575_v33 = vadd.f32 %v5066_v36, %v481_v27  ;;  %v577_v34 = vadd.f32 %v5069_v40, %v481_v27  ;;  %v2878_v40 = vld [vmem:[%s6235_s2] sm:$0x44] }
 0x220   : > { %v2691_v44 = vrot.slane %v2686_v28, %v4803_v45  ;;  %v2735_v1 = vpack.i.b16 %v4312_v29, %v4312_v29  ;;  %v2783_v36 = vshrl.u32 %v4314_v2, 16  ;;  %v4319_v43 = vcombine.high %v2878_v40, %v2878_v40 }
 0x221   : > { %v590_v35 = vpack.c.bf16 %v581_v32, %v577_v34  ;;  %v589_v37 = vpack.c.bf16 %v579_v31, %v575_v33  ;;  %v4318_v7 = vcombine.low %v2878_v40, %v2878_v40  ;;  %v4326_v22 = vcombine.low %v3076_v19, %v3076_v19 }
 0x222   : > { %v2740_v46 = vrot.slane %v2735_v1, %v4762_v12  ;;  %v2784_v60 = vpack.i.b16 %v2783_v36, %v2783_v36  ;;  %v2893_v61 = vshrl.u32 %v4319_v43, 16  ;;  %v2940_v27 = vrot.slane %v2935_v17, %v4768_v14 }
 0x223   : > { %2644 = vrot.lane.b32.xlu0 %v590_v35, %s4612_s23  ;;  %2642 = vrot.lane.b32.xlu1 %v589_v37, %s4612_s23  ;;  %v2885_v11 = vshrl.u32 %v4318_v7, 16  ;;  %v2992_v28 = vpack.i.b16 %v2991_v50, %v2991_v50  ;;  %v2984_v29 = vpack.i.b16 %v2983_v15, %v2983_v15  ;;  %v3033_v2 = vpack.i.b16 %v4324_v21, %v4324_v21  ;;  %v3128_v35 = vld [vmem:[%s6235_s2 + $0x8] sm:$0x22]  ;;  %v1667_v37 = vld [vmem:[%s6234_s1] sm:$0x11] }
 0x224   : > { %v2789_v55 = vrot.slane %v2784_v60, %v4762_v12  ;;  %v2894_v63 = vpack.i.b16 %v2893_v61, %v2893_v61  ;;  %v3091_v31 = vshrl.u32 %v4327_v58, 16  ;;  %v3083_v32 = vshrl.u32 %v4326_v22, 16 }
 0x225   : > { %v2886_v48 = vpack.i.b16 %v2885_v11, %v2885_v11  ;;  %v2997_v33 = vrot.slane %v2992_v28, %v4768_v14  ;;  %v2989_v34 = vrot.slane %v2984_v29, %v4768_v14  ;;  %v3038_v51 = vrot.slane %v3033_v2, %v4803_v45 }
 0x226   : > { %v2899_v3 = vrot.slane %v2894_v63, %v4765_v13  ;;  %v3092_v52 = vpack.i.b16 %v3091_v31, %v3091_v31  ;;  %v4329_v1 = vcombine.high %v3128_v35, %v3128_v35  ;;  %v4328_v36 = vcombine.low %v3128_v35, %v3128_v35 }
 0x227   : > { %2704 = vrot.lane.b32.xlu0 %v2699_v38, %s4606_s18  ;;  %2702 = vrot.lane.b32.xlu1 %v2691_v44, %s4606_s18  ;;  %v2891_v9 = vrot.slane %v2886_v48, %v4765_v13  ;;  %v3045_v38 = vrot.slane %v3040_v30, %v4803_v45  ;;  %v3084_v44 = vpack.i.b16 %v3083_v32, %v3083_v32  ;;  %v3376_v32 = vld [vmem:[%s6235_s2 + $0x8] sm:$0x88] }
 0x228   : > { %v4210_v40 = vcombine.high %v1667_v37, %v1667_v37  ;;  %v4209_v41 = vcombine.low %v1667_v37, %v1667_v37  ;;  %v3097_v57 = vrot.slane %v3092_v52, %v4803_v45  ;;  %v3142_v43 = vpack.i.b16 %v4329_v1, %v4329_v1 }
 0x229   : > { %v4330_v7 = vcombine.low %v3176_v39, %v3176_v39  ;;  %v3135_v59 = vpack.i.b16 %v4328_v36, %v4328_v36  ;;  %v4333_v63 = vcombine.high %v3226_v47, %v3226_v47  ;;  %v4335_v17 = vcombine.high %v3274_v10, %v3274_v10  ;;  %v2020_v47 = vld [vmem:[%s6234_s1] sm:$0x44] }
 0x22a   : > { %v1682_v60 = vshrl.u32 %v4210_v40, 16  ;;  %v1674_v4 = vshrl.u32 %v4209_v41, 16  ;;  %v3147_v61 = vrot.slane %v3142_v43, %v4762_v12  ;;  %v3233_v50 = vpack.i.b16 %v4332_v49, %v4332_v49 }
 0x22b   : > { %2752 = vrot.lane.b32.xlu0 %v2747_v42, %s4607_s19  ;;  %2750 = vrot.lane.b32.xlu1 %v2740_v46, %s4607_s19  ;;  %v4331_v42 = vcombine.high %v3176_v39, %v3176_v39  ;;  %v3089_v46 = vrot.slane %v3084_v44, %v4803_v45  ;;  %v3183_v11 = vshrl.u32 %v4330_v7, 16  ;;  %v3240_v6 = vpack.i.b16 %v4333_v63, %v4333_v63 }
 0x22c   : > { %v1675_v56 = vpack.i.b16 %v1674_v4, %v1674_v4  ;;  %v4217_v15 = vcombine.low %v1757_v54, %v1757_v54  ;;  %v4334_v19 = vcombine.low %v3274_v10, %v3274_v10  ;;  %v3289_v58 = vshrl.u32 %v4335_v17, 16 }
 0x22d   : > { %v3191_v8 = vshrl.u32 %v4331_v42, 16  ;;  %v4226_v22 = vcombine.high %v1844_v20, %v1844_v20  ;;  %v4225_v30 = vcombine.low %v1844_v20, %v1844_v20  ;;  %v4338_v39 = vcombine.low %v3376_v32, %v3376_v32 }
 0x22e   : > { %v1680_v53 = vrot.slane %v1675_v56, %v4803_v45  ;;  %v1764_v28 = vpack.i.b16 %v4217_v15, %v4217_v15  ;;  %v3281_v29 = vshrl.u32 %v4334_v19, 16  ;;  %v3290_v2 = vpack.i.b16 %v3289_v58, %v3289_v58  ;;  %v3428_v56 = vld [vmem:[%s6235_s2 + $0x10] sm:$0x11]  ;;  %v3530_v58 = vld [vmem:[%s6235_s2 + $0x10] sm:$0x22] }
 0x22f   : > { %2802 = vrot.lane.b32.xlu0 %v2797_v0, %s4621_s27  ;;  %2800 = vrot.lane.b32.xlu1 %v2789_v55, %s4621_s27  ;;  %v3140_v0 = vrot.slane %v3135_v59, %v4762_v12  ;;  %v1683_v55 = vpack.i.b16 %v1682_v60, %v1682_v60  ;;  %v1859_v31 = vshrl.u32 %v4226_v22, 16  ;;  %v1851_v37 = vshrl.u32 %v4225_v30, 16  ;;  %v1933_v60 = vld [vmem:[%s6234_s1] sm:$0x44]  ;;  %s4637_s27 = smov 125  }
 0x230   : > { %v3282_v35 = vpack.i.b16 %v3281_v29, %v3281_v29  ;;  %v3295_v52 = vrot.slane %v3290_v2, %v4765_v13  ;;  %v3383_v43 = vshrl.u32 %v4338_v39, 16  ;;  %v4340_v49 = vcombine.low %v3428_v56, %v3428_v56 }
 0x231   : > { %v1688_v48 = vrot.slane %v1683_v55, %v4803_v45  ;;  %v1860_v44 = vpack.i.b16 %v1859_v31, %v1859_v31  ;;  %v1852_v40 = vpack.i.b16 %v1851_v37, %v1851_v37  ;;  %v4241_v10 = vcombine.low %v2020_v47, %v2020_v47  ;;  %v3580_v37 = vld [vmem:[%s6235_s2 + $0x10] sm:$0x22] }
 0x232   : > { %v3287_v36 = vrot.slane %v3282_v35, %v4765_v13  ;;  %v4345_v30 = vcombine.high %v3530_v58, %v3530_v58  ;;  %v4344_v31 = vcombine.low %v3530_v58, %v3530_v58  ;;  %v2109_v35 = vld [vmem:[%s6234_s1] sm:$0x88] }
 0x233   : > { %2852 = vrot.lane.b32.xlu0 %v2847_v18, %s4622_s17  ;;  %2850 = vrot.lane.b32.xlu1 %v2840_v62, %s4622_s17  ;;  %v3192_v18 = vpack.i.b16 %v3191_v8, %v3191_v8  ;;  %v3184_v62 = vpack.i.b16 %v3183_v11, %v3183_v11  ;;  %v1857_v7 = vrot.slane %v1852_v40, %v4762_v12  ;;  %v2027_v19 = vshrl.u32 %v4241_v10, 16  ;;  %s6276_s17 = smov 110  }
 0x234   : > { %v3384_v8 = vpack.i.b16 %v3383_v43, %v3383_v43  ;;  %v4233_v11 = vcombine.low %v1933_v60, %v1933_v60  ;;  %v4347_v40 = vcombine.high %v3580_v37, %v3580_v37 }
 0x235   : > { %v3189_v5 = vrot.slane %v3184_v62, %v4762_v12 }
 0x236   : > { %v3389_v62 = vrot.slane %v3384_v8, %v4768_v14 }
 0x237   : > { %2904 = vrot.lane.b32.xlu0 %v2899_v3, %s4608_s20  ;;  %2902 = vrot.lane.b32.xlu1 %v2891_v9, %s4608_s20  ;;  %v3197_v3 = vrot.slane %v3192_v18, %v4762_v12  ;;  %v4218_v9 = vcombine.high %v1757_v54, %v1757_v54  ;;  %v4242_v54 = vcombine.high %v2020_v47, %v2020_v47  ;;  %v3632_v47 = vld [vmem:[%s6235_s2 + $0x10] sm:$0x44] }
 0x238   : > { %v4349_v10 = vcombine.high %v3632_v47, %v3632_v47 }
 0x239   : > { %v1771_v21 = vpack.i.b16 %v4218_v9, %v4218_v9  ;;  %v2035_v15 = vshrl.u32 %v4242_v54, 16 }
 0x23b   : > { %2952 = vrot.lane.b32.xlu0 %v2947_v16, %s4605_s24  ;;  %2950 = vrot.lane.b32.xlu1 %v2940_v27, %s4605_s24  ;;  %v3245_v16 = vrot.slane %v3240_v6, %v4765_v13  ;;  %v3238_v27 = vrot.slane %v3233_v50, %v4765_v13  ;;  %v3435_v50 = vpack.i.b16 %v4340_v49, %v4340_v49 }
 0x23d   : > { %v3440_v22 = vrot.slane %v3435_v50, %v4803_v45 }
 0x23f   : > { %3002 = vrot.lane.b32.xlu0 %v2997_v33, %s4609_s30  ;;  %3000 = vrot.lane.b32.xlu1 %v2989_v34, %s4609_s30  ;;  %v1776_v33 = vrot.slane %v1771_v21, %v4762_v12  ;;  %v1769_v34 = vrot.slane %v1764_v28, %v4762_v12  ;;  %v2028_v28 = vpack.i.b16 %v2027_v19, %v2027_v19 }
 0x243   : > { %3050 = vrot.lane.b32.xlu0 %v3045_v38, %s4623_s15  ;;  %3048 = vrot.lane.b32.xlu1 %v3038_v51, %s4623_s15  ;;  %v3326_v38 = vld [vmem:[%s6235_s2 + $0x8] sm:$0x88]  ;;  %v4339_v51 = vcombine.high %v3376_v32, %v3376_v32  ;;  %s4630_s15 = smov 51  }
 0x244   : > { %v4337_v1 = vcombine.high %v3326_v38, %v3326_v38  ;;  %v4336_v41 = vcombine.low %v3326_v38, %v3326_v38  ;;  %v3544_v38 = vpack.i.b16 %v4345_v30, %v4345_v30 }
 0x245   : > { %v3391_v42 = vshrl.u32 %v4339_v51, 16 }
 0x246   : > { %v3333_v59 = vpack.i.b16 %v4336_v41, %v4336_v41 }
 0x247   : > { %3102 = vrot.lane.b32.xlu0 %v3097_v57, %s4624_s21  ;;  %3100 = vrot.lane.b32.xlu1 %v3089_v46, %s4624_s21  ;;  %v1865_v57 = vrot.slane %v1860_v44, %v4762_v12  ;;  %v3340_v46 = vpack.i.b16 %v4337_v1, %v4337_v1  ;;  %v3392_v4 = vpack.i.b16 %v3391_v42, %v3391_v42  ;;  %v2196_v42 = vld [vmem:[%s6234_s1] sm:$0x88]  ;;  %s6277_s21 = smov 96  }
 0x248   : > { %v3338_v55 = vrot.slane %v3333_v59, %v4768_v14  ;;  %v4250_v44 = vcombine.high %v2109_v35, %v2109_v35  ;;  %v4346_v1 = vcombine.low %v3580_v37, %v3580_v37  ;;  %v5341_v37 = vpop.permute.xlu0 %1507 }
 0x249   : > { %v3397_v18 = vrot.slane %v3392_v4, %v4768_v14 }
 0x24a   : > { %v2123_v59 = vpack.i.b16 %v4250_v44, %v4250_v44 }
 0x24b   : > { %3152 = vrot.lane.b32.xlu0 %v3147_v61, %s4610_s14  ;;  %3150 = vrot.lane.b32.xlu1 %v3140_v0, %s4610_s14  ;;  %v4234_v61 = vcombine.high %v1933_v60, %v1933_v60  ;;  %v3345_v0 = vrot.slane %v3340_v46, %v4768_v14  ;;  %v3587_v60 = vshrl.u32 %v4346_v1, 16 }
 0x24d   : > { %v1947_v63 = vpack.i.b16 %v4234_v61, %v4234_v61  ;;  %v3595_v61 = vshrl.u32 %v4347_v40, 16 }
 0x24f   : > { %1693 = vrot.lane.b32.xlu0 %v1688_v48, %s4606_s18  ;;  %1691 = vrot.lane.b32.xlu1 %v1680_v53, %s4606_s18  ;;  %v1940_v48 = vpack.i.b16 %v4233_v11, %v4233_v11  ;;  %v4341_v53 = vcombine.high %v3428_v56, %v3428_v56  ;;  %v4257_v11 = vcombine.low %v2196_v42, %v2196_v42  ;;  %s4631_s18 = smov 52  }
 0x250   : > { %v3588_v56 = vpack.i.b16 %v3587_v60, %v3587_v60 }
 0x251   : > { %v1945_v6 = vrot.slane %v1940_v48, %v4765_v13  ;;  %v3442_v9 = vpack.i.b16 %v4341_v53, %v4341_v53  ;;  %v3681_v53 = vld [vmem:[%s6235_s2 + $0x10] sm:$0x44] }
 0x253   : > { %3202 = vrot.lane.b32.xlu0 %v3197_v3, %s6271_s22  ;;  %3200 = vrot.lane.b32.xlu1 %v3189_v5, %s6271_s22  ;;  %v3478_v3 = vld [vmem:[%s6235_s2 + $0x10] sm:$0x11]  ;;  %v1952_v5 = vrot.slane %v1947_v63, %v4765_v13  ;;  %v2203_v63 = vshrl.u32 %v4257_v11, 16 }
 0x254   : > { %v4342_v17 = vcombine.low %v3478_v3, %v3478_v3  ;;  %v4343_v20 = vcombine.high %v3478_v3, %v3478_v3 }
 0x255   : > { %v2204_v19 = vpack.i.b16 %v2203_v63, %v2203_v63  ;;  %v3835_v63 = vld [vmem:[%s6235_s2 + $0x18] sm:$0x11] }
 0x256   : > { %v3485_v21 = vshrl.u32 %v4342_v17, 16  ;;  %v3493_v29 = vshrl.u32 %v4343_v20, 16  ;;  %v4351_v17 = vcombine.high %v3681_v53, %v3681_v53 }
 0x257   : > { %3250 = vrot.lane.b32.xlu0 %v3245_v16, %s4612_s23  ;;  %3248 = vrot.lane.b32.xlu1 %v3238_v27, %s4612_s23  ;;  %v3447_v16 = vrot.slane %v3442_v9, %v4803_v45  ;;  %v2036_v27 = vpack.i.b16 %v2035_v15, %v2035_v15  ;;  %v4350_v9 = vcombine.low %v3681_v53, %v3681_v53 }
 0x258   : > { %v3486_v2 = vpack.i.b16 %v3485_v21, %v3485_v21 }
 0x259   : > { %v2041_v32 = vrot.slane %v2036_v27, %v4765_v13  ;;  %v3688_v58 = vshrl.u32 %v4350_v9, 16  ;;  %v2209_v27 = vrot.slane %v2204_v19, %v4768_v14 }
 0x25a   : > { %v3491_v51 = vrot.slane %v3486_v2, %v4803_v45 }
 0x25b   : > { %1781 = vrot.lane.b32.xlu0 %v1776_v33, %s4607_s19  ;;  %1779 = vrot.lane.b32.xlu1 %v1769_v34, %s4607_s19  ;;  %s4628_s19 = smov 49   ;;  %v2033_v33 = vrot.slane %v2028_v28, %v4765_v13  ;;  %v3494_v34 = vpack.i.b16 %v3493_v29, %v3493_v29  ;;  %v2285_v29 = vld [vmem:[%s6234_s1 + $0x8] sm:$0x11] }
 0x25d   : > { %v3499_v39 = vrot.slane %v3494_v34, %v4803_v45  ;;  %v3733_v34 = vld [vmem:[%s6235_s2 + $0x10] sm:$0x88] }
 0x25e   : > { %v4353_v44 = vcombine.high %v3733_v34, %v3733_v34  ;;  %v4352_v1 = vcombine.low %v3733_v34, %v3733_v34 }
 0x25f   : > { %3300 = vrot.lane.b32.xlu0 %v3295_v52, %s4625_s16  ;;  %3298 = vrot.lane.b32.xlu1 %v3287_v36, %s4625_s16  ;;  %s4627_s16 = smov 48   ;;  %v3537_v52 = vpack.i.b16 %v4344_v31, %v4344_v31  ;;  %v4249_v36 = vcombine.low %v2109_v35, %v2109_v35  ;;  %v3689_v31 = vpack.i.b16 %v3688_v58, %v3688_v58  ;;  %v3783_v35 = vld [vmem:[%s6235_s2 + $0x10] sm:$0x88] }
 0x260   : > { %v3747_v11 = vpack.i.b16 %v4353_v44, %v4353_v44 }
 0x261   : > { %v3542_v46 = vrot.slane %v3537_v52, %v4762_v12  ;;  %v2116_v8 = vpack.i.b16 %v4249_v36, %v4249_v36  ;;  %v3694_v36 = vrot.slane %v3689_v31, %v4765_v13 }
 0x263   : > { %1870 = vrot.lane.b32.xlu0 %v1865_v57, %s4608_s20  ;;  %1868 = vrot.lane.b32.xlu1 %v1857_v7, %s4608_s20  ;;  %s4626_s20 = smov 36   ;;  %v3549_v7 = vrot.slane %v3544_v38, %v4762_v12  ;;  %v4266_v38 = vcombine.high %v2285_v29, %v2285_v29 }
 0x267   : > { %3350 = vrot.lane.b32.xlu0 %v3345_v0, %s4626_s20  ;;  %3348 = vrot.lane.b32.xlu1 %v3338_v55, %s4626_s20  ;;  %v4258_v0 = vcombine.high %v2196_v42, %v2196_v42  ;;  %v2128_v55 = vrot.slane %v2123_v59, %v4768_v14  ;;  %s6272_s20 = smov 127  }
 0x269   : > { %v2211_v48 = vshrl.u32 %v4258_v0, 16  ;;  %v3740_v0 = vpack.i.b16 %v4352_v1, %v4352_v1 }
 0x26b   : > { %3402 = vrot.lane.b32.xlu0 %v3397_v18, %s4627_s16  ;;  %3400 = vrot.lane.b32.xlu1 %v3389_v62, %s4627_s16  ;;  %v2121_v18 = vrot.slane %v2116_v8, %v4768_v14  ;;  %v3596_v62 = vpack.i.b16 %v3595_v61, %v3595_v61  ;;  %v2212_v20 = vpack.i.b16 %v2211_v48, %v2211_v48  ;;  %v5349_v8 = vpop.permute.xlu1 %1512  ;;  %v5351_v61 = vpop.permute.xlu0 %1517  ;;  %s6275_s16 = smov 111  }
 0x26d   : > { %v3601_v15 = vrot.slane %v3596_v62, %v4762_v12  ;;  %v2217_v28 = vrot.slane %v2212_v20, %v4768_v14  ;;  %v4356_v20 = vcombine.low %v3835_v63, %v3835_v63 }
 0x26f   : > { %1957 = vrot.lane.b32.xlu0 %v1952_v5, %s4605_s24  ;;  %1955 = vrot.lane.b32.xlu1 %v1945_v6, %s4605_s24  ;;  %v3593_v5 = vrot.slane %v3588_v56, %v4762_v12  ;;  %v4348_v6 = vcombine.low %v3632_v47, %v3632_v47  ;;  %v2654_v12 = vld [vmem:[%s6235_s2] sm:$0x11] }
 0x270   : > { %v4309_v52 = vcombine.high %v2654_v12, %v2654_v12 }
 0x271   : > { %v3639_v21 = vpack.i.b16 %v4348_v6, %v4348_v6 }
 0x272   : > { %v2668_v60 = vpack.i.b16 %v4309_v52, %v4309_v52 }
 0x273   : > { %3452 = vrot.lane.b32.xlu0 %v3447_v16, %s4628_s19  ;;  %3450 = vrot.lane.b32.xlu1 %v3440_v22, %s4628_s19  ;;  %v3646_v16 = vpack.i.b16 %v4349_v10, %v4349_v10  ;;  %v3696_v22 = vshrl.u32 %v4351_v17, 16  ;;  %v3644_v2 = vrot.slane %v3639_v21, %v4765_v13  ;;  %v3752_v10 = vrot.slane %v3747_v11, %v4768_v14  ;;  %s4640_s19 = smov 108  }
 0x275   : > { %v3651_v30 = vrot.slane %v3646_v16, %v4765_v13 }
 0x277   : > { %2046 = vrot.lane.b32.xlu0 %v2041_v32, %s4609_s30  ;;  %2044 = vrot.lane.b32.xlu1 %v2033_v33, %s4609_s30  ;;  %v5296_v41 = vpop.f32.mrb[0].mxu1  ;;  %s4629_s30 = smov 50   ;;  %v3697_v32 = vpack.i.b16 %v3696_v22, %v3696_v22  ;;  %v4265_v33 = vcombine.low %v2285_v29, %v2285_v29 }
 0x278   : > { %v5301_v57 = vpop.f32.mrb[1].mxu1 }
 0x279   : > { %v5303_v43 = vpop.f32.mrb[2].mxu1  ;;  %v3702_v40 = vrot.slane %v3697_v32, %v4765_v13  ;;  %v2292_v42 = vpack.i.b16 %v4265_v33, %v4265_v33 }
 0x27a   : > { %v5307_v4 = vpop.f32.mrb[3].mxu1 }
 0x27b   : > { %3502 = vrot.lane.b32.xlu0 %v3491_v51, %s4629_s30  ;;  %3504 = vrot.lane.b32.xlu1 %v3499_v39, %s4629_s30  ;;  %v4308_v51 = vcombine.low %v2654_v12, %v2654_v12  ;;  %v4354_v39 = vcombine.low %v3783_v35, %v3783_v35  ;;  %v2297_v56 = vrot.slane %v2292_v42, %v4803_v45  ;;  %s6274_s30 = smov 112  }
 0x27d   : > { %v2661_v59 = vpack.i.b16 %v4308_v51, %v4308_v51 }
 0x27f   : > { %3554 = vrot.lane.b32.xlu0 %v3549_v7, %s4630_s15  ;;  %3552 = vrot.lane.b32.xlu1 %v3542_v46, %s4630_s15  ;;  %v5317_v49 = vpop.f32.mrb[4].mxu1  ;;  %v4355_v7 = vcombine.high %v3783_v35, %v3783_v35  ;;  %s4632_s15 = smov 64   ;;  %v2299_v46 = vpack.i.b16 %v4266_v38, %v4266_v38  ;;  %v2666_v62 = vrot.slane %v2661_v59, %v4803_v45 }
 0x280   : > { %v5319_v54 = vpop.f32.mrb[5].mxu1 }
 0x281   : > { %v1025_v3 = vpop.f32.mrb[6].mxu1  ;;  %v3798_v13 = vshrl.u32 %v4355_v7, 16  ;;  %v2304_v47 = vrot.slane %v2299_v46, %v4803_v45 }
 0x282   : > { %v1026_v50 = vpop.f32.mrb[7].mxu1  ;;  %v3745_v3 = vrot.slane %v3740_v0, %v4768_v14 }
 0x283   : > { %2133 = vrot.lane.b32.xlu0 %v2128_v55, %s4610_s14  ;;  %2131 = vrot.lane.b32.xlu1 %v2121_v18, %s4610_s14  ;;  %v3790_v55 = vshrl.u32 %v4354_v39, 16  ;;  %v2673_v18 = vrot.slane %v2668_v60, %v4803_v45  ;;  %v3799_v17 = vpack.i.b16 %v3798_v13, %v3798_v13  ;;  %v4357_v50 = vcombine.high %v3835_v63, %v3835_v63  ;;  %s6273_s14 = smov 126  }
 0x285   : > { %v3804_v22 = vrot.slane %v3799_v17, %v4768_v14 }
 0x287   : > { %3604 = vrot.lane.b32.xlu0 %v3593_v5, %s4631_s18  ;;  %3606 = vrot.lane.b32.xlu1 %v3601_v15, %s4631_s18  ;;  %v3791_v5 = vpack.i.b16 %v3790_v55, %v3790_v55  ;;  %s4634_s18 = smov 66  }
 0x289   : > { %v3796_v58 = vrot.slane %v3791_v5, %v4768_v14 }
 0x28b   : > { %2220 = vrot.lane.b32.xlu0 %v2209_v27, %s6271_s22  ;;  %2222 = vrot.lane.b32.xlu1 %v2217_v28, %s6271_s22  ;;  %s4633_s22 = smov 65   ;;  %v3849_v27 = vpack.i.b16 %v4357_v50, %v4357_v50  ;;  %v3842_v28 = vpack.i.b16 %v4356_v20, %v4356_v20 }
 0x28f   : > { %3656 = vrot.lane.b32.xlu0 %v3651_v30, %s4632_s15  ;;  %3654 = vrot.lane.b32.xlu1 %v3644_v2, %s4632_s15  ;;  %v3854_v30 = vrot.slane %v3849_v27, %v4803_v45  ;;  %v3847_v2 = vrot.slane %v3842_v28, %v4803_v45 }
 0x293   : > { %3705 = vrot.lane.b32.xlu0 %v3694_v36, %s4633_s22  ;;  %3707 = vrot.lane.b32.xlu1 %v3702_v40, %s4633_s22  ;;  %s4639_s22 = smov 109  }
 0x295   : > { %v2643_v48 = vpop.permute.xlu1 %2642  ;;  %v5360_v53 = vpop.permute.xlu0 %2644 }
 0x296   : > { %v5365_v6 = vsel %vm6268_vm9, 0, %v2643_v48  ;;  %v5369_v9 = vsel %vm6268_vm9, %v2643_v48, %v5360_v53 }
 0x297   : > { %2307 = vrot.lane.b32.xlu0 %v2297_v56, %s4612_s23  ;;  %2309 = vrot.lane.b32.xlu1 %v2304_v47, %s4612_s23  ;;  %v2675_v15 = vmul.bf16 %v2673_v18, %v5369_v9  ;;  %v2674_v19 = vmul.bf16 %v2666_v62, %v5365_v6  ;;  %s4635_s23 = smov 67   ;;  %v5442_v62 = vsel %vm6268_vm9, %v5360_v53, 0 }
 0x299   : > { %v5375_v16 = vpop.permute.xlu1 %2702  ;;  %3997 = vmatprep.subr.bf16.mxu0 %v2675_v15  ;;  %v5377_v21 = vpop.permute.xlu0 %2704 }
 0x29a   : > { %3998 = vmatpush1.bf16.msra.mxu0 %v2674_v19  ;;  %v2710_v14 = vmul.bf16 %v5375_v16, %v5365_v6  ;;  %v2706_v15 = vsel %vm631_vm3, %v5375_v16, %v5377_v21 }
 0x29b   : > { %3757 = vrot.lane.b32.xlu0 %v3752_v10, %s4634_s18  ;;  %3755 = vrot.lane.b32.xlu1 %v3745_v3, %s4634_s18  ;;  %v2712_v10 = vmul.bf16 %v5377_v21, %v5442_v62  ;;  %s6278_s18 = smov 95  }
 0x29d   : > { %v2751_v29 = vpop.permute.xlu1 %2750  ;;  %v5381_v12 = vpop.permute.xlu0 %2752 }
 0x29e   : > { %v2758_v33 = vmul.bf16 %v2751_v29, %v5365_v6  ;;  %v2754_v3 = vsel %vm672_vm4, %v2751_v29, %v5381_v12  ;;  %v2760_v28 = vmul.bf16 %v5381_v12, %v5442_v62 }
 0x29f   : > { %3807 = vrot.lane.b32.xlu0 %v3796_v58, %s4635_s23  ;;  %3809 = vrot.lane.b32.xlu1 %v3804_v22, %s4635_s23  ;;  %v2759_v50 = vmul.bf16 %v2754_v3, %v5369_v9  ;;  %v2711_v58 = vmul.bf16 %v2706_v15, %v5369_v9  ;;  %s6281_s23 = smov 94  }
 0x2a1   : > { %v5385_v31 = vpop.permute.xlu1 %2800  ;;  %v5387_v32 = vpop.permute.xlu0 %2802 }
 0x2a2   : > { %v2809_v38 = vmul.bf16 %v5385_v31, %v5365_v6  ;;  %v2811_v22 = vmul.bf16 %v5387_v32, %v5442_v62 }
 0x2a3   : > { %3859 = vrot.lane.b32.xlu0 %v3854_v30, %s4636_s29  ;;  %3857 = vrot.lane.b32.xlu1 %v3847_v2, %s4636_s29  ;;  %v2805_v30 = vsel %vm2804_vm0, %v5385_v31, %v5387_v32  ;;  %vm3052_vm0 = vcmask 154624   ;;  %s4641_s29 = smov 93  }
 0x2a5   : > { %v2851_v34 = vpop.permute.xlu1 %2850  ;;  %v5392_v35 = vpop.permute.xlu0 %2852 }
 0x2a6   : > { %v2859_v51 = vmul.bf16 %v2851_v34, %v5365_v6  ;;  %v2855_v27 = vsel %vm2854_vm1, %v2851_v34, %v5392_v35  ;;  %vm6279_vm1 = vcmask 261120  }
 0x2a7   : > { %2716 = vrot.lane.b32.xlu1 %v2710_v14, %s6272_s20  ;;  %2764 = vrot.lane.b32.xlu0 %v2758_v33, %s6273_s14  ;;  %v2860_v29 = vmul.bf16 %v2855_v27, %v5369_v9  ;;  %v2810_v33 = vmul.bf16 %v2805_v30, %v5369_v9 }
 0x2a9   : > { %v5399_v52 = vpop.permute.xlu1 %2902  ;;  %v5401_v44 = vpop.permute.xlu0 %2904 }
 0x2aa   : > { %v2910_v1 = vmul.bf16 %v5399_v52, %v5365_v6  ;;  %v2912_v34 = vmul.bf16 %v5401_v44, %v5442_v62 }
 0x2ab   : > { %2815 = vrot.lane.b32.xlu1 %v2809_v38, %s4637_s27  ;;  %2865 = vrot.lane.b32.xlu0 %v2859_v51, %s4638_s28  ;;  %v2861_v38 = vmul.bf16 %v5392_v35, %v5442_v62 }
 0x2ad   : > { %v2951_v39 = vpop.permute.xlu1 %2950  ;;  %v5407_v36 = vpop.permute.xlu0 %2952 }
 0x2ae   : > { %v2958_v40 = vmul.bf16 %v2951_v39, %v5365_v6  ;;  %v2954_v12 = vsel %vm597_vm2, %v2951_v39, %v5407_v36 }
 0x2af   : > { %2916 = vrot.lane.b32.xlu1 %v2910_v1, %s6274_s30  ;;  %v2959_v51 = vmul.bf16 %v2954_v12, %v5369_v9  ;;  %v2906_v1 = vsel %vm710_vm5, %v5399_v52, %v5401_v44 }
 0x2b0   : > { %2964 = vrot.lane.b32.xlu0 %v2958_v40, %s6275_s16 }
 0x2b1   : > { %v5412_v42 = vpop.permute.xlu1 %3000  ;;  %v5414_v7 = vpop.permute.xlu0 %3002 }
 0x2b2   : > { %v3008_v46 = vmul.bf16 %v5412_v42, %v5365_v6  ;;  %v3010_v35 = vmul.bf16 %v5414_v7, %v5442_v62 }
 0x2b4   : > { %3014 = vrot.lane.b32.xlu1 %v3008_v46, %s6276_s17  ;;  %v2911_v46 = vmul.bf16 %v2906_v1, %v5369_v9 }
 0x2b5   : > { %v5419_v59 = vpop.permute.xlu1 %3048  ;;  %v5421_v60 = vpop.permute.xlu0 %3050 }
 0x2b6   : > { %v3057_v11 = vmul.bf16 %v5419_v59, %v5365_v6  ;;  %v3059_v15 = vmul.bf16 %v5421_v60, %v5442_v62 }
 0x2b8   : > { %3063 = vrot.lane.b32.xlu0 %v3057_v11, %s4639_s22  ;;  %v3053_v11 = vsel %vm3052_vm0, %v5419_v59, %v5421_v60  ;;  %vm3104_vm0 = vcmask 162816  }
 0x2b9   : > { %v5426_v0 = vpop.permute.xlu1 %3100  ;;  %v5428_v55 = vpop.permute.xlu0 %3102 }
 0x2ba   : > { %v3109_v56 = vmul.bf16 %v5426_v0, %v5365_v6  ;;  %v3105_v27 = vsel %vm3104_vm0, %v5426_v0, %v5428_v55  ;;  %vm3302_vm0 = vcmask 285696  }
 0x2bc   : > { %3115 = vrot.lane.b32.xlu1 %v3109_v56, %s4640_s19  ;;  %v2960_v56 = vmul.bf16 %v5407_v36, %v5442_v62 }
 0x2bd   : > { %v5433_v13 = vpop.permute.xlu1 %3150  ;;  %v5435_v47 = vpop.permute.xlu0 %3152 }
 0x2be   : > { %v3158_v18 = vmul.bf16 %v5433_v13, %v5365_v6  ;;  %v3154_v36 = vsel %vm6279_vm1, %v5433_v13, %v5435_v47  ;;  %vm6280_vm1 = vcmask 269312  }
 0x2c0   : > { %3164 = vrot.lane.b32.xlu0 %v3158_v18, %s6277_s21  ;;  %v3058_v18 = vmul.bf16 %v3053_v11, %v5369_v9 }
 0x2c1   : > { %v5444_v63 = vpop.permute.xlu1 %1691  ;;  %v5446_v48 = vpop.permute.xlu0 %1693 }
 0x2c4   : > { %2720 = vrot.lane.b32.xlu0 %v2712_v10, %s6272_s20  ;;  %v3004_v10 = vsel %vm788_vm6, %v5412_v42, %v5414_v7 }
 0x2c5   : > { %v5453_v5 = vpop.permute.xlu1 %3200  ;;  %v5455_v17 = vpop.permute.xlu0 %3202 }
 0x2c6   : > { %v3208_v53 = vmul.bf16 %v5453_v5, %v5365_v6  ;;  %v3210_v0 = vmul.bf16 %v5455_v17, %v5442_v62 }
 0x2c8   : > { %3214 = vrot.lane.b32.xlu1 %v3208_v53, %s6278_s18  ;;  %2766 = vrot.lane.b32.xlu0 %v2759_v50, %s6273_s14  ;;  %v3009_v50 = vmul.bf16 %v3004_v10, %v5369_v9  ;;  %v3111_v53 = vmul.bf16 %v5428_v55, %v5442_v62 }
 0x2c9   : > { %v5465_v19 = vpop.permute.xlu1 %3248  ;;  %v5467_v20 = vpop.permute.xlu0 %3250 }
 0x2cc   : > { %2718 = vrot.lane.b32.xlu1 %v2711_v58, %s6272_s20  ;;  %2819 = vrot.lane.b32.xlu0 %v2811_v22, %s4637_s27  ;;  %v3159_v58 = vmul.bf16 %v3154_v36, %v5369_v9 }
 0x2cd   : > { %v5475_v16 = vpop.permute.xlu1 %1779  ;;  %v5477_v21 = vpop.permute.xlu0 %1781 }
 0x2d0   : > { %2768 = vrot.lane.b32.xlu1 %v2760_v28, %s6273_s14  ;;  %2867 = vrot.lane.b32.xlu0 %v2860_v29, %s4638_s28 }
 0x2d1   : > { %v5486_v2 = vpop.permute.xlu1 %3298  ;;  %v5488_v14 = vpop.permute.xlu0 %3300 }
 0x2d4   : > { %2817 = vrot.lane.b32.xlu1 %v2810_v33, %s4637_s27  ;;  %2920 = vrot.lane.b32.xlu0 %v2912_v34, %s6274_s30  ;;  %v3110_v34 = vmul.bf16 %v3105_v27, %v5369_v9  ;;  %s4642_s27 = smov 92  }
 0x2d5   : > { %v5497_v31 = vpop.permute.xlu1 %1868  ;;  %v5499_v32 = vpop.permute.xlu0 %1870 }
 0x2d8   : > { %2869 = vrot.lane.b32.xlu1 %v2861_v38, %s4638_s28  ;;  %2966 = vrot.lane.b32.xlu0 %v2959_v51, %s6275_s16  ;;  %v3252_v51 = vsel %vm6268_vm9, %v5465_v19, %v5467_v20  ;;  %vm3352_vm9 = vcmask 293888   ;;  %s4646_s28 = smov 77  }
 0x2d9   : > { %v5509_v39 = vpop.permute.xlu1 %3348  ;;  %v5511_v40 = vpop.permute.xlu0 %3350 }
 0x2dc   : > { %2918 = vrot.lane.b32.xlu1 %v2911_v46, %s6274_s30  ;;  %3018 = vrot.lane.b32.xlu0 %v3010_v35, %s6276_s17  ;;  %v3257_v35 = vmul.bf16 %v3252_v51, %v5369_v9  ;;  %v3357_v51 = vmul.bf16 %v5509_v39, %v5365_v6 }
 0x2dd   : > { %v5520_v52 = vpop.permute.xlu1 %3400  ;;  %v5522_v44 = vpop.permute.xlu0 %3402 }
 0x2e0   : > { %2968 = vrot.lane.b32.xlu1 %v2960_v56, %s6275_s16  ;;  %3065 = vrot.lane.b32.xlu0 %v3058_v18, %s4639_s22  ;;  %v3204_v18 = vsel %vm6280_vm1, %v5453_v5, %v5455_v17  ;;  %v3258_v17 = vmul.bf16 %v5467_v20, %v5442_v62  ;;  %vm3454_vm1 = vcmask 400384  }
 0x2e1   : > { %v5532_v59 = vpop.permute.xlu1 %1955  ;;  %v5534_v3 = vpop.permute.xlu0 %1957  ;;  %v3209_v36 = vmul.bf16 %v3204_v18, %v5369_v9  ;;  %v3359_v18 = vmul.bf16 %v5511_v40, %v5442_v62 }
 0x2e4   : > { %3016 = vrot.lane.b32.xlu1 %v3009_v50, %s6276_s17  ;;  %3119 = vrot.lane.b32.xlu0 %v3111_v53, %s4640_s19 }
 0x2e5   : > { %v5544_v42 = vpop.permute.xlu1 %3450  ;;  %v5546_v7 = vpop.permute.xlu0 %3452 }
 0x2e6   : > { %v1575_v22 = vpop.f32.mrb[8].mxu1 }
 0x2e7   : > { %v1577_v28 = vpop.f32.mrb[9].mxu1  ;;  %v5556_v29 = vadd.f32 %v1575_v22, %v5341_v37  ;;  %v3309_v22 = vmul.bf16 %v5488_v14, %v5442_v62 }
 0x2e8   : > { %v1579_v13 = vpop.f32.mrb[10].mxu1  ;;  %3067 = vrot.lane.b32.xlu1 %v3059_v15, %s4639_s22  ;;  %3166 = vrot.lane.b32.xlu0 %v3159_v58, %s6277_s21  ;;  %v5567_v55 = vadd.f32 %v1577_v28, %v5341_v37  ;;  %v3256_v15 = vmul.bf16 %v5465_v19, %v5365_v6  ;;  %v3303_v19 = vsel %vm3302_vm0, %v5486_v2, %v5488_v14  ;;  %vm3506_vm0 = vcmask 408576   ;;  %s4647_s22 = smov 76  }
 0x2e9   : > { %v5559_v30 = vadd.f32 %v1579_v13, %v5349_v8  ;;  %v1581_v33 = vpop.f32.mrb[11].mxu1  ;;  %v5561_v60 = vpop.permute.xlu1 %2044  ;;  %v3353_v28 = vsel %vm3352_vm9, %v5509_v39, %v5511_v40  ;;  %v3307_v14 = vmul.bf16 %v5486_v2, %v5365_v6  ;;  %vm3404_vm9 = vcmask 392192   ;;  %v4581_v2 = vld [vmem:[%s6244_s11 + $0x4] ss:$16 sps:$4 sm:$0xff]  }
 0x2ea   : > { %v5570_v12 = vadd.f32 %v1581_v33, %v5349_v8  ;;  %v5572_v38 = vpop.permute.xlu0 %2046  ;;  %v3160_v8 = vmul.bf16 %v5435_v47, %v5442_v62  ;;  %v3308_v33 = vmul.bf16 %v3303_v19, %v5369_v9  ;;  %v3358_v20 = vmul.bf16 %v3353_v28, %v5369_v9  ;;  %4029 = vmatprep.mubr.bf16.mxu0 %v4581_v2 }
 0x2eb   : > { %v1592_v1 = vpack.c.bf16 %v5559_v30, %v5556_v29  ;;  %v3405_v39 = vsel %vm3404_vm9, %v5520_v52, %v5522_v44  ;;  %v3459_v28 = vmul.bf16 %v5544_v42, %v5365_v6  ;;  %vm3556_vm9 = vcmask 416768  }
 0x2ec   : > { %v1593_v46 = vpack.c.bf16 %v5570_v12, %v5567_v55  ;;  %3117 = vrot.lane.b32.xlu1 %v3110_v34, %s4640_s19  ;;  %3218 = vrot.lane.b32.xlu0 %v3210_v0, %s6278_s18  ;;  %s4643_s19 = smov 80   ;;  %v3410_v40 = vmul.bf16 %v3405_v39, %v5369_v9 }
 0x2ed   : > { %v5583_v37 = vpop.permute.xlu1 %3504 }
 0x2ee   : > { %v5588_v11 = vpop.permute.xlu0 %3502  ;;  %v5590_v56 = vpop.f32.mrb[12].mxu1 }
 0x2ef   : > { %v5595_v10 = vpop.f32.mrb[13].mxu1 }
 0x2f0   : > { %3168 = vrot.lane.b32.xlu1 %v3160_v8, %s6277_s21  ;;  %3264 = vrot.lane.b32.xlu0 %v3257_v35, %s6281_s23  ;;  %v1589_v50 = vpop.f32.mrb[14].mxu1 }
 0x2f1   : > { %v5599_v53 = vpop.permute.xlu1 %3552  ;;  %v1590_v47 = vpop.f32.mrb[15].mxu1  ;;  %v3411_v50 = vmul.bf16 %v5522_v44, %v5442_v62  ;;  %v3409_v44 = vmul.bf16 %v5520_v52, %v5365_v6  ;;  %v3507_v52 = vsel %vm3506_vm0, %v5588_v11, %v5583_v37  ;;  %vm3658_vm0 = vcmask 523264  }
 0x2f2   : > { %v5604_v58 = vpop.permute.xlu0 %3554 }
 0x2f4   : > { %3216 = vrot.lane.b32.xlu1 %v3209_v36, %s6278_s18  ;;  %3262 = vrot.lane.b32.xlu0 %v3256_v15, %s6281_s23  ;;  %v3455_v36 = vsel %vm3454_vm1, %v5544_v42, %v5546_v7  ;;  %v3557_v42 = vsel %vm3556_vm9, %v5599_v53, %v5604_v58  ;;  %vm3608_vm1 = vcmask 424960   ;;  %vm3709_vm9 = vcmask 531456  }
 0x2f5   : > { %v5608_v5 = vpop.permute.xlu1 %2131 }
 0x2f6   : > { %v5614_v27 = vpop.permute.xlu0 %2133 }
 0x2f8   : > { %3266 = vrot.lane.b32.xlu1 %v3258_v17, %s6281_s23  ;;  %3317 = vrot.lane.b32.xlu0 %v3309_v22, %s4641_s29  ;;  %v3460_v17 = vmul.bf16 %v3455_v36, %v5369_v9  ;;  %v3561_v36 = vmul.bf16 %v5599_v53, %v5365_v6 }
 0x2f9   : > { %v5621_v13 = vpop.permute.xlu1 %3606 }
 0x2fa   : > { %v5625_v34 = vpop.permute.xlu0 %3604 }
 0x2fc   : > { %3315 = vrot.lane.b32.xlu1 %v3308_v33, %s4641_s29  ;;  %3365 = vrot.lane.b32.xlu0 %v3358_v20, %s4642_s27  ;;  %v3461_v20 = vmul.bf16 %v5546_v7, %v5442_v62  ;;  %v3562_v7 = vmul.bf16 %v3557_v42, %v5369_v9  ;;  %v3613_v42 = vmul.bf16 %v5625_v34, %v5365_v6 }
 0x2fd   : > { %v5627_v0 = vpop.permute.xlu1 %2222 }
 0x2fe   : > { %v5633_v8 = vpop.permute.xlu0 %2220 }
 0x300   : > { %3313 = vrot.lane.b32.xlu1 %v3307_v14, %s4641_s29  ;;  %3363 = vrot.lane.b32.xlu0 %v3357_v51, %s4642_s27  ;;  %s4644_s29 = smov 79   ;;  %v3513_v14 = vmul.bf16 %v5583_v37, %v5442_v62  ;;  %v3511_v37 = vmul.bf16 %v5588_v11, %v5365_v6  ;;  %v3609_v11 = vsel %vm3608_vm1, %v5625_v34, %v5621_v13  ;;  %vm2821_vm1 = vcmask 1022976  }
 0x301   : > { %v5635_v35 = vpop.permute.xlu1 %3654  ;;  %v1588_v34 = vadd.f32 %v5595_v10, %v5351_v61  ;;  %v1586_v10 = vadd.f32 %v5590_v56, %v5351_v61 }
 0x302   : > { %v5641_v47 = vpop.permute.xlu0 %3656 }
 0x303   : > { %v3659_v53 = vsel %vm3658_vm0, %v5635_v35, %v5641_v47  ;;  %v1594_v55 = vpack.c.bf16 %v1586_v10, %v1586_v10 }
 0x304   : > { %3367 = vrot.lane.b32.xlu1 %v3359_v18, %s4642_s27  ;;  %3419 = vrot.lane.b32.xlu0 %v3411_v50, %s4643_s19  ;;  %s4645_s27 = smov 78   ;;  %v3512_v50 = vmul.bf16 %v3507_v52, %v5369_v9 }
 0x305   : > { %v5650_v15 = vpop.permute.xlu1 %3707 }
 0x306   : > { %v5654_v22 = vpop.permute.xlu0 %3705 }
 0x308   : > { %3417 = vrot.lane.b32.xlu1 %v3410_v40, %s4643_s19  ;;  %3467 = vrot.lane.b32.xlu0 %v3460_v17, %s4644_s29  ;;  %v3563_v17 = vmul.bf16 %v5604_v58, %v5442_v62 }
 0x309   : > { %v5656_v19 = vpop.permute.xlu1 %2309 }
 0x30a   : > { %v5662_v33 = vpop.permute.xlu0 %2307 }
 0x30c   : > { %3415 = vrot.lane.b32.xlu1 %v3409_v44, %s4643_s19  ;;  %3465 = vrot.lane.b32.xlu0 %v3459_v28, %s4644_s29  ;;  %v3615_v44 = vmul.bf16 %v5621_v13, %v5442_v62  ;;  %v3663_v13 = vmul.bf16 %v5635_v35, %v5365_v6  ;;  %s4648_s19 = smov 63  }
 0x30d   : > { %v5668_v51 = vpop.permute.xlu1 %3755 }
 0x30e   : > { %v5670_v18 = vpop.permute.xlu0 %3757 }
 0x310   : > { %3469 = vrot.lane.b32.xlu1 %v3461_v20, %s4644_s29  ;;  %3521 = vrot.lane.b32.xlu0 %v3513_v14, %s4645_s27  ;;  %v3614_v20 = vmul.bf16 %v3609_v11, %v5369_v9  ;;  %v3664_v14 = vmul.bf16 %v3659_v53, %v5369_v9 }
 0x311   : > { %v5680_v39 = vpop.permute.xlu1 %3809 }
 0x312   : > { %v5678_v2 = vpop.permute.xlu0 %3807 }
 0x314   : > { %3519 = vrot.lane.b32.xlu1 %v3512_v50, %s4645_s27  ;;  %3569 = vrot.lane.b32.xlu0 %v3562_v7, %s4646_s28  ;;  %v3665_v7 = vmul.bf16 %v5641_v47, %v5442_v62  ;;  %v1595_v47 = vpack.c.bf16 %v1588_v34, %v1588_v34 }
 0x315   : > { %v5692_v28 = vpop.permute.xlu1 %3857 }
 0x316   : > { %v5686_v40 = vpop.permute.xlu0 %3859 }
 0x318   : > { %3517 = vrot.lane.b32.xlu1 %v3511_v37, %s4645_s27  ;;  %3567 = vrot.lane.b32.xlu0 %v3561_v36, %s4646_s28  ;;  %v3716_v37 = vmul.bf16 %v5650_v15, %v5442_v62 }
 0x319   : > { %v2717_v52 = vpop.permute.xlu1 %2716 }
 0x31a   : > { %v2765_v58 = vpop.permute.xlu0 %2764 }
 0x31c   : > { %3571 = vrot.lane.b32.xlu1 %v3563_v17, %s4646_s28  ;;  %3623 = vrot.lane.b32.xlu0 %v3615_v44, %s4647_s22  ;;  %v3710_v17 = vsel %vm3709_vm9, %v5654_v22, %v5650_v15  ;;  %v3714_v15 = vmul.bf16 %v5654_v22, %v5365_v6  ;;  %vm2871_vm9 = vcmask 1014784  }
 0x31d   : > { %v2816_v36 = vpop.permute.xlu1 %2815  ;;  %v3715_v35 = vmul.bf16 %v3710_v17, %v5369_v9 }
 0x31e   : > { %v2866_v50 = vpop.permute.xlu0 %2865 }
 0x320   : > { %3621 = vrot.lane.b32.xlu1 %v3614_v20, %s4647_s22  ;;  %3671 = vrot.lane.b32.xlu0 %v3664_v14, %s4632_s15 }
 0x321   : > { %v2917_v11 = vpop.permute.xlu1 %2916 }
 0x322   : > { %v2965_v44 = vpop.permute.xlu0 %2964 }
 0x324   : > { %3619 = vrot.lane.b32.xlu1 %v3613_v42, %s4647_s22  ;;  %3669 = vrot.lane.b32.xlu0 %v3663_v13, %s4632_s15  ;;  %s4651_s22 = smov 60  }
 0x326   : > { %v3015_v20 = vpop.permute.xlu1 %3014 }
 0x328   : > { %3673 = vrot.lane.b32.xlu1 %v3665_v7, %s4632_s15  ;;  %3724 = vrot.lane.b32.xlu0 %v3716_v37, %s4648_s19 }
 0x32a   : > { %v5723_v53 = vpop.permute.xlu0 %3063 }
 0x32c   : > { %1602 = vrot.lane.b32.xlu0 %v1593_v46, %s4605_s24  ;;  %3722 = vrot.lane.b32.xlu1 %v3715_v35, %s4648_s19 }
 0x32e   : > { %v3116_v12 = vpop.permute.xlu1 %3115 }
 0x330   : > { %1606 = vrot.lane.b32.xlu0 %v1595_v47, %s4605_s24  ;;  %3720 = vrot.lane.b32.xlu1 %v3714_v15, %s4648_s19  ;;  %s4386_s19 = smul.u32 176, %s6316_s26 }
 0x332   : > { %v5728_v14 = vpop.permute.xlu0 %3164  ;;  %s6196_s15 = scalar_lea.vmem %s6246_s13, %s4386_s19 }
 0x334   : > { %1600 = vrot.lane.b32.xlu1 %v1592_v1, %s4605_s24 }
 0x336   : > { %v2721_v46 = vpop.permute.xlu0 %2720 }
 0x338   : > { %1604 = vrot.lane.b32.xlu1 %v1594_v55, %s4605_s24 }
 0x33a   : > { %v5735_v22 = vpop.permute.xlu1 %3214  ;;  %v2767_v42 = vpop.permute.xlu0 %2766 }
 0x33b   : > { %v2770_v30 = vsel %vm689_vm11, %v2765_v58, %v2767_v42 }
 0x33e   : > { %v2719_v13 = vpop.permute.xlu1 %2718  ;;  %v2820_v7 = vpop.permute.xlu0 %2819 }
 0x33f   : > { %v2723_v61 = vsel %vm648_vm10, %v2719_v13, %v2721_v46  ;;  %v2722_v56 = vsel %vm648_vm10, %v2717_v52, %v2719_v13 }
 0x340   : > { %3999 = vmatprep.subr.bf16.mxu0 %v2723_v61 }
 0x341   : > { %4000 = vmatpush1.bf16.msra.mxu0 %v2722_v56 }
 0x342   : > { %v2769_v37 = vpop.permute.xlu1 %2768  ;;  %v2868_v17 = vpop.permute.xlu0 %2867 }
 0x343   : > { %v2771_v29 = vsel %vm689_vm11, %v2767_v42, %v2769_v37  ;;  %v2872_v55 = vsel %vm2871_vm9, %v2866_v50, %v2868_v17 }
 0x344   : > { %4001 = vmatprep.subr.bf16.mxu0 %v2771_v29 }
 0x345   : > { %4002 = vmatpush1.bf16.msra.mxu0 %v2770_v30 }
 0x346   : > { %v2818_v1 = vpop.permute.xlu1 %2817  ;;  %v2921_v34 = vpop.permute.xlu0 %2920 }
 0x347   : > { %v2823_v35 = vsel %vm2821_vm1, %v2818_v1, %v2820_v7  ;;  %v2822_v47 = vsel %vm2821_vm1, %v2816_v36, %v2818_v1  ;;  %vm3069_vm1 = vcmask 891904  }
 0x348   : > { %4003 = vmatprep.subr.bf16.mxu0 %v2823_v35 }
 0x349   : > { %4004 = vmatpush1.bf16.msra.mxu0 %v2822_v47 }
 0x34a   : > { %v2870_v15 = vpop.permute.xlu1 %2869  ;;  %v2967_v52 = vpop.permute.xlu0 %2966 }
 0x34b   : > { %v2873_v10 = vsel %vm2871_vm9, %v2868_v17, %v2870_v15  ;;  %v2970_v56 = vsel %vm767_vm13, %v2965_v44, %v2967_v52  ;;  %vm3121_vm9 = vcmask 883712  }
 0x34c   : > { %4005 = vmatprep.subr.bf16.mxu0 %v2873_v10 }
 0x34d   : > { %4006 = vmatpush1.bf16.msra.mxu0 %v2872_v55 }
 0x34e   : > { %v2919_v46 = vpop.permute.xlu1 %2918  ;;  %v3019_v13 = vpop.permute.xlu0 %3018 }
 0x34f   : > { %v2923_v61 = vsel %vm727_vm12, %v2919_v46, %v2921_v34  ;;  %v2922_v58 = vsel %vm727_vm12, %v2917_v11, %v2919_v46 }
 0x350   : > { %4007 = vmatprep.subr.bf16.mxu0 %v2923_v61 }
 0x351   : > { %4008 = vmatpush1.bf16.msra.mxu0 %v2922_v58 }
 0x352   : > { %v2969_v42 = vpop.permute.xlu1 %2968  ;;  %v3066_v7 = vpop.permute.xlu0 %3065 }
 0x353   : > { %v2971_v36 = vsel %vm767_vm13, %v2967_v52, %v2969_v42  ;;  %v3070_v34 = vsel %vm3069_vm1, %v5723_v53, %v3066_v7 }
 0x354   : > { %4009 = vmatprep.subr.bf16.mxu0 %v2971_v36 }
 0x355   : > { %4010 = vmatpush1.bf16.msra.mxu0 %v2970_v56 }
 0x356   : > { %v3017_v37 = vpop.permute.xlu1 %3016  ;;  %v3120_v29 = vpop.permute.xlu0 %3119 }
 0x357   : > { %v3021_v50 = vsel %vm805_vm14, %v3017_v37, %v3019_v13  ;;  %v3020_v17 = vsel %vm805_vm14, %v3015_v20, %v3017_v37 }
 0x358   : > { %4011 = vmatprep.subr.bf16.mxu0 %v3021_v50 }
 0x359   : > { %4012 = vmatpush1.bf16.msra.mxu0 %v3020_v17 }
 0x35a   : > { %v3068_v11 = vpop.permute.xlu1 %3067  ;;  %v3167_v30 = vpop.permute.xlu0 %3166 }
 0x35b   : > { %v3071_v1 = vsel %vm3069_vm1, %v3066_v7, %v3068_v11  ;;  %v3170_v55 = vsel %vm846_vm15, %v5728_v14, %v3167_v30  ;;  %vm3319_vm1 = vcmask 760832  }
 0x35c   : > { %4013 = vmatprep.subr.bf16.mxu0 %v3071_v1 }
 0x35d   : > { %4014 = vmatpush1.bf16.msra.mxu0 %v3070_v34 }
 0x35e   : > { %v3118_v35 = vpop.permute.xlu1 %3117  ;;  %v3219_v44 = vpop.permute.xlu0 %3218 }
 0x35f   : > { %v3123_v47 = vsel %vm3121_vm9, %v3118_v35, %v3120_v29  ;;  %v3122_v15 = vsel %vm3121_vm9, %v3116_v12, %v3118_v35  ;;  %vm3369_vm9 = vcmask 752640  }
 0x360   : > { %4015 = vmatprep.subr.bf16.mxu0 %v3123_v47 }
 0x361   : > { %4016 = vmatpush1.bf16.msra.mxu0 %v3122_v15 }
 0x362   : > { %v3169_v52 = vpop.permute.xlu1 %3168  ;;  %v3265_v10 = vpop.permute.xlu0 %3264 }
 0x363   : > { %v3171_v20 = vsel %vm846_vm15, %v3167_v30, %v3169_v52  ;;  %v4579_v52 = vld [vmem:[%s6244_s11] ss:$16 sps:$4 sm:$0xff]  }
 0x364   : > { %4017 = vmatprep.subr.bf16.mxu0 %v3171_v20 }
 0x365   : > { %4018 = vmatpush1.bf16.msra.mxu0 %v3170_v55 }
 0x366   : > { %v3217_v46 = vpop.permute.xlu1 %3216  ;;  %v3263_v13 = vpop.permute.xlu0 %3262 }
 0x367   : > { %v3221_v53 = vsel %vm6269_vm7, %v3217_v46, %v3219_v44  ;;  %v3220_v61 = vsel %vm6269_vm7, %v5735_v22, %v3217_v46  ;;  %v3268_v7 = vsel %vm6270_vm8, %v3263_v13, %v3265_v10  ;;  %vm3421_vm7 = vcmask 654336  }
 0x368   : > { %4019 = vmatprep.subr.bf16.mxu0 %v3221_v53 }
 0x369   : > { %4020 = vmatpush1.bf16.msra.mxu0 %v3220_v61 }
 0x36a   : > { %v3267_v12 = vpop.permute.xlu1 %3266  ;;  %v3318_v58 = vpop.permute.xlu0 %3317 }
 0x36b   : > { %v3269_v42 = vsel %vm6270_vm8, %v3265_v10, %v3267_v12  ;;  %vm3625_vm8 = vcmask 621568  }
 0x36c   : > { %4021 = vmatprep.subr.bf16.mxu0 %v3269_v42 }
 0x36d   : > { %4022 = vmatpush1.bf16.msra.mxu0 %v3268_v7 }
 0x36e   : > { %v3316_v14 = vpop.permute.xlu1 %3315  ;;  %v3366_v36 = vpop.permute.xlu0 %3365 }
 0x36f   : > { %v3321_v56 = vsel %vm3319_vm1, %v3316_v14, %v3318_v58 }
 0x370   : > { %4023 = vmatprep.subr.bf16.mxu0 %v3321_v56 }
 0x372   : > { %v3314_v37 = vpop.permute.xlu1 %3313  ;;  %v3364_v29 = vpop.permute.xlu0 %3363 }
 0x373   : > { %v3320_v50 = vsel %vm3319_vm1, %v3314_v37, %v3316_v14  ;;  %v3370_v30 = vsel %vm3369_vm9, %v3364_v29, %v3366_v36  ;;  %vm3471_vm1 = vcmask 646144  }
 0x374   : > { %4024 = vmatpush1.bf16.msra.mxu0 %v3320_v50 }
 0x376   : > { %v3368_v22 = vpop.permute.xlu1 %3367  ;;  %v3420_v17 = vpop.permute.xlu0 %3419 }
 0x377   : > { %v3371_v11 = vsel %vm3369_vm9, %v3366_v36, %v3368_v22  ;;  %vm3523_vm9 = vcmask 637952  }
 0x378   : > { %4025 = vmatprep.subr.bf16.mxu0 %v3371_v11 }
 0x379   : > { %4026 = vmatpush1.bf16.msra.mxu0 %v3370_v30  ;;  %v1624_v30 = vld [vmem:[%s6234_s1] sm:$0x11] }
 0x37a   : > { %v3418_v1 = vpop.permute.xlu1 %3417  ;;  %v3468_v34 = vpop.permute.xlu0 %3467 }
 0x37b   : > { %v3423_v35 = vsel %vm3421_vm7, %v3418_v1, %v3420_v17 }
 0x37c   : > { %4027 = vmatprep.subr.bf16.mxu0 %v3423_v35 }
 0x37e   : > { %v3416_v44 = vpop.permute.xlu1 %3415  ;;  %v3466_v47 = vpop.permute.xlu0 %3465 }
 0x37f   : > { %v3422_v15 = vsel %vm3421_vm7, %v3416_v44, %v3418_v1  ;;  %v3472_v46 = vsel %vm3471_vm1, %v3466_v47, %v3468_v34  ;;  %vm3573_vm7 = vcmask 629760   ;;  %v4204_v47 = vcombine.low %v1624_v30, %v1624_v30 }
 0x380   : > { %4028 = vmatpush1.bf16.msra.mxu0 %v3422_v15  ;;  %v4205_v15 = vcombine.high %v1624_v30, %v1624_v30 }
 0x382   : > { %v3470_v10 = vpop.permute.xlu1 %3469  ;;  %v3522_v20 = vpop.permute.xlu0 %3521 }
 0x383   : > { %v3473_v55 = vsel %vm3471_vm1, %v3468_v34, %v3470_v10  ;;  %4030 = vmatmul.mubr.bf16.vlgmr.msra.gmra.mrb[12].mxu0 %v4579_v52  ;;  %vm3726_vm1 = vcmask 515072  }
 0x384   : > { %4048 = vmatprep.subr.bf16.mxu0 %v3473_v55 }
 0x385   : > { %4049 = vmatpush1.bf16.msra.mxu0 %v3472_v46 }
 0x386   : > { %v3520_v13 = vpop.permute.xlu1 %3519  ;;  %v3570_v53 = vpop.permute.xlu0 %3569 }
 0x387   : > { %v3525_v61 = vsel %vm3523_vm9, %v3520_v13, %v3522_v20 }
 0x388   : > { %4050 = vmatprep.subr.bf16.mxu0 %v3525_v61 }
 0x38a   : > { %v3518_v12 = vpop.permute.xlu1 %3517  ;;  %v3568_v58 = vpop.permute.xlu0 %3567 }
 0x38b   : > { %v3524_v42 = vsel %vm3523_vm9, %v3518_v12, %v3520_v13  ;;  %v3574_v56 = vsel %vm3573_vm7, %v3568_v58, %v3570_v53  ;;  %v1631_v13 = vpack.i.b16 %v4204_v47, %v4204_v47  ;;  %vm3861_vm9 = vcmask 556032  }
 0x38c   : > { %4051 = vmatpush1.bf16.msra.mxu0 %v3524_v42 }
 0x38e   : > { %v3572_v7 = vpop.permute.xlu1 %3571  ;;  %v3624_v14 = vpop.permute.xlu0 %3623 }
 0x38f   : > { %v3575_v36 = vsel %vm3573_vm7, %v3570_v53, %v3572_v7  ;;  %v1638_v53 = vpack.i.b16 %v4205_v15, %v4205_v15  ;;  %v1636_v7 = vrot.slane %v1631_v13, %v4803_v45  ;;  %v5807_v15 = vsel %vm710_vm5, %v5497_v31, %v5499_v32 }
 0x390   : > { %4052 = vmatprep.subr.bf16.mxu0 %v3575_v36  ;;  %v5775_v36 = vsel %vm631_vm3, %v5444_v63, %v5446_v48  ;;  %vm6282_vm3 = vcmask 261120   ;;  %vm6285_vm7 = vcmask 1043456  }
 0x391   : > { %4053 = vmatpush1.bf16.msra.mxu0 %v3574_v56  ;;  %v1643_v42 = vrot.slane %v1638_v53, %v4803_v45 }
 0x392   : > { %v3622_v37 = vpop.permute.xlu1 %3621  ;;  %v3672_v29 = vpop.permute.xlu0 %3671 }
 0x393   : > { %v3627_v50 = vsel %vm3625_vm8, %v3622_v37, %v3624_v14 }
 0x394   : > { %4054 = vmatprep.subr.bf16.mxu0 %v3627_v50 }
 0x396   : > { %v3620_v22 = vpop.permute.xlu1 %3619  ;;  %v3670_v17 = vpop.permute.xlu0 %3669 }
 0x397   : > { %v3626_v11 = vsel %vm3625_vm8, %v3620_v22, %v3622_v37  ;;  %v3675_v44 = vsel %vm3658_vm0, %v3670_v17, %v3672_v29  ;;  %vm3811_vm8 = vcmask 547840  }
 0x398   : > { %4055 = vmatpush1.bf16.msra.mxu0 %v3626_v11 }
 0x39a   : > { %v3674_v1 = vpop.permute.xlu1 %3673  ;;  %v3725_v34 = vpop.permute.xlu0 %3724 }
 0x39b   : > { %v3676_v35 = vsel %vm3658_vm0, %v3672_v29, %v3674_v1  ;;  %v5796_v1 = vsel %vm672_vm4, %v5475_v16, %v5477_v21  ;;  %vm6283_vm4 = vcmask 269312   ;;  %vm2570_vm0 = vcmask 719872  }
 0x39c   : > { %4056 = vmatprep.subr.bf16.mxu0 %v3676_v35 }
 0x39d   : > { %4057 = vmatpush1.bf16.msra.mxu0 %v3675_v44 }
 0x39e   : > { %v3723_v52 = vpop.permute.xlu1 %3722  ;;  %v1603_v10 = vpop.permute.xlu0 %1602 }
 0x39f   : > { %v5765_v20 = vsel %vm597_vm2, %v1603_v10, 0  ;;  %v3728_v55 = vsel %vm3726_vm1, %v3723_v52, %v3725_v34 }
 0x3a0   : > { %4058 = vmatprep.subr.bf16.mxu0 %v3728_v55  ;;  %v1701_v46 = vmul.bf16 %v5446_v48, %v5765_v20  ;;  %v1789_v30 = vmul.bf16 %v5477_v21, %v5765_v20  ;;  %v1878_v53 = vmul.bf16 %v5499_v32, %v5765_v20 }
 0x3a2   : > { %v3721_v61 = vpop.permute.xlu1 %3720  ;;  %v4212_v12 = vcombine.low %v1701_v46, %v1701_v46  ;;  %v4220_v34 = vcombine.low %v1789_v30, %v1789_v30  ;;  %v4214_v35 = vcombine.high %v1701_v46, %v1701_v46 }
 0x3a3   : > { %v3727_v58 = vsel %vm3726_vm1, %v3721_v61, %v3723_v52  ;;  %v4222_v52 = vcombine.high %v1789_v30, %v1789_v30  ;;  %v1607_v61 = vpop.permute.xlu0 %1606  ;;  %vm6286_vm1 = vmmov %vm6285_vm7 }
 0x3a4   : > { %4059 = vmatpush1.bf16.msra.mxu0 %v3727_v58  ;;  %1728 = vrot.lane.b32.xlu0 %v4212_v12, %s6272_s20 }
 0x3a6   : > { %v1601_v14 = vpop.permute.xlu1 %1600 }
 0x3a7   : > { %v5778_v56 = vsel %vm597_vm2, %v1601_v14, %v1603_v10  ;;  %v5781_v37 = vsel %vm597_vm2, 0, %v1601_v14 }
 0x3a8   : > { %v1645_v29 = vmul.bf16 %v1643_v42, %v5778_v56  ;;  %v1644_v50 = vmul.bf16 %v1636_v7, %v5781_v37  ;;  %v1699_v22 = vmul.bf16 %v5444_v63, %v5781_v37  ;;  %v1700_v45 = vmul.bf16 %v5775_v36, %v5778_v56 }
 0x3a9   : > { %v1787_v44 = vmul.bf16 %v5475_v16, %v5781_v37  ;;  %v1788_v47 = vmul.bf16 %v5796_v1, %v5778_v56  ;;  %v1876_v55 = vmul.bf16 %v5497_v31, %v5781_v37  ;;  %v1877_v46 = vmul.bf16 %v5807_v15, %v5778_v56 }
 0x3aa   : > { %2583 = vmatprep.subr.bf16.mxu1 %v1645_v29  ;;  %v4213_v17 = vcombine.high %v1699_v22, %v1700_v45  ;;  %v4211_v11 = vcombine.low %v1699_v22, %v1700_v45  ;;  %v1605_v13 = vpop.permute.xlu1 %1604  ;;  %v4230_v22 = vcombine.high %v1878_v53, %v1878_v53  ;;  %v4228_v45 = vcombine.low %v1878_v53, %v1878_v53 }
 0x3ab   : > { %2584 = vmatpush1.bf16.msra.mxu1 %v1644_v50  ;;  %v4219_v10 = vcombine.low %v1787_v44, %v1788_v47  ;;  %v4227_v12 = vcombine.low %v1876_v55, %v1877_v46  ;;  %v4221_v58 = vcombine.high %v1787_v44, %v1788_v47  ;;  %v5818_v14 = vsel %vm597_vm2, %v1605_v13, %v1607_v61 }
 0x3ac   : > { %1730 = vrot.lane.b32.xlu0 %v4213_v17, %s6272_s20  ;;  %1726 = vrot.lane.b32.xlu1 %v4211_v11, %s6272_s20  ;;  %v5821_v29 = vsel %vm597_vm2, 0, %v1605_v13  ;;  %v5828_v50 = vsel %vm597_vm2, %v5532_v59, %v5534_v3  ;;  %v1963_v17 = vmul.bf16 %v5532_v59, %v5781_v37  ;;  %v4229_v47 = vcombine.high %v1876_v55, %v1877_v46 }
 0x3ad   : > { %v1964_v11 = vmul.bf16 %v5828_v50, %v5778_v56  ;;  %v5835_v30 = vmul.bf16 %v1636_v7, %v5821_v29  ;;  %v5854_v55 = vsel %vm788_vm6, %v5561_v60, %v5572_v38  ;;  %v2052_v53 = vmul.bf16 %v5561_v60, %v5781_v37 }
 0x3ae   : > { %vm6284_vm6 = vcmask 277504  }
 0x3af   : > { %v4235_v44 = vcombine.low %v1963_v17, %v1964_v11  ;;  %v4237_v7 = vcombine.high %v1963_v17, %v1964_v11  ;;  %v5869_v17 = vsel %vm6282_vm3, %v5608_v5, %v5614_v27  ;;  %vm6287_vm3 = vmmov %vm6286_vm1 }
 0x3b0   : > { %1816 = vrot.lane.b32.xlu0 %v4220_v34, %s6273_s14  ;;  %1732 = vrot.lane.b32.xlu1 %v4214_v35, %s6272_s20  ;;  %v1647_v34 = vmul.bf16 %v1643_v42, %v5818_v14  ;;  %v2054_v42 = vmul.bf16 %v5572_v38, %v5765_v20 }
 0x3b2   : > { %v5841_v35 = vcombine.low %v5835_v30, %v1647_v34  ;;  %v4244_v46 = vcombine.low %v2054_v42, %v2054_v42  ;;  %v4246_v34 = vcombine.high %v2054_v42, %v2054_v42  ;;  %v2228_v42 = vmul.bf16 %v5633_v8, %v5781_v37 }
 0x3b4   : > { %1820 = vrot.lane.b32.xlu0 %v4222_v52, %s6273_s14  ;;  %1814 = vrot.lane.b32.xlu1 %v4219_v10, %s6273_s14  ;;  %v1965_v52 = vmul.bf16 %v5534_v3, %v5765_v20 }
 0x3b6   : > { %v4236_v10 = vcombine.low %v1965_v52, %v1965_v52  ;;  %v4238_v13 = vcombine.high %v1965_v52, %v1965_v52  ;;  %v5880_v52 = vsel %vm6283_vm4, %v5633_v8, %v5627_v0  ;;  %vm6288_vm4 = vmmov %vm6286_vm1 }
 0x3b8   : > { %1903 = vrot.lane.b32.xlu0 %v4227_v12, %s6274_s30  ;;  %1818 = vrot.lane.b32.xlu1 %v4221_v58, %s6273_s14  ;;  %v2053_v12 = vmul.bf16 %v5854_v55, %v5778_v56 }
 0x3ba   : > { %v4245_v58 = vcombine.high %v2052_v53, %v2053_v12 }
 0x3bc   : > { %1909 = vrot.lane.b32.xlu0 %v4230_v22, %s6274_s30  ;;  %1905 = vrot.lane.b32.xlu1 %v4228_v45, %s6274_s30  ;;  %v4243_v22 = vcombine.low %v2052_v53, %v2053_v12  ;;  %v2141_v45 = vmul.bf16 %v5614_v27, %v5765_v20  ;;  %v2230_v12 = vmul.bf16 %v5627_v0, %v5765_v20 }
 0x3be   : > { %v4252_v11 = vcombine.low %v2141_v45, %v2141_v45 }
 0x3c0   : > { %1990 = vrot.lane.b32.xlu0 %v4235_v44, %s6275_s16  ;;  %1907 = vrot.lane.b32.xlu1 %v4229_v47, %s6274_s30  ;;  %v2139_v44 = vmul.bf16 %v5608_v5, %v5781_v37  ;;  %v2140_v47 = vmul.bf16 %v5869_v17, %v5778_v56 }
 0x3c2   : > { %v4253_v53 = vcombine.high %v2139_v44, %v2140_v47 }
 0x3c4   : > { %1994 = vrot.lane.b32.xlu0 %v4237_v7, %s6275_s16  ;;  %1992 = vrot.lane.b32.xlu1 %v4236_v10, %s6275_s16  ;;  %v4254_v7 = vcombine.high %v2141_v45, %v2141_v45  ;;  %v4251_v10 = vcombine.low %v2139_v44, %v2140_v47  ;;  %v4262_v45 = vcombine.high %v2230_v12, %v2230_v12 }
 0x3c8   : > { %2081 = vrot.lane.b32.xlu0 %v4244_v46, %s6276_s17  ;;  %1996 = vrot.lane.b32.xlu1 %v4238_v13, %s6275_s16  ;;  %v2229_v46 = vmul.bf16 %v5880_v52, %v5778_v56 }
 0x3ca   : > { %v4259_v13 = vcombine.low %v2228_v42, %v2229_v46 }
 0x3cc   : > { %2083 = vrot.lane.b32.xlu0 %v4245_v58, %s6276_s17  ;;  %2079 = vrot.lane.b32.xlu1 %v4243_v22, %s6276_s17  ;;  %v5895_v58 = vsel %vm6284_vm6, %v5662_v33, %v5656_v19  ;;  %v5898_v22 = vsel %vm597_vm2, %v1607_v61, 0  ;;  %v1702_v61 = vmul.bf16 %v5444_v63, %v5821_v29  ;;  %vm3759_vm2 = vcmask 539648   ;;  %vm6289_vm6 = vmmov %vm6286_vm1 }
 0x3cd   : > { %v2316_v44 = vmul.bf16 %v5895_v58, %v5778_v56  ;;  %v1704_v47 = vmul.bf16 %v5446_v48, %v5898_v22  ;;  %v2317_v56 = vmul.bf16 %v5656_v19, %v5765_v20  ;;  %v1792_v63 = vmul.bf16 %v5477_v21, %v5898_v22 }
 0x3ce   : > { %v1881_v20 = vmul.bf16 %v5499_v32, %v5898_v22  ;;  %v1880_v21 = vmul.bf16 %v5807_v15, %v5818_v14  ;;  %v1966_v15 = vmul.bf16 %v5532_v59, %v5821_v29  ;;  %v2056_v59 = vmul.bf16 %v5854_v55, %v5818_v14 }
 0x3cf   : > { %v4268_v48 = vcombine.low %v2317_v56, %v2317_v56  ;;  %v2142_v55 = vmul.bf16 %v5608_v5, %v5821_v29 }
 0x3d0   : > { %2168 = vrot.lane.b32.xlu0 %v4252_v11, %s6277_s21  ;;  %2085 = vrot.lane.b32.xlu1 %v4246_v34, %s6276_s17  ;;  %v4260_v11 = vcombine.low %v2230_v12, %v2230_v12  ;;  %v2315_v34 = vmul.bf16 %v5662_v33, %v5781_v37  ;;  %v4216_v37 = vcombine.low %v1704_v47, %v1704_v47 }
 0x3d1   : > { %v4224_v12 = vcombine.low %v1792_v63, %v1792_v63  ;;  %v1968_v47 = vmul.bf16 %v5534_v3, %v5898_v22  ;;  %v3818_v63 = vmul.bf16 %v5680_v39, %v5442_v62 }
 0x3d4   : > { %2172 = vrot.lane.b32.xlu0 %v4254_v7, %s6277_s21  ;;  %2166 = vrot.lane.b32.xlu1 %v4251_v10, %s6277_s21  ;;  %v4267_v7 = vcombine.low %v2315_v34, %v2316_v44  ;;  %v4261_v10 = vcombine.high %v2228_v42, %v2229_v46  ;;  %v4269_v42 = vcombine.high %v2315_v34, %v2316_v44 }
 0x3d5   : > { %v1791_v46 = vmul.bf16 %v5796_v1, %v5818_v14  ;;  %v4232_v34 = vcombine.low %v1881_v20, %v1881_v20  ;;  %v1967_v44 = vmul.bf16 %v5828_v50, %v5818_v14  ;;  %v2319_v20 = vmul.bf16 %v5895_v58, %v5818_v14 }
 0x3d8   : > { %2255 = vrot.lane.b32.xlu0 %v4259_v13, %s6278_s18  ;;  %2170 = vrot.lane.b32.xlu1 %v4253_v53, %s6277_s21  ;;  %v1703_v13 = vmul.bf16 %v5775_v36, %v5818_v14  ;;  %v1790_v36 = vmul.bf16 %v5475_v16, %v5821_v29  ;;  %v3760_v16 = vsel %vm3759_vm2, %v5668_v51, %v5670_v18  ;;  %vm6290_vm2 = vmmov %vm6286_vm1 }
 0x3d9   : > { %v3765_v32 = vmul.bf16 %v3760_v16, %v5369_v9 }
 0x3da   : > { %v4215_v53 = vcombine.low %v1702_v61, %v1703_v13  ;;  %v4240_v61 = vcombine.low %v1968_v47, %v1968_v47  ;;  %v2055_v13 = vmul.bf16 %v5561_v60, %v5821_v29  ;;  %v2144_v60 = vmul.bf16 %v5614_v27, %v5898_v22 }
 0x3dc   : > { %2261 = vrot.lane.b32.xlu0 %v4262_v45, %s6278_s18  ;;  %2257 = vrot.lane.b32.xlu1 %v4260_v11, %s6278_s18  ;;  %v4223_v45 = vcombine.low %v1790_v36, %v1791_v46  ;;  %v1879_v11 = vmul.bf16 %v5497_v31, %v5821_v29  ;;  %v4270_v31 = vcombine.high %v2317_v56, %v2317_v56 }
 0x3dd   : > { %v4247_v50 = vcombine.low %v2055_v13, %v2056_v59  ;;  %v3766_v56 = vmul.bf16 %v5670_v18, %v5442_v62  ;;  %v2233_v18 = vmul.bf16 %v5627_v0, %v5898_v22  ;;  %v2318_v46 = vmul.bf16 %v5662_v33, %v5821_v29  ;;  %v4591_v33 = vld [vmem:[%s6244_s11 + $0xc] ss:$16 sps:$4 sm:$0xff]   ;;  %v2404_v13 = vld [vmem:[%s6243_s10 + $0x10] sm:$0xff] }
 0x3de   : > { %v4231_v1 = vcombine.low %v1879_v11, %v1880_v21  ;;  %v3868_v11 = vmul.bf16 %v5686_v40, %v5442_v62  ;;  %v452_v21 = vld [vmem:[%s6237_s4] sm:$0xff]  ;;  %v940_v62 = vld [vmem:[%s6239_s6 + $0x8] sm:$0xff] }
 0x3df   : > { %v4264_v27 = vcombine.low %v2233_v18, %v2233_v18 }
 0x3e0   : > { %2342 = vrot.lane.b32.xlu0 %v4267_v7, %s6281_s23  ;;  %2259 = vrot.lane.b32.xlu1 %v4261_v10, %s6278_s18  ;;  %v2057_v7 = vmul.bf16 %v5572_v38, %v5898_v22  ;;  %v4239_v10 = vcombine.low %v1966_v15, %v1967_v44  ;;  %v3764_v38 = vmul.bf16 %v5668_v51, %v5365_v6 }
 0x3e1   : > { %v2232_v51 = vmul.bf16 %v5880_v52, %v5818_v14 }
 0x3e2   : > { %v4248_v3 = vcombine.low %v2057_v7, %v2057_v7 }
 0x3e4   : > { %1736 = vrot.lane.b32.xlu1 %v4216_v37, %s6272_s20  ;;  %1734 = vrot.lane.b32.xlu0 %v4215_v53, %s6272_s20  ;;  %s4649_s20 = smov 62   ;;  %v2143_v37 = vmul.bf16 %v5869_v17, %v5818_v14  ;;  %v2231_v53 = vmul.bf16 %v5633_v8, %v5821_v29  ;;  %v3812_v17 = vsel %vm3811_vm8, %v5678_v2, %v5680_v39  ;;  %v3889_v8 = vld [vmem:[%s6244_s11 + $0x20] sm:$0xff]  ;;  %vm6292_vm8 = vmmov %vm6286_vm1 }
 0x3e5   : > { %v4363_v52 = vcombine.high %v3889_v8, %v3889_v8  ;;  %v4362_v0 = vcombine.low %v3889_v8, %v3889_v8  ;;  %v3817_v36 = vmul.bf16 %v3812_v17, %v5369_v9  ;;  %v4271_v39 = vcombine.low %v2318_v46, %v2319_v20 }
 0x3e6   : > { %v4263_v5 = vcombine.low %v2231_v53, %v2232_v51  ;;  %v3816_v29 = vmul.bf16 %v5678_v2, %v5365_v6  ;;  %v453_v2 = vld [vmem:[%s6237_s4 + $0x8] sm:$0xff] }
 0x3e7   : > { %4039 = vmatprep.mubr.bf16.mxu0 %v4363_v52 }
 0x3e8   : > { %2344 = vrot.lane.b32.xlu1 %v4268_v48, %s6281_s23  ;;  %2346 = vrot.lane.b32.xlu0 %v4269_v42, %s6281_s23  ;;  %v4256_v48 = vcombine.low %v2144_v60, %v2144_v60  ;;  %v4255_v42 = vcombine.low %v2142_v55, %v2143_v37 }
 0x3e9   : > { %4040 = vmatmul.mubr.bf16.gmra.mrb[16].mxu0 %v4362_v0 }
 0x3ea   : > { %4366 = vmatprep.mubr.msk.bf16.mxu0 %vm710_vm5, %v4591_v33 }
 0x3ec   : > { %1824 = vrot.lane.b32.xlu1 %v4224_v12, %s6273_s14  ;;  %1822 = vrot.lane.b32.xlu0 %v4223_v45, %s6273_s14  ;;  %v2320_v12 = vmul.bf16 %v5656_v19, %v5898_v22  ;;  %v4588_v45 = vld [vmem:[%s6242_s9 + $0x4] ss:$8 sps:$4 sm:$0xff]   ;;  %v3862_v19 = vsel %vm3861_vm9, %v5692_v28, %v5686_v40  ;;  %v3866_v22 = vmul.bf16 %v5692_v28, %v5365_v6  ;;  %vm6293_vm9 = vmmov %vm6286_vm1 }
 0x3ed   : > { %4306 = vmatprep.mubr.msk.bf16.mxu1 %vm2570_vm0, %v4588_v45  ;;  %v3867_v58 = vmul.bf16 %v3862_v19, %v5369_v9  ;;  %v939_v6 = vld [vmem:[%s6239_s6] sm:$0xff] }
 0x3ee   : > { %v4272_v14 = vcombine.low %v2320_v12, %v2320_v12 }
 0x3f0   : > { %1911 = vrot.lane.b32.xlu1 %v4231_v1, %s6274_s30  ;;  %1913 = vrot.lane.b32.xlu0 %v4232_v34, %s6274_s30 }
 0x3f4   : > { %2348 = vrot.lane.b32.xlu1 %v4270_v31, %s6281_s23  ;;  %3772 = vrot.lane.b32.xlu0 %v3765_v32, %s4649_s20  ;;  %v941_v32 = vld [vmem:[%s6239_s6 + $0x10] sm:$0xff]  ;;  %v2402_v31 = vld [vmem:[%s6243_s10] sm:$0xff] }
 0x3f8   : > { %1998 = vrot.lane.b32.xlu1 %v4239_v10, %s6275_s16  ;;  %2000 = vrot.lane.b32.xlu0 %v4240_v61, %s6275_s16  ;;  %v2403_v61 = vld [vmem:[%s6243_s10 + $0x8] sm:$0xff] }
 0x3fc   : > { %2089 = vrot.lane.b32.xlu1 %v4248_v3, %s6276_s17  ;;  %2087 = vrot.lane.b32.xlu0 %v4247_v50, %s6276_s17 }
 0x400   : > { %3774 = vrot.lane.b32.xlu1 %v3766_v56, %s4649_s20  ;;  %3770 = vrot.lane.b32.xlu0 %v3764_v38, %s4649_s20  ;;  %v3943_v56 = vld [vmem:[%s6245_s12 + $0x10] sm:$0xff] }
 0x404   : > { %2176 = vrot.lane.b32.xlu1 %v4256_v48, %s6277_s21  ;;  %2174 = vrot.lane.b32.xlu0 %v4255_v42, %s6277_s21  ;;  %s4650_s21 = smov 61  }
 0x408   : > { %2263 = vrot.lane.b32.xlu1 %v4263_v5, %s6278_s18  ;;  %2265 = vrot.lane.b32.xlu0 %v4264_v27, %s6278_s18 }
 0x40c   : > { %3824 = vrot.lane.b32.xlu1 %v3817_v36, %s4650_s21  ;;  %3826 = vrot.lane.b32.xlu0 %v3818_v63, %s4650_s21 }
 0x410   : > { %2350 = vrot.lane.b32.xlu1 %v4271_v39, %s6281_s23  ;;  %2352 = vrot.lane.b32.xlu0 %v4272_v14, %s6281_s23 }
 0x414   : > { %3822 = vrot.lane.b32.xlu1 %v3816_v29, %s4650_s21  ;;  %3874 = vrot.lane.b32.xlu0 %v3867_v58, %s4651_s22 }
 0x416   : > { %v1729_v9 = vpop.permute.xlu0 %1728 }
 0x417   : > { %v1739_v16 = vrot.slane %v1729_v9, 4 }
 0x418   : > { %3876 = vrot.lane.b32.xlu1 %v3868_v11, %s4651_s22  ;;  %3872 = vrot.lane.b32.xlu0 %v3866_v22, %s4651_s22 }
 0x41c   : > { %460 = vperm.xlu1 %4484, %v452_v21   ;;  %465 = vperm.xlu0 %4443, %v453_v2  }
 0x41e   : > { %v1727_v40 = vpop.permute.xlu1 %1726  ;;  %v6021_v28 = vpop.permute.xlu0 %1730 }
 0x41f   : > { %v1738_v1 = vrot.slane %v1727_v40, 4  ;;  %v1740_v14 = vrot.slane %v6021_v28, 4 }
 0x420   : > { %944 = vperm.xlu1 %4484, %v939_v6   ;;  %949 = vperm.xlu0 %4443, %v940_v62  }
 0x421   : > { %v1745_v34 = vsel %vm6285_vm7, %v1738_v1, %v1739_v16  ;;  %vm6294_vm7 = vmmov %vm6286_vm1 }
 0x422   : > { %v1746_v15 = vsel %vm648_vm10, %v1727_v40, %v1745_v34  ;;  %v1733_v44 = vpop.permute.xlu1 %1732  ;;  %v1817_v47 = vpop.permute.xlu0 %1816 }
 0x423   : > { %v4371_v7 = vcombine.low %v5835_v30, %v1746_v15  ;;  %v4280_v10 = vcombine.high %v5841_v35, %v1746_v15  ;;  %v3941_v30 = vld [vmem:[%s6245_s12] sm:$0xff]  ;;  %v3942_v35 = vld [vmem:[%s6245_s12 + $0x8] sm:$0xff]  ;;  %v1741_v33 = vrot.slane %v1733_v44, 4  ;;  %v1827_v58 = vrot.slane %v1817_v47, 4 }
 0x424   : > { %954 = vperm.xlu1 %4484, %v941_v32   ;;  %2407 = vperm.xlu0 %4443, %v2402_v31  }
 0x425   : > { %2585 = vmatprep.subr.bf16.mxu1 %v4280_v10  ;;  %v1747_v21 = vsel %vm6286_vm1, %v1740_v14, %v1741_v33 }
 0x426   : > { %v1815_v59 = vpop.permute.xlu1 %1814  ;;  %2586 = vmatpush1.bf16.msra.mxu1 %v4371_v7  ;;  %v1821_v3 = vpop.permute.xlu0 %1820  ;;  %v1748_v34 = vsel %vm648_vm10, %v6021_v28, %v1747_v21 }
 0x427   : > { %v1826_v19 = vrot.slane %v1815_v59, 4  ;;  %v1829_v29 = vrot.slane %v1821_v3, 4 }
 0x428   : > { %2412 = vperm.xlu1 %4484, %v2403_v61   ;;  %2417 = vperm.xlu0 %4443, %v2404_v13  }
 0x429   : > { %v1832_v62 = vsel %vm6288_vm4, %v1826_v19, %v1827_v58  ;;  %vm6298_vm4 = vmmov %vm6286_vm1 }
 0x42a   : > { %v1819_v50 = vpop.permute.xlu1 %1818  ;;  %v6045_v38 = vpop.permute.xlu0 %1903  ;;  %v1833_v7 = vsel %vm689_vm11, %v1815_v59, %v1832_v62 }
 0x42b   : > { %v1828_v39 = vrot.slane %v1819_v50, 4  ;;  %v1915_v10 = vrot.slane %v6045_v38, 4 }
 0x42c   : > { %3946 = vperm.xlu1 %4484, %v3941_v30   ;;  %3951 = vperm.xlu0 %4443, %v3942_v35  }
 0x42d   : > { %v1834_v2 = vsel %vm6287_vm3, %v1828_v39, %v1829_v29  ;;  %vm6297_vm3 = vmmov %vm6286_vm1 }
 0x42e   : > { %v1906_v60 = vpop.permute.xlu1 %1905  ;;  %v6050_v55 = vpop.permute.xlu0 %1909  ;;  %v1835_v16 = vsel %vm689_vm11, %v1819_v50, %v1834_v2 }
 0x42f   : > { %v1916_v1 = vrot.slane %v1906_v60, 4  ;;  %v4284_v61 = vcombine.high %v1833_v7, %v1835_v16  ;;  %v4283_v60 = vcombine.low %v1833_v7, %v1835_v16  ;;  %v1918_v33 = vrot.slane %v6050_v55, 4 }
 0x430   : > { %3956 = vperm.xlu1 %4484, %v3943_v56  }
 0x431   : > { %v1921_v13 = vsel %vm6290_vm2, %v1915_v10, %v1916_v1  ;;  %vm6299_vm2 = vmmov %vm6286_vm1 }
 0x432   : > { %v6052_v37 = vpop.permute.xlu1 %1907  ;;  %v6054_v53 = vpop.permute.xlu0 %1990  ;;  %v1922_v14 = vsel %vm727_vm12, %v6045_v38, %v1921_v13 }
 0x433   : > { %v1917_v3 = vrot.slane %v6052_v37, 4  ;;  %v2002_v29 = vrot.slane %v6054_v53, 4 }
 0x436   : > { %v6056_v48 = vpop.permute.xlu1 %1992  ;;  %v6058_v42 = vpop.permute.xlu0 %1994 }
 0x437   : > { %v2004_v59 = vrot.slane %v6058_v42, 4  ;;  %v2003_v39 = vrot.slane %v6056_v48, 4 }
 0x43a   : > { %v1997_v51 = vpop.permute.xlu1 %1996  ;;  %v6060_v18 = vpop.permute.xlu0 %2081 }
 0x43b   : > { %v2005_v30 = vrot.slane %v1997_v51, 4  ;;  %v1923_v51 = vsel %vm6292_vm8, %v1917_v3, %v1918_v33  ;;  %v2092_v7 = vrot.slane %v6060_v18, 4  ;;  %vm6303_vm8 = vmmov %vm6286_vm1 }
 0x43c   : > { %v1924_v62 = vsel %vm727_vm12, %v6052_v37, %v1923_v51 }
 0x43d   : > { %v2010_v58 = vsel %vm6293_vm9, %v2004_v59, %v2005_v30  ;;  %vm6304_vm9 = vmmov %vm6286_vm1 }
 0x43e   : > { %v6062_v5 = vpop.permute.xlu1 %2079  ;;  %v6064_v27 = vpop.permute.xlu0 %2083 }
 0x442   : > { %v6066_v17 = vpop.permute.xlu1 %2085  ;;  %v6068_v8 = vpop.permute.xlu0 %2168 }
 0x443   : > { %v2094_v13 = vrot.slane %v6066_v17, 4  ;;  %v2179_v59 = vrot.slane %v6068_v8, 4 }
 0x446   : > { %v6070_v52 = vpop.permute.xlu1 %2166  ;;  %v6072_v0 = vpop.permute.xlu0 %2172 }
 0x447   : > { %v2181_v18 = vrot.slane %v6072_v0, 4 }
 0x44a   : > { %v6074_v63 = vpop.permute.xlu1 %2170  ;;  %v6076_v36 = vpop.permute.xlu0 %2255 }
 0x44b   : > { %v2180_v3 = vrot.slane %v6074_v63, 4 }
 0x44e   : > { %v6078_v46 = vpop.permute.xlu1 %2257  ;;  %v6080_v20 = vpop.permute.xlu0 %2261 }
 0x452   : > { %v6082_v12 = vpop.permute.xlu1 %2259  ;;  %v6084_v45 = vpop.permute.xlu0 %2342 }
 0x456   : > { %v1737_v22 = vpop.permute.xlu1 %1736  ;;  %v1735_v11 = vpop.permute.xlu0 %1734 }
 0x457   : > { %v1743_v9 = vrot.slane %v1737_v22, 4  ;;  %v1742_v6 = vrot.slane %v1735_v11, 4 }
 0x459   : > { %v1749_v40 = vsel %vm6289_vm6, %v1742_v6, %v1743_v9  ;;  %v2008_v6 = vsel %vm6294_vm7, %v2002_v29, %v2003_v39  ;;  %v2186_v39 = vsel %vm6298_vm4, %v2180_v3, %v2181_v18  ;;  %vm3776_vm6 = vcmask 506880   ;;  %vm6305_vm7 = vmmov %vm6286_vm1 }
 0x45a   : > { %v1750_v32 = vsel %vm648_vm10, %v1735_v11, %v1749_v40  ;;  %v6095_v31 = vpop.permute.xlu1 %2344  ;;  %v6097_v15 = vpop.permute.xlu0 %2346  ;;  %vm6291_vm10 = vmmov %vm6286_vm1  ;;  %v2091_v40 = vrot.slane %v6062_v5, 4  ;;  %v2009_v10 = vsel %vm767_vm13, %v6054_v53, %v2008_v6  ;;  %v2187_v8 = vsel %vm846_vm15, %v6074_v63, %v2186_v39 }
 0x45b   : > { %v4281_v44 = vcombine.low %v1748_v34, %v1750_v32  ;;  %v4282_v47 = vcombine.high %v1748_v34, %v1750_v32  ;;  %v2011_v32 = vsel %vm767_vm13, %v6058_v42, %v2010_v58  ;;  %vm6310_vm4 = vcmask 769024  }
 0x45c   : > { %v4290_v37 = vcombine.high %v2009_v10, %v2011_v32 }
 0x45d   : > { %2587 = vmatprep.subr.bf16.mxu1 %v4282_v47 }
 0x45e   : > { %v1825_v28 = vpop.permute.xlu1 %1824  ;;  %2588 = vmatpush1.bf16.msra.mxu1 %v4281_v44  ;;  %v1823_v35 = vpop.permute.xlu0 %1822 }
 0x45f   : > { %v1831_v50 = vrot.slane %v1825_v28, 4  ;;  %v1830_v56 = vrot.slane %v1823_v35, 4  ;;  %2589 = vmatprep.subr.bf16.mxu1 %v4284_v61 }
 0x461   : > { %v1836_v19 = vsel %vm6291_vm10, %v1830_v56, %v1831_v50  ;;  %v2093_v50 = vrot.slane %v6064_v27, 4  ;;  %v4289_v56 = vcombine.low %v2009_v10, %v2011_v32  ;;  %vm6300_vm10 = vmmov %vm6286_vm1  ;;  %v2267_v32 = vrot.slane %v6076_v36, 4 }
 0x462   : > { %v1837_v22 = vsel %vm689_vm11, %v1823_v35, %v1836_v19  ;;  %v1912_v11 = vpop.permute.xlu1 %1911  ;;  %2590 = vmatpush1.bf16.msra.mxu1 %v4283_v60  ;;  %v1914_v55 = vpop.permute.xlu0 %1913  ;;  %vm6295_vm11 = vmmov %vm6286_vm1  ;;  %v2178_v60 = vrot.slane %v6070_v52, 4 }
 0x463   : > { %v4285_v21 = vcombine.low %v1837_v22, %v1922_v14  ;;  %v4286_v2 = vcombine.high %v1837_v22, %v1922_v14  ;;  %v1919_v9 = vrot.slane %v1912_v11, 4  ;;  %v1920_v48 = vrot.slane %v1914_v55, 4 }
 0x464   : > { %v2097_v61 = vsel %vm6295_vm11, %v2091_v40, %v2092_v7  ;;  %v2099_v33 = vsel %vm6297_vm3, %v2093_v50, %v2094_v13  ;;  %v2268_v55 = vrot.slane %v6078_v46, 4  ;;  %v2269_v46 = vrot.slane %v6082_v12, 4  ;;  %vm6306_vm11 = vmmov %vm6299_vm2 }
 0x465   : > { %v1925_v38 = vsel %vm6286_vm1, %v1919_v9, %v1920_v48  ;;  %2591 = vmatprep.subr.bf16.mxu1 %v4286_v2  ;;  %v2098_v53 = vsel %vm805_vm14, %v6062_v5, %v2097_v61  ;;  %v2184_v5 = vsel %vm6299_vm2, %v2178_v60, %v2179_v59  ;;  %v2356_v61 = vrot.slane %v6097_v15, 4 }
 0x466   : > { %v6118_v16 = vpop.permute.xlu1 %2348  ;;  %2592 = vmatpush1.bf16.msra.mxu1 %v4285_v21  ;;  %v3773_v1 = vpop.permute.xlu0 %3772  ;;  %v1926_v34 = vsel %vm727_vm12, %v1912_v11, %v1925_v38  ;;  %vm6296_vm12 = vmmov %vm6286_vm1  ;;  %v2100_v21 = vsel %vm805_vm14, %v6064_v27, %v2099_v33  ;;  %v2355_v13 = vrot.slane %v6095_v31, 4 }
 0x467   : > { %v4287_v44 = vcombine.low %v1924_v62, %v1926_v34  ;;  %v4288_v47 = vcombine.high %v1924_v62, %v1926_v34  ;;  %v2185_v34 = vsel %vm846_vm15, %v6070_v52, %v2184_v5  ;;  %v2270_v52 = vrot.slane %v6080_v20, 4 }
 0x468   : > { %v4296_v63 = vcombine.high %v2185_v34, %v2187_v8 }
 0x469   : > { %2593 = vmatprep.subr.bf16.mxu1 %v4288_v47 }
 0x46a   : > { %v1999_v30 = vpop.permute.xlu1 %1998  ;;  %2594 = vmatpush1.bf16.msra.mxu1 %v4287_v44  ;;  %v2001_v28 = vpop.permute.xlu0 %2000  ;;  %v2357_v44 = vrot.slane %v6118_v16, 4  ;;  %v2275_v16 = vsel %vm6304_vm9, %v2269_v46, %v2270_v52 }
 0x46b   : > { %v2006_v35 = vrot.slane %v1999_v30, 4  ;;  %v2007_v42 = vrot.slane %v2001_v28, 4  ;;  %2595 = vmatprep.subr.bf16.mxu1 %v4290_v37  ;;  %v4295_v37 = vcombine.low %v2185_v34, %v2187_v8  ;;  %v2354_v28 = vrot.slane %v6084_v45, 4 }
 0x46d   : > { %v2012_v17 = vsel %vm6296_vm12, %v2006_v35, %v2007_v42  ;;  %v2362_v35 = vsel %vm6305_vm7, %v2356_v61, %v2357_v44  ;;  %vm6307_vm12 = vmmov %vm6299_vm2  ;;  %v4589_v44 = vld [vmem:[%s6244_s11 + $0x8] ss:$16 sps:$4 sm:$0xff]  }
 0x46e   : > { %v2090_v14 = vpop.permute.xlu1 %2089  ;;  %2596 = vmatpush1.bf16.msra.mxu1 %v4289_v56  ;;  %v2088_v19 = vpop.permute.xlu0 %2087  ;;  %v2013_v51 = vsel %vm767_vm13, %v1999_v30, %v2012_v17  ;;  %vm6301_vm13 = vmmov %vm6286_vm1  ;;  %vm3828_vm1 = vcmask 498688  }
 0x46f   : > { %v2096_v0 = vrot.slane %v2090_v14, 4  ;;  %v2095_v29 = vrot.slane %v2088_v19, 4  ;;  %v4291_v58 = vcombine.low %v2013_v51, %v2098_v53  ;;  %v4292_v22 = vcombine.high %v2013_v51, %v2098_v53 }
 0x470   : > { %v2273_v27 = vsel %vm6301_vm13, %v2267_v32, %v2268_v55  ;;  %v2363_v14 = vsel %vm6310_vm4, %v6097_v15, %v2362_v35  ;;  %vm3878_vm13 = vcmask 490496  }
 0x471   : > { %v2101_v11 = vsel %vm6300_vm10, %v2095_v29, %v2096_v0  ;;  %2597 = vmatprep.subr.bf16.mxu1 %v4292_v22  ;;  %vm6312_vm10 = vmmov %vm6310_vm4 }
 0x472   : > { %v2102_v2 = vsel %vm805_vm14, %v2088_v19, %v2101_v11  ;;  %v3775_v9 = vpop.permute.xlu1 %3774  ;;  %2598 = vmatpush1.bf16.msra.mxu1 %v4291_v58  ;;  %v3771_v48 = vpop.permute.xlu0 %3770  ;;  %vm6302_vm14 = vcmask 777216  }
 0x473   : > { %v4293_v6 = vcombine.low %v2100_v21, %v2102_v2  ;;  %v4294_v38 = vcombine.high %v2100_v21, %v2102_v2  ;;  %v3777_v62 = vsel %vm3776_vm6, %v3771_v48, %v3773_v1  ;;  %v3778_v40 = vsel %vm3776_vm6, %v3773_v1, %v3775_v9  ;;  %vm6308_vm3 = vmmov %vm6302_vm14 }
 0x474   : > { %4060 = vmatprep.subr.bf16.mxu0 %v3778_v40  ;;  %v2274_v3 = vsel %vm6302_vm14, %v6076_v36, %v2273_v27  ;;  %v2360_v36 = vsel %vm6306_vm11, %v2354_v28, %v2355_v13  ;;  %v2276_v17 = vsel %vm6308_vm3, %v6082_v12, %v2275_v16  ;;  %vm6311_vm6 = vmmov %vm6310_vm4 }
 0x475   : > { %2599 = vmatprep.subr.bf16.mxu1 %v4294_v38  ;;  %4061 = vmatpush1.bf16.msra.mxu0 %v3777_v62  ;;  %v2361_v29 = vsel %vm6311_vm6, %v6084_v45, %v2360_v36  ;;  %vm6313_vm14 = vmmov %vm6299_vm2  ;;  %v4586_v62 = vld [vmem:[%s6242_s9] ss:$8 sps:$4 sm:$0xff]  }
 0x476   : > { %v2177_v47 = vpop.permute.xlu1 %2176  ;;  %2600 = vmatpush1.bf16.msra.mxu1 %v4293_v6  ;;  %v2175_v7 = vpop.permute.xlu0 %2174  ;;  %v4302_v58 = vcombine.high %v2361_v29, %v2363_v14  ;;  %v4301_v8 = vcombine.low %v2361_v29, %v2363_v14  ;;  %v2374_v6 = vld [vmem:[%s6242_s9 + $0x10] sm:$0xff] }
 0x477   : > { %v2183_v10 = vrot.slane %v2177_v47, 4  ;;  %v2182_v1 = vrot.slane %v2175_v7, 4  ;;  %2601 = vmatprep.subr.bf16.mxu1 %v4296_v63  ;;  %v4276_v32 = vcombine.high %v2374_v6, %v2374_v6  ;;  %v3890_v63 = vld [vmem:[%s6244_s11 + $0x28] sm:$0xff] }
 0x478   : > { %v4365_v47 = vcombine.high %v3890_v63, %v3890_v63 }
 0x479   : > { %v2188_v30 = vsel %vm6303_vm8, %v2182_v1, %v2183_v10  ;;  %vm6314_vm8 = vmmov %vm6299_vm2  ;;  %v4364_v10 = vcombine.low %v3890_v63, %v3890_v63 }
 0x47a   : > { %v2189_v42 = vsel %vm846_vm15, %v2175_v7, %v2188_v30  ;;  %v2264_v50 = vpop.permute.xlu1 %2263  ;;  %2602 = vmatpush1.bf16.msra.mxu1 %v4295_v37  ;;  %v2266_v20 = vpop.permute.xlu0 %2265  ;;  %vm6309_vm15 = vmmov %vm6308_vm3  ;;  %v4275_v7 = vcombine.low %v2374_v6, %v2374_v6 }
 0x47b   : > { %v4297_v18 = vcombine.low %v2189_v42, %v2274_v3  ;;  %v4298_v56 = vcombine.high %v2189_v42, %v2274_v3  ;;  %v2271_v53 = vrot.slane %v2264_v50, 4  ;;  %v2272_v31 = vrot.slane %v2266_v20, 4 }
 0x47d   : > { %v2277_v60 = vsel %vm6307_vm12, %v2271_v53, %v2272_v31  ;;  %2603 = vmatprep.subr.bf16.mxu1 %v4298_v56 }
 0x47e   : > { %v3825_v33 = vpop.permute.xlu1 %3824  ;;  %2604 = vmatpush1.bf16.msra.mxu1 %v4297_v18  ;;  %v3827_v59 = vpop.permute.xlu0 %3826  ;;  %v2278_v39 = vsel %vm6309_vm15, %v2264_v50, %v2277_v60 }
 0x47f   : > { %v3830_v19 = vsel %vm3828_vm1, %v3825_v33, %v3827_v59  ;;  %v4299_v51 = vcombine.low %v2276_v17, %v2278_v39  ;;  %v4300_v0 = vcombine.high %v2276_v17, %v2278_v39 }
 0x480   : > { %4062 = vmatprep.subr.bf16.mxu0 %v3830_v19 }
 0x481   : > { %2605 = vmatprep.subr.bf16.mxu1 %v4300_v0 }
 0x482   : > { %v2351_v22 = vpop.permute.xlu1 %2350  ;;  %2606 = vmatpush1.bf16.msra.mxu1 %v4299_v51  ;;  %v2353_v12 = vpop.permute.xlu0 %2352 }
 0x483   : > { %v2358_v5 = vrot.slane %v2351_v22, 4  ;;  %v2359_v11 = vrot.slane %v2353_v12, 4  ;;  %2607 = vmatprep.subr.bf16.mxu1 %v4302_v58 }
 0x485   : > { %v2364_v55 = vsel %vm6299_vm2, %v2358_v5, %v2359_v11 }
 0x486   : > { %v2365_v15 = vsel %vm6312_vm10, %v2351_v22, %v2364_v55  ;;  %v3823_v21 = vpop.permute.xlu1 %3822  ;;  %2608 = vmatpush1.bf16.msra.mxu1 %v4301_v8  ;;  %v3875_v2 = vpop.permute.xlu0 %3874 }
 0x487   : > { %v3829_v9 = vsel %vm3828_vm1, %v3823_v21, %v3825_v33  ;;  %v4304_v48 = vcombine.high %v2365_v15, %v2365_v15  ;;  %v4303_v45 = vcombine.low %v2365_v15, %v2365_v15 }
 0x488   : > { %4063 = vmatpush1.bf16.msra.mxu0 %v3829_v9 }
 0x489   : > { %4305 = vmatprep.subr.msk.bf16.mxu1 %vm6313_vm14, %v4304_v48  ;;  %v2578_v38 = vsel %vm6314_vm8, %v4303_v45, 0 }
 0x48a   : > { %v3877_v40 = vpop.permute.xlu1 %3876  ;;  %2610 = vmatpush1.bf16.msra.mxu1 %v2578_v38  ;;  %v3873_v34 = vpop.permute.xlu0 %3872 }
 0x48b   : > { %v3879_v27 = vsel %vm3878_vm13, %v3873_v34, %v3875_v2  ;;  %v3880_v46 = vsel %vm3878_vm13, %v3875_v2, %v3877_v40 }
 0x48c   : > { %4064 = vmatprep.subr.bf16.mxu0 %v3880_v46 }
 0x48d   : > { %2616 = vmatmul.mubr.bf16.vlgmr.msra.gmra.mrb[16].mxu1 %v4586_v62  ;;  %4065 = vmatpush1.bf16.msra.mxu0 %v3879_v27 }
 0x48e   : > { %4307 = vmatprep.mubr.msk.bf16.mxu1 %vm2570_vm0, %v4276_v32 }
 0x490   : > { %4081 = vmatmul.mubr.bf16.vlgmr.msra.gmra.mrb[12].mxu0 %v4589_v44 }
 0x491   : > { %4367 = vmatprep.mubr.msk.bf16.mxu0 %vm710_vm5, %v4365_v47 }
 0x495   : > { %2626 = vmatmul.mubr.bf16.gmra.mrb[20].mxu1 %v4275_v7 }
 0x498   : > { %4091 = vmatmul.mubr.bf16.gmra.mrb[16].mxu0 %v4364_v10 }
 0x49b   : > { %v461_v1 = vpop.permute.xlu1 %460  ;;  %v466_v37 = vpop.permute.xlu0 %465 }
 0x49c   : > { %v555_v52 = vadd.f32 %v4888_v23, %v461_v1  ;;  %v557_v61 = vadd.f32 %v4890_v24, %v461_v1  ;;  %v559_v13 = vadd.f32 %v4892_v25, %v466_v37  ;;  %v561_v3 = vadd.f32 %v4894_v26, %v466_v37 }
 0x49e   : > { %583 = vst [vmem:[%s6196_s15] sm:$0xff] %v555_v52  ;;  %584 = vst [vmem:[%s6196_s15 + $0x8] sm:$0xff] %v557_v61 }
 0x49f   : > { %585 = vst [vmem:[%s6196_s15 + $0x10] sm:$0xff] %v559_v13  ;;  %586 = vst [vmem:[%s6196_s15 + $0x18] sm:$0xff] %v561_v3  ;;  %v945_v30 = vpop.permute.xlu1 %944  ;;  %v950_v16 = vpop.permute.xlu0 %949 }
 0x4a0   : > { %v1012_v28 = vadd.f32 %v5296_v41, %v945_v30  ;;  %v1014_v23 = vadd.f32 %v5301_v57, %v945_v30  ;;  %v1016_v35 = vadd.f32 %v5303_v43, %v950_v16  ;;  %v1018_v24 = vadd.f32 %v5307_v4, %v950_v16 }
 0x4a2   : > { %1028 = vst [vmem:[%s6196_s15 + $0x80] sm:$0xff] %v1012_v28  ;;  %1029 = vst [vmem:[%s6196_s15 + $0x88] sm:$0xff] %v1014_v23 }
 0x4a3   : > { %1030 = vst [vmem:[%s6196_s15 + $0x90] sm:$0xff] %v1016_v35  ;;  %1031 = vst [vmem:[%s6196_s15 + $0x98] sm:$0xff] %v1018_v24  ;;  %v955_v25 = vpop.permute.xlu1 %954  ;;  %v2408_v41 = vpop.permute.xlu0 %2407 }
 0x4a4   : > { %v1022_v26 = vadd.f32 %v5317_v49, %v955_v25  ;;  %v1024_v42 = vadd.f32 %v5319_v54, %v955_v25 }
 0x4a6   : > { %1032 = vst [vmem:[%s6196_s15 + $0xa0] sm:$0xff] %v1022_v26  ;;  %1033 = vst [vmem:[%s6196_s15 + $0xa8] sm:$0xff] %v1024_v42 }
 0x4a7   : > { %v2413_v50 = vpop.permute.xlu1 %2412  ;;  %v2418_v57 = vpop.permute.xlu0 %2417 }
 0x4ab   : > { %v3947_v18 = vpop.permute.xlu1 %3946  ;;  %v3952_v33 = vpop.permute.xlu0 %3951 }
 0x4af   : > { %v3957_v22 = vpop.permute.xlu1 %3956 }
 0x560   : > { %v2617_v43 = vpop.f32.mrb[16].mxu1 }
 0x561   : > { %v2618_v20 = vadd.f32 %v2617_v43, %v2408_v41  ;;  %v2619_v4 = vpop.f32.mrb[17].mxu1 }
 0x562   : > { %v2620_v56 = vadd.f32 %v2619_v4, %v2408_v41  ;;  %v2621_v53 = vpop.f32.mrb[18].mxu1 }
 0x563   : > { %2634 = vst [vmem:[%s6196_s15 + $0x20] sm:$0xff] %v2618_v20  ;;  %v2622_v49 = vadd.f32 %v2621_v53, %v2413_v50  ;;  %v2623_v31 = vpop.f32.mrb[19].mxu1  ;;  %v4082_v54 = vpop.f32.mrb[12].mxu0 }
 0x564   : > { %2635 = vst [vmem:[%s6196_s15 + $0x28] sm:$0xff] %v2620_v56  ;;  %v2624_v36 = vadd.f32 %v2623_v31, %v2413_v50  ;;  %v4372_v60 = vadd.f32 %v4082_v54, %v3947_v18  ;;  %v4084_v17 = vpop.f32.mrb[13].mxu0 }
 0x565   : > { %2636 = vst [vmem:[%s6196_s15 + $0x30] sm:$0xff] %v2622_v49  ;;  %v4373_v59 = vadd.f32 %v4084_v17, %v3947_v18  ;;  %v4086_v39 = vpop.f32.mrb[14].mxu0 }
 0x566   : > { %2637 = vst [vmem:[%s6196_s15 + $0x38] sm:$0xff] %v2624_v36  ;;  %4099 = vst [vmem:[%s6196_s15 + $0x50] sm:$0xff] %v4372_v60  ;;  %v4374_v14 = vadd.f32 %v4086_v39, %v3952_v33  ;;  %v4088_v19 = vpop.f32.mrb[15].mxu0 }
 0x567   : > { %4100 = vst [vmem:[%s6196_s15 + $0x58] sm:$0xff] %v4373_v59  ;;  %v4375_v51 = vadd.f32 %v4088_v19, %v3952_v33 }
 0x568   : > { %4101 = vst [vmem:[%s6196_s15 + $0x60] sm:$0xff] %v4374_v14  ;;  %v2627_v0 = vpop.f32.mrb[20].mxu1 }
 0x569   : > { %4102 = vst [vmem:[%s6196_s15 + $0x68] sm:$0xff] %v4375_v51  ;;  %v2628_v29 = vadd.f32 %v2627_v0, %v2418_v57  ;;  %v2629_v58 = vpop.f32.mrb[21].mxu1 }
 0x56a   : > { %v2630_v12 = vadd.f32 %v2629_v58, %v2418_v57  ;;  %v2631_v5 = vpop.f32.mrb[22].mxu1 }
 0x56b   : > { %2638 = vst [vmem:[%s6196_s15 + $0x40] sm:$0xff] %v2628_v29  ;;  %v2632_v11 = vpop.f32.mrb[23].mxu1  ;;  %v4092_v8 = vpop.f32.mrb[16].mxu0 }
 0x56c   : > { %2639 = vst [vmem:[%s6196_s15 + $0x48] sm:$0xff] %v2630_v12  ;;  %v4376_v55 = vadd.f32 %v4092_v8, %v3957_v22  ;;  %v4094_v15 = vpop.f32.mrb[17].mxu0 }
 0x56d   : > { %v4377_v21 = vadd.f32 %v4094_v15, %v3957_v22  ;;  %v4096_v2 = vpop.f32.mrb[18].mxu0 }
 0x56e   : > { %4103 = vst [vmem:[%s6196_s15 + $0x70] sm:$0xff] %v4376_v55  ;;  %v4097_v9 = vpop.f32.mrb[19].mxu0 }
 0x56f   : > { %4104 = vst [vmem:[%s6196_s15 + $0x78] sm:$0xff] %v4377_v21 }
 0x570 PF: > { %s23_s25 = sadd.s32 1, %s4602_s25  }
 0x571   : > { %p20_p4 = scmp.ge.s32.totalorder %s23_s25, 4  }
 0x573   :  { %22 = sbr.rel (!%p20_p4) target bundleno = 1 (0x1), region = 102 }

</bundles_post_ra>
